<compile_context>
chip_gen: v7x
topology: tpu7x:2x2x1
jax: 0.10.0
libtpu: 0.0.40
codegen_flags: <defaults>
</compile_context>

<pallas_src>
import functools
import math

import jax
import jax.numpy as jnp
from jax.experimental import pallas as pl
from jax.experimental.pallas import tpu as pltpu


# ---------------------------------------------------------------------------
# Generation-aware sizing
# ---------------------------------------------------------------------------

@functools.lru_cache(maxsize=None)
def _hw_caps():
    """(vmem_limit_bytes, row_tile_cap), sized per TPU generation."""
    try:
        vmem = int(pltpu.get_tpu_info().vmem_capacity_bytes)
    except Exception:
        vmem = 64 * 1024 * 1024            # conservative (v7x: 64 MiB per TC)
    limit = min(vmem * 3 // 4, 100 * 1024 * 1024)
    tm_cap = 1024 if vmem >= 100 * 1024 * 1024 else 512
    return limit, tm_cap


_ATTN_VMEM_BUDGET = 8 * 1024 * 1024        # safe on v5e / v6e / v7x


def _round_up(x, m):
    return (x + m - 1) // m * m


# ---------------------------------------------------------------------------
# Fused (LayerNorm) -> matmul(bf16) -> bias -> (activation) -> (+residual)
# ---------------------------------------------------------------------------

def _fused_linear_kernel(*refs, ln, eps, activation, has_residual):
    if has_residual:
        x_ref, w_ref, b_ref, r_ref, o_ref = refs
    else:
        x_ref, w_ref, b_ref, o_ref = refs
        r_ref = None

    if ln:                                   # f32 LN stats, no affine
        x = x_ref[...].astype(jnp.float32)
        mu = jnp.mean(x, axis=-1, keepdims=True)
        xc = x - mu
        var = jnp.mean(xc * xc, axis=-1, keepdims=True)
        x_mm = (xc * jax.lax.rsqrt(var + eps)).astype(jnp.bfloat16)
    else:
        x_mm = x_ref[...].astype(jnp.bfloat16)

    y = jnp.dot(x_mm, w_ref[...].astype(jnp.bfloat16),
                preferred_element_type=jnp.float32)
    y = y + b_ref[...].astype(jnp.float32)

    if activation == "gelu_tanh":
        c = math.sqrt(2.0 / math.pi)
        y = 0.5 * y * (1.0 + jnp.tanh(c * (y + 0.044715 * y * y * y)))
    elif activation == "relu":
        y = jnp.maximum(y, 0.0)

    if has_residual:
        y = y + r_ref[...].astype(jnp.float32)

    o_ref[...] = y.astype(o_ref.dtype)


def _pick_tm(m, cap):
    """Whole M if it fits; else the largest 16-aligned divisor of M <= cap
    (avoids any jnp.pad on the hot path); else cap (rows get zero-padded)."""
    if m <= cap:
        return m
    t = cap - cap % 16
    while t >= 128:
        if m % t == 0:
            return t
        t -= 16
    return cap


def fused_linear(x, w, b, *, ln=False, eps=1e-6, activation=None,
                 residual=None, out_dtype=jnp.float32):
    """out = [residual +] act([LN](x) @ w + b).

    1-D grid over row tiles; the weight / bias blocks use a constant index_map
    so they stay resident in VMEM (no per-step re-fetch).  bf16 MXU matmul
    with f32 accumulation; epilogue math in f32.
    """
    m, k = x.shape
    k2, n = w.shape
    assert k == k2
    # TODO(synk): fall back to N-tiling if k*n ever threatens VMEM; every layer
    # width in this model is <= 1536 (~4.5 MiB resident in bf16).
    vmem_limit, tm_cap = _hw_caps()
    tm = _pick_tm(m, tm_cap)
    mp = _round_up(m, tm)

    x_p = x if mp == m else jnp.pad(x, ((0, mp - m), (0, 0)))
    inputs = [x_p, w, b.reshape(1, n)]
    in_specs = [
        pl.BlockSpec((tm, k), lambda i: (i, 0)),
        pl.BlockSpec((k, n), lambda i: (0, 0)),      # resident weight
        pl.BlockSpec((1, n), lambda i: (0, 0)),      # resident bias
    ]
    has_residual = residual is not None
    if has_residual:
        r_p = residual if mp == m else jnp.pad(residual, ((0, mp - m), (0, 0)))
        inputs.append(r_p)
        in_specs.append(pl.BlockSpec((tm, n), lambda i: (i, 0)))

    kernel = functools.partial(_fused_linear_kernel, ln=ln, eps=eps,
                               activation=activation,
                               has_residual=has_residual)
    out = pl.pallas_call(
        kernel,
        out_shape=jax.ShapeDtypeStruct((mp, n), out_dtype),
        grid=(mp // tm,),
        in_specs=in_specs,
        out_specs=pl.BlockSpec((tm, n), lambda i: (i, 0)),
        compiler_params=pltpu.CompilerParams(
            dimension_semantics=("parallel",),
            vmem_limit_bytes=vmem_limit),
    )(*inputs)
    return out if mp == m else out[:m]


# ---------------------------------------------------------------------------
# Multi-head attention: heads split / merged inside the kernel
# ---------------------------------------------------------------------------

def _attention_kernel(qkv_ref, o_ref, *, num_heads, scale):
    c = o_ref.shape[-1]
    dh = c // num_heads
    qkv = qkv_ref[...]                                   # (Bblk, L, 3C) bf16
    outs = []
    for h in range(num_heads):                           # unrolled head loop
        q = qkv[:, :, h * dh:(h + 1) * dh]
        k = qkv[:, :, c + h * dh:c + (h + 1) * dh]
        v = qkv[:, :, 2 * c + h * dh:2 * c + (h + 1) * dh]
        s = jnp.einsum("bqd,bkd->bqk", q, k,
                       preferred_element_type=jnp.float32) * scale
        m = jnp.max(s, axis=-1, keepdims=True)
        p = jnp.exp(s - m)
        denom = jnp.sum(p, axis=-1, keepdims=True)
        p = p * pl.reciprocal(denom, approx=True)        # EUP reciprocal
        o = jnp.einsum("bqk,bkd->bqd", p.astype(v.dtype), v,
                       preferred_element_type=jnp.float32)
        outs.append(o.astype(o_ref.dtype))
    o_ref[...] = jnp.concatenate(outs, axis=-1)          # lane-dense store


def _attn_rows_per_step(sb, l, c, num_heads):
    """Batch rows per grid step from a VMEM budget (scales down with L for the
    space-attention case); prefer a divisor of Sb to avoid padding."""
    dh = c // num_heads
    per_b = (2 * l * 3 * c * 2      # qkv block, bf16, double-buffered
             + 2 * l * c * 2        # out block, bf16, double-buffered
             + 2 * l * l * 4        # scores + probs, f32
             + 4 * l * dh * 4)      # per-head q/k/v/o temporaries, f32
    cap = max(1, _ATTN_VMEM_BUDGET // per_b)
    cap = min(cap, 1024, sb)
    if sb <= cap:
        return sb, sb
    d = 1
    for t in range(cap, 0, -1):
        if sb % t == 0:
            d = t
            break
    if d >= max(8, cap // 4):
        return d, sb
    bblk = max(8, cap - cap % 8)
    return bblk, _round_up(sb, bblk)


def attention(qkv, num_heads, scale, out_dtype=jnp.bfloat16):
    """qkv: (Sb, L, 3C) bf16 -> (Sb, L, C) bf16.  Head split/merge is done
    inside the kernel with static channel slices, so no HBM transposes."""
    sb, l, c3 = qkv.shape
    c = c3 // 3
    bblk, sbp = _attn_rows_per_step(sb, l, c, num_heads)
    if sbp != sb:
        qkv = jnp.pad(qkv, ((0, sbp - sb), (0, 0), (0, 0)))
    vmem_limit, _ = _hw_caps()
    kernel = functools.partial(_attention_kernel, num_heads=num_heads,
                               scale=scale)
    out = pl.pallas_call(
        kernel,
        out_shape=jax.ShapeDtypeStruct((sbp, l, c), out_dtype),
        grid=(sbp // bblk,),
        in_specs=[pl.BlockSpec((bblk, l, 3 * c), lambda i: (i, 0, 0))],
        out_specs=pl.BlockSpec((bblk, l, c), lambda i: (i, 0, 0)),
        compiler_params=pltpu.CompilerParams(
            dimension_semantics=("parallel",),
            vmem_limit_bytes=vmem_limit),
    )(qkv)
    return out if sbp == sb else out[:sb]


# ---------------------------------------------------------------------------
# Transformer block + UpdateFormer forward (plain-JAX glue around kernels)
# ---------------------------------------------------------------------------

def attn_block(x, blk, num_heads):
    """x: (Sb, L, C) f32 -> (Sb, L, C) f32.  Pre-LN MHA + pre-LN MLP with
    residuals; LN fused into the qkv / fc1 kernels, residual adds fused into
    the proj / fc2 kernels."""
    sb, l, c = x.shape
    m = sb * l
    x2d = x.reshape(m, c)

    # attention branch
    qkv = fused_linear(x2d, blk["w_qkv"], blk["b_qkv"], ln=True,
                       out_dtype=jnp.bfloat16)                     # (M, 3C)
    o = attention(qkv.reshape(sb, l, 3 * c), num_heads,
                  scale=(c // num_heads) ** -0.5)                  # (Sb, L, C)
    x2d = fused_linear(o.reshape(m, c), blk["w_proj"], blk["b_proj"],
                       residual=x2d)

    # MLP branch
    h = fused_linear(x2d, blk["w_fc1"], blk["b_fc1"], ln=True,
                     activation="gelu_tanh", out_dtype=jnp.bfloat16)
    x2d = fused_linear(h, blk["w_fc2"], blk["b_fc2"], residual=x2d)
    return x2d.reshape(sb, l, c)


def update_former_forward(params, input_tensor, mask=None):
    # TODO(synk): `mask` is accepted but unused, matching the reference forward.
    B, N, T, Ci = input_tensor.shape
    C = params["hidden_size"]
    num_heads = params["num_heads"]

    x = fused_linear(input_tensor.reshape(B * N * T, Ci),
                     params["w_in"], params["b_in"]).reshape(B, N, T, C)

    time_blocks = params["time_blocks"]
    space_blocks = params["space_blocks"]
    add_space = params["add_space_attn"]
    j = 0
    for i in range(len(time_blocks)):
        # time attention: (b n) t c
        x_time = attn_block(x.reshape(B * N, T, C), time_blocks[i], num_heads)
        x = x_time.reshape(B, N, T, C)
        if add_space and i % (len(time_blocks) // len(space_blocks)) == 0:
            # space attention: (b t) n c
            x_space = jnp.transpose(x, (0, 2, 1, 3)).reshape(B * T, N, C)
            x_space = attn_block(x_space, space_blocks[j], num_heads)
            x = jnp.transpose(x_space.reshape(B, T, N, C), (0, 2, 1, 3))
            j += 1

    flow = fused_linear(x.reshape(B * N * T, C),
                        params["w_out"], params["b_out"]).reshape(B, N, T, -1)
    return flow


# ---------------------------------------------------------------------------
# pt_att_transformer forward (efficient=False path)
# ---------------------------------------------------------------------------

def pt_att_transformer_forward(params, traj_pad, pad_mask=None):
    """traj_pad: (B, Cin, W, L) -> (1, C_out, B*W).

    Matches pt_att_transformer.forward with the UpdateFormer core: 1x1 conv +
    ReLU projections (per-position linears), transformer over (N=B*W, T=L)
    tokens, then a max-over-time readout.
    TODO(synk): pad_mask accepted but unused — UpdateFormer ignores its mask.
    """
    B, ci, W, L = traj_pad.shape
    x = jnp.transpose(traj_pad, (0, 2, 3, 1)).reshape(B * W * L, ci)
    x = fused_linear(x, params["w_proj1"], params["b_proj1"], activation="relu")
    x = fused_linear(x, params["w_proj2"], params["b_proj2"], activation="relu")
    c = params["w_proj2"].shape[1]
    tokens = x.reshape(1, B * W, L, c)                 # (1, N, T, C)

    flow = update_former_forward(params["transformer"], tokens)   # (1,N,T,Co)
    global_out = jnp.max(flow, axis=2)                 # max over time (1,N,Co)
    return jnp.transpose(global_out, (0, 2, 1))        # (1, Co, N)


# ---------------------------------------------------------------------------
# Deterministic parameter init (xavier_uniform weights -> bf16, zero biases)
# ---------------------------------------------------------------------------

def _xavier(key, fan_in, fan_out):
    bound = math.sqrt(6.0 / (fan_in + fan_out))
    w = jax.random.uniform(key, (fan_in, fan_out), jnp.float32, -bound, bound)
    return w.astype(jnp.bfloat16)          # weights stored bf16 for the MXU


def _init_block(key, hidden, mlp_ratio):
    mlp_h = int(hidden * mlp_ratio)
    k = jax.random.split(key, 4)
    return {
        "w_qkv": _xavier(k[0], hidden, 3 * hidden),
        "b_qkv": jnp.zeros((3 * hidden,), jnp.float32),
        "w_proj": _xavier(k[1], hidden, hidden),
        "b_proj": jnp.zeros((hidden,), jnp.float32),
        "w_fc1": _xavier(k[2], hidden, mlp_h),
        "b_fc1": jnp.zeros((mlp_h,), jnp.float32),
        "w_fc2": _xavier(k[3], mlp_h, hidden),
        "b_fc2": jnp.zeros((hidden,), jnp.float32),
    }


def init_update_former(key, *, space_depth, time_depth, input_dim, hidden_size,
                       num_heads, output_dim, mlp_ratio, add_space_attn):
    k_in, k_out, k_t, k_s = jax.random.split(key, 4)
    return {
        "hidden_size": hidden_size,
        "num_heads": num_heads,
        "add_space_attn": add_space_attn,
        "w_in": _xavier(k_in, input_dim, hidden_size),
        "b_in": jnp.zeros((hidden_size,), jnp.float32),
        "w_out": _xavier(k_out, hidden_size, output_dim),
        "b_out": jnp.zeros((output_dim,), jnp.float32),
        "time_blocks": [
            _init_block(kk, hidden_size, mlp_ratio)
            for kk in jax.random.split(k_t, time_depth)
        ],
        "space_blocks": [
            _init_block(kk, hidden_size, mlp_ratio)
            for kk in jax.random.split(k_s, space_depth)
        ] if add_space_attn else [],
    }


def init_pt_att_transformer(key, *, in_dim, in_out_channels, hidden_size,
                            num_heads, time_depth, space_depth, mlp_ratio,
                            add_space_attn=True):
    k1, k2, k3 = jax.random.split(key, 3)
    return {
        "w_proj1": _xavier(k1, in_dim, 16),
        "b_proj1": jnp.zeros((16,), jnp.float32),
        "w_proj2": _xavier(k2, 16, in_out_channels),
        "b_proj2": jnp.zeros((in_out_channels,), jnp.float32),
        "transformer": init_update_former(
            k3, space_depth=space_depth, time_depth=time_depth,
            input_dim=in_out_channels, hidden_size=hidden_size,
            num_heads=num_heads, output_dim=in_out_channels,
            mlp_ratio=mlp_ratio, add_space_attn=add_space_attn),
    }


# ---------------------------------------------------------------------------
# Demo
# ---------------------------------------------------------------------------

if __name__ == "__main__":
    key = jax.random.PRNGKey(0)
    k_param, k_x = jax.random.split(key)

    # Small shapes consistent with pt_att_transformer: batch 1, 12 input
    # channels, 4 tracks (spatial), window_size L = 8 frames; transformer with
    # 16 in/out channels, hidden 32, 4 heads, depth 2/2, mlp_ratio 4.
    B, in_dim, W, L = 1, 12, 4, 8
    in_out_channels = 16
    hidden_size, num_heads = 32, 4
    time_depth, space_depth, mlp_ratio = 2, 2, 4.0

    params = init_pt_att_transformer(
        k_param, in_dim=in_dim, in_out_channels=in_out_channels,
        hidden_size=hidden_size, num_heads=num_heads,
        time_depth=time_depth, space_depth=space_depth,
        mlp_ratio=mlp_ratio, add_space_attn=True)

    traj_pad = jax.random.normal(k_x, (B, in_dim, W, L), jnp.float32)
    pad_mask = jnp.ones((B * W, L), jnp.float32)

    fwd = jax.jit(lambda t, m: pt_att_transformer_forward(params, t, m))
    out = fwd(traj_pad, pad_mask)
    jax.block_until_ready(out)

    assert out.shape == (1, in_out_channels, B * W)
    assert bool(jnp.all(jnp.isfinite(out)))
    print("KERNEL_OK")
</pallas_src>

<mosaic_0001>
module attributes {stable_mosaic.version = 11 : i64} {
  func.func @_fused_linear_kernel(%arg0: i32, %arg1: memref<32x16xf32, #tpu.memory_space<vmem>>, %arg2: memref<16x16xbf16, #tpu.memory_space<vmem>>, %arg3: memref<1x16xf32, #tpu.memory_space<vmem>>, %arg4: memref<32x16xf32, #tpu.memory_space<vmem>>) attributes {dimension_semantics = [#tpu.dimension_semantics<parallel>], iteration_bounds = array<i64: 1>, scalar_prefetch = 0 : i64, scratch_operands = 0 : i64, tpu.core_type = #tpu.core_type<tc>, window_params = [{transform_indices = @transform_0, window_bounds = array<i64: 32, 16>}, {pipeline_mode = #tpu.pipeline_mode<synchronous>, transform_indices = @transform_1, window_bounds = array<i64: 16, 16>}, {pipeline_mode = #tpu.pipeline_mode<synchronous>, transform_indices = @transform_2, window_bounds = array<i64: 1, 16>}, {transform_indices = @transform_3, window_bounds = array<i64: 32, 16>}]} {
    %c0 = arith.constant 0 : index
    %c0_0 = arith.constant 0 : index
    %0 = vector.load %arg1[%c0, %c0_0] : memref<32x16xf32, #tpu.memory_space<vmem>>, vector<32x16xf32>
    %1 = arith.truncf %0 : vector<32x16xf32> to vector<32x16xbf16>
    %c0_1 = arith.constant 0 : index
    %c0_2 = arith.constant 0 : index
    %2 = vector.load %arg2[%c0_1, %c0_2] : memref<16x16xbf16, #tpu.memory_space<vmem>>, vector<16x16xbf16>
    %cst = arith.constant dense<0.000000e+00> : vector<32x16xf32>
    %3 = tpu.matmul %1, %2, %cst {dimension_numbers = #tpu.dot_dimension_numbers<[1], [0], [0], [1], [0, 0, 1, 1], [], []>} : vector<32x16xbf16>, vector<16x16xbf16>, vector<32x16xf32> -> vector<32x16xf32>
    %c0_3 = arith.constant 0 : index
    %c0_4 = arith.constant 0 : index
    %4 = vector.load %arg3[%c0_3, %c0_4] : memref<1x16xf32, #tpu.memory_space<vmem>>, vector<1x16xf32>
    %5 = vector.broadcast %4 : vector<1x16xf32> to vector<32x16xf32>
    %6 = arith.addf %3, %5 : vector<32x16xf32>
    %cst_5 = arith.constant 0.000000e+00 : f32
    %7 = vector.broadcast %cst_5 : f32 to vector<32x16xf32>
    %8 = arith.maximumf %6, %7 : vector<32x16xf32>
    %c0_6 = arith.constant 0 : index
    %c0_7 = arith.constant 0 : index
    %9 = vector.load %arg4[%c0_6, %c0_7] : memref<32x16xf32, #tpu.memory_space<vmem>>, vector<32x16xf32>
    tpu.vector_store %arg4[%c0_6, %c0_7], %8 {strides = array<i32>} : memref<32x16xf32, #tpu.memory_space<vmem>>, vector<32x16xf32>,
    return
  }
  func.func @transform_0(%arg0: i32) -> (i32, i32) {
    %c0_i32 = arith.constant 0 : i32
    %c0_i32_0 = arith.constant 0 : i32
    return %arg0, %c0_i32 : i32, i32
  }
  func.func @transform_1(%arg0: i32) -> (i32, i32) {
    %c0_i32 = arith.constant 0 : i32
    %c0_i32_0 = arith.constant 0 : i32
    %c0_i32_1 = arith.constant 0 : i32
    return %c0_i32, %c0_i32_0 : i32, i32
  }
  func.func @transform_2(%arg0: i32) -> (i32, i32) {
    %c0_i32 = arith.constant 0 : i32
    %c0_i32_0 = arith.constant 0 : i32
    %c0_i32_1 = arith.constant 0 : i32
    return %c0_i32, %c0_i32_0 : i32, i32
  }
  func.func @transform_3(%arg0: i32) -> (i32, i32) {
    %c0_i32 = arith.constant 0 : i32
    %c0_i32_0 = arith.constant 0 : i32
    return %arg0, %c0_i32 : i32, i32
  }
}

module attributes {stable_mosaic.version = 11 : i64} {
  func.func @_fused_linear_kernel(%arg0: i32, %arg1: memref<32x12xf32, #tpu.memory_space<vmem>>, %arg2: memref<12x16xbf16, #tpu.memory_space<vmem>>, %arg3: memref<1x16xf32, #tpu.memory_space<vmem>>, %arg4: memref<32x16xf32, #tpu.memory_space<vmem>>) attributes {dimension_semantics = [#tpu.dimension_semantics<parallel>], iteration_bounds = array<i64: 1>, scalar_prefetch = 0 : i64, scratch_operands = 0 : i64, tpu.core_type = #tpu.core_type<tc>, window_params = [{transform_indices = @transform_0, window_bounds = array<i64: 32, 12>}, {pipeline_mode = #tpu.pipeline_mode<synchronous>, transform_indices = @transform_1, window_bounds = array<i64: 12, 16>}, {pipeline_mode = #tpu.pipeline_mode<synchronous>, transform_indices = @transform_2, window_bounds = array<i64: 1, 16>}, {transform_indices = @transform_3, window_bounds = array<i64: 32, 16>}]} {
    %c0 = arith.constant 0 : index
    %c0_0 = arith.constant 0 : index
    %0 = vector.load %arg1[%c0, %c0_0] : memref<32x12xf32, #tpu.memory_space<vmem>>, vector<32x12xf32>
    %1 = arith.truncf %0 : vector<32x12xf32> to vector<32x12xbf16>
    %c0_1 = arith.constant 0 : index
    %c0_2 = arith.constant 0 : index
    %2 = vector.load %arg2[%c0_1, %c0_2] : memref<12x16xbf16, #tpu.memory_space<vmem>>, vector<12x16xbf16>
    %cst = arith.constant dense<0.000000e+00> : vector<32x16xf32>
    %3 = tpu.matmul %1, %2, %cst {dimension_numbers = #tpu.dot_dimension_numbers<[1], [0], [0], [1], [0, 0, 1, 1], [], []>} : vector<32x12xbf16>, vector<12x16xbf16>, vector<32x16xf32> -> vector<32x16xf32>
    %c0_3 = arith.constant 0 : index
    %c0_4 = arith.constant 0 : index
    %4 = vector.load %arg3[%c0_3, %c0_4] : memref<1x16xf32, #tpu.memory_space<vmem>>, vector<1x16xf32>
    %5 = vector.broadcast %4 : vector<1x16xf32> to vector<32x16xf32>
    %6 = arith.addf %3, %5 : vector<32x16xf32>
    %cst_5 = arith.constant 0.000000e+00 : f32
    %7 = vector.broadcast %cst_5 : f32 to vector<32x16xf32>
    %8 = arith.maximumf %6, %7 : vector<32x16xf32>
    %c0_6 = arith.constant 0 : index
    %c0_7 = arith.constant 0 : index
    %9 = vector.load %arg4[%c0_6, %c0_7] : memref<32x16xf32, #tpu.memory_space<vmem>>, vector<32x16xf32>
    tpu.vector_store %arg4[%c0_6, %c0_7], %8 {strides = array<i32>} : memref<32x16xf32, #tpu.memory_space<vmem>>, vector<32x16xf32>,
    return
  }
  func.func @transform_0(%arg0: i32) -> (i32, i32) {
    %c0_i32 = arith.constant 0 : i32
    %c0_i32_0 = arith.constant 0 : i32
    return %arg0, %c0_i32 : i32, i32
  }
  func.func @transform_1(%arg0: i32) -> (i32, i32) {
    %c0_i32 = arith.constant 0 : i32
    %c0_i32_0 = arith.constant 0 : i32
    %c0_i32_1 = arith.constant 0 : i32
    return %c0_i32, %c0_i32_0 : i32, i32
  }
  func.func @transform_2(%arg0: i32) -> (i32, i32) {
    %c0_i32 = arith.constant 0 : i32
    %c0_i32_0 = arith.constant 0 : i32
    %c0_i32_1 = arith.constant 0 : i32
    return %c0_i32, %c0_i32_0 : i32, i32
  }
  func.func @transform_3(%arg0: i32) -> (i32, i32) {
    %c0_i32 = arith.constant 0 : i32
    %c0_i32_0 = arith.constant 0 : i32
    return %arg0, %c0_i32 : i32, i32
  }
}

module attributes {stable_mosaic.version = 11 : i64} {
  func.func @_fused_linear_kernel(%arg0: i32, %arg1: memref<32x16xf32, #tpu.memory_space<vmem>>, %arg2: memref<16x32xbf16, #tpu.memory_space<vmem>>, %arg3: memref<1x32xf32, #tpu.memory_space<vmem>>, %arg4: memref<32x32xf32, #tpu.memory_space<vmem>>) attributes {dimension_semantics = [#tpu.dimension_semantics<parallel>], iteration_bounds = array<i64: 1>, scalar_prefetch = 0 : i64, scratch_operands = 0 : i64, tpu.core_type = #tpu.core_type<tc>, window_params = [{transform_indices = @transform_0, window_bounds = array<i64: 32, 16>}, {pipeline_mode = #tpu.pipeline_mode<synchronous>, transform_indices = @transform_1, window_bounds = array<i64: 16, 32>}, {pipeline_mode = #tpu.pipeline_mode<synchronous>, transform_indices = @transform_2, window_bounds = array<i64: 1, 32>}, {transform_indices = @transform_3, window_bounds = array<i64: 32, 32>}]} {
    %c0 = arith.constant 0 : index
    %c0_0 = arith.constant 0 : index
    %0 = vector.load %arg1[%c0, %c0_0] : memref<32x16xf32, #tpu.memory_space<vmem>>, vector<32x16xf32>
    %1 = arith.truncf %0 : vector<32x16xf32> to vector<32x16xbf16>
    %c0_1 = arith.constant 0 : index
    %c0_2 = arith.constant 0 : index
    %2 = vector.load %arg2[%c0_1, %c0_2] : memref<16x32xbf16, #tpu.memory_space<vmem>>, vector<16x32xbf16>
    %cst = arith.constant dense<0.000000e+00> : vector<32x32xf32>
    %3 = tpu.matmul %1, %2, %cst {dimension_numbers = #tpu.dot_dimension_numbers<[1], [0], [0], [1], [0, 0, 1, 1], [], []>} : vector<32x16xbf16>, vector<16x32xbf16>, vector<32x32xf32> -> vector<32x32xf32>
    %c0_3 = arith.constant 0 : index
    %c0_4 = arith.constant 0 : index
    %4 = vector.load %arg3[%c0_3, %c0_4] : memref<1x32xf32, #tpu.memory_space<vmem>>, vector<1x32xf32>
    %5 = vector.broadcast %4 : vector<1x32xf32> to vector<32x32xf32>
    %6 = arith.addf %3, %5 : vector<32x32xf32>
    %c0_5 = arith.constant 0 : index
    %c0_6 = arith.constant 0 : index
    %7 = vector.load %arg4[%c0_5, %c0_6] : memref<32x32xf32, #tpu.memory_space<vmem>>, vector<32x32xf32>
    tpu.vector_store %arg4[%c0_5, %c0_6], %6 {strides = array<i32>} : memref<32x32xf32, #tpu.memory_space<vmem>>, vector<32x32xf32>,
    return
  }
  func.func @transform_0(%arg0: i32) -> (i32, i32) {
    %c0_i32 = arith.constant 0 : i32
    %c0_i32_0 = arith.constant 0 : i32
    return %arg0, %c0_i32 : i32, i32
  }
  func.func @transform_1(%arg0: i32) -> (i32, i32) {
    %c0_i32 = arith.constant 0 : i32
    %c0_i32_0 = arith.constant 0 : i32
    %c0_i32_1 = arith.constant 0 : i32
    return %c0_i32, %c0_i32_0 : i32, i32
  }
  func.func @transform_2(%arg0: i32) -> (i32, i32) {
    %c0_i32 = arith.constant 0 : i32
    %c0_i32_0 = arith.constant 0 : i32
    %c0_i32_1 = arith.constant 0 : i32
    return %c0_i32, %c0_i32_0 : i32, i32
  }
  func.func @transform_3(%arg0: i32) -> (i32, i32) {
    %c0_i32 = arith.constant 0 : i32
    %c0_i32_0 = arith.constant 0 : i32
    return %arg0, %c0_i32 : i32, i32
  }
}

module attributes {stable_mosaic.version = 11 : i64} {
  func.func @_fused_linear_kernel(%arg0: i32, %arg1: memref<32x32xf32, #tpu.memory_space<vmem>>, %arg2: memref<32x96xbf16, #tpu.memory_space<vmem>>, %arg3: memref<1x96xf32, #tpu.memory_space<vmem>>, %arg4: memref<32x96xbf16, #tpu.memory_space<vmem>>) attributes {dimension_semantics = [#tpu.dimension_semantics<parallel>], iteration_bounds = array<i64: 1>, scalar_prefetch = 0 : i64, scratch_operands = 0 : i64, tpu.core_type = #tpu.core_type<tc>, window_params = [{transform_indices = @transform_0, window_bounds = array<i64: 32, 32>}, {pipeline_mode = #tpu.pipeline_mode<synchronous>, transform_indices = @transform_1, window_bounds = array<i64: 32, 96>}, {pipeline_mode = #tpu.pipeline_mode<synchronous>, transform_indices = @transform_2, window_bounds = array<i64: 1, 96>}, {transform_indices = @transform_3, window_bounds = array<i64: 32, 96>}]} {
    %c0 = arith.constant 0 : index
    %c0_0 = arith.constant 0 : index
    %0 = vector.load %arg1[%c0, %c0_0] : memref<32x32xf32, #tpu.memory_space<vmem>>, vector<32x32xf32>
    %cst = arith.constant dense<0.000000e+00> : vector<32xf32>
    %1 = vector.multi_reduction <add>, %0, %cst [1] : vector<32x32xf32> to vector<32xf32>
    %2 = vector.shape_cast %1 : vector<32xf32> to vector<32x1xf32>
    %cst_1 = arith.constant 3.200000e+01 : f32
    %3 = vector.broadcast %cst_1 : f32 to vector<32x1xf32>
    %4 = arith.divf %2, %3 : vector<32x1xf32>
    %5 = vector.broadcast %4 : vector<32x1xf32> to vector<32x32xf32>
    %6 = arith.subf %0, %5 : vector<32x32xf32>
    %7 = arith.mulf %6, %6 : vector<32x32xf32>
    %cst_2 = arith.constant dense<0.000000e+00> : vector<32xf32>
    %8 = vector.multi_reduction <add>, %7, %cst_2 [1] : vector<32x32xf32> to vector<32xf32>
    %9 = vector.shape_cast %8 : vector<32xf32> to vector<32x1xf32>
    %cst_3 = arith.constant 3.200000e+01 : f32
    %10 = vector.broadcast %cst_3 : f32 to vector<32x1xf32>
    %11 = arith.divf %9, %10 : vector<32x1xf32>
    %cst_4 = arith.constant 9.99999997E-7 : f32
    %12 = vector.broadcast %cst_4 : f32 to vector<32x1xf32>
    %13 = arith.addf %11, %12 : vector<32x1xf32>
    %14 = math.rsqrt %13 : vector<32x1xf32>
    %15 = vector.broadcast %14 : vector<32x1xf32> to vector<32x32xf32>
    %16 = arith.mulf %6, %15 : vector<32x32xf32>
    %17 = arith.truncf %16 : vector<32x32xf32> to vector<32x32xbf16>
    %c0_5 = arith.constant 0 : index
    %c0_6 = arith.constant 0 : index
    %18 = vector.load %arg2[%c0_5, %c0_6] : memref<32x96xbf16, #tpu.memory_space<vmem>>, vector<32x96xbf16>
    %cst_7 = arith.constant dense<0.000000e+00> : vector<32x96xf32>
    %19 = tpu.matmul %17, %18, %cst_7 {dimension_numbers = #tpu.dot_dimension_numbers<[1], [0], [0], [1], [0, 0, 1, 1], [], []>} : vector<32x32xbf16>, vector<32x96xbf16>, vector<32x96xf32> -> vector<32x96xf32>
    %c0_8 = arith.constant 0 : index
    %c0_9 = arith.constant 0 : index
    %20 = vector.load %arg3[%c0_8, %c0_9] : memref<1x96xf32, #tpu.memory_space<vmem>>, vector<1x96xf32>
    %21 = vector.broadcast %20 : vector<1x96xf32> to vector<32x96xf32>
    %22 = arith.addf %19, %21 : vector<32x96xf32>
    %23 = arith.truncf %22 : vector<32x96xf32> to vector<32x96xbf16>
    %c0_10 = arith.constant 0 : index
    %c0_11 = arith.constant 0 : index
    %24 = vector.load %arg4[%c0_10, %c0_11] : memref<32x96xbf16, #tpu.memory_space<vmem>>, vector<32x96xbf16>
    tpu.vector_store %arg4[%c0_10, %c0_11], %23 {strides = array<i32>} : memref<32x96xbf16, #tpu.memory_space<vmem>>, vector<32x96xbf16>,
    return
  }
  func.func @transform_0(%arg0: i32) -> (i32, i32) {
    %c0_i32 = arith.constant 0 : i32
    %c0_i32_0 = arith.constant 0 : i32
    return %arg0, %c0_i32 : i32, i32
  }
  func.func @transform_1(%arg0: i32) -> (i32, i32) {
    %c0_i32 = arith.constant 0 : i32
    %c0_i32_0 = arith.constant 0 : i32
    %c0_i32_1 = arith.constant 0 : i32
    return %c0_i32, %c0_i32_0 : i32, i32
  }
  func.func @transform_2(%arg0: i32) -> (i32, i32) {
    %c0_i32 = arith.constant 0 : i32
    %c0_i32_0 = arith.constant 0 : i32
    %c0_i32_1 = arith.constant 0 : i32
    return %c0_i32, %c0_i32_0 : i32, i32
  }
  func.func @transform_3(%arg0: i32) -> (i32, i32) {
    %c0_i32 = arith.constant 0 : i32
    %c0_i32_0 = arith.constant 0 : i32
    return %arg0, %c0_i32 : i32, i32
  }
}

module attributes {stable_mosaic.version = 11 : i64} {
  func.func @_fused_linear_kernel(%arg0: i32, %arg1: memref<32x32xbf16, #tpu.memory_space<vmem>>, %arg2: memref<32x32xbf16, #tpu.memory_space<vmem>>, %arg3: memref<1x32xf32, #tpu.memory_space<vmem>>, %arg4: memref<32x32xf32, #tpu.memory_space<vmem>>, %arg5: memref<32x32xf32, #tpu.memory_space<vmem>>) attributes {dimension_semantics = [#tpu.dimension_semantics<parallel>], iteration_bounds = array<i64: 1>, scalar_prefetch = 0 : i64, scratch_operands = 0 : i64, tpu.core_type = #tpu.core_type<tc>, window_params = [{transform_indices = @transform_0, window_bounds = array<i64: 32, 32>}, {pipeline_mode = #tpu.pipeline_mode<synchronous>, transform_indices = @transform_1, window_bounds = array<i64: 32, 32>}, {pipeline_mode = #tpu.pipeline_mode<synchronous>, transform_indices = @transform_2, window_bounds = array<i64: 1, 32>}, {transform_indices = @transform_3, window_bounds = array<i64: 32, 32>}, {transform_indices = @transform_4, window_bounds = array<i64: 32, 32>}]} {
    %c0 = arith.constant 0 : index
    %c0_0 = arith.constant 0 : index
    %0 = vector.load %arg1[%c0, %c0_0] : memref<32x32xbf16, #tpu.memory_space<vmem>>, vector<32x32xbf16>
    %c0_1 = arith.constant 0 : index
    %c0_2 = arith.constant 0 : index
    %1 = vector.load %arg2[%c0_1, %c0_2] : memref<32x32xbf16, #tpu.memory_space<vmem>>, vector<32x32xbf16>
    %cst = arith.constant dense<0.000000e+00> : vector<32x32xf32>
    %2 = tpu.matmul %0, %1, %cst {dimension_numbers = #tpu.dot_dimension_numbers<[1], [0], [0], [1], [0, 0, 1, 1], [], []>} : vector<32x32xbf16>, vector<32x32xbf16>, vector<32x32xf32> -> vector<32x32xf32>
    %c0_3 = arith.constant 0 : index
    %c0_4 = arith.constant 0 : index
    %3 = vector.load %arg3[%c0_3, %c0_4] : memref<1x32xf32, #tpu.memory_space<vmem>>, vector<1x32xf32>
    %4 = vector.broadcast %3 : vector<1x32xf32> to vector<32x32xf32>
    %5 = arith.addf %2, %4 : vector<32x32xf32>
    %c0_5 = arith.constant 0 : index
    %c0_6 = arith.constant 0 : index
    %6 = vector.load %arg4[%c0_5, %c0_6] : memref<32x32xf32, #tpu.memory_space<vmem>>, vector<32x32xf32>
    %7 = arith.addf %5, %6 : vector<32x32xf32>
    %c0_7 = arith.constant 0 : index
    %c0_8 = arith.constant 0 : index
    %8 = vector.load %arg5[%c0_7, %c0_8] : memref<32x32xf32, #tpu.memory_space<vmem>>, vector<32x32xf32>
    tpu.vector_store %arg5[%c0_7, %c0_8], %7 {strides = array<i32>} : memref<32x32xf32, #tpu.memory_space<vmem>>, vector<32x32xf32>,
    return
  }
  func.func @transform_0(%arg0: i32) -> (i32, i32) {
    %c0_i32 = arith.constant 0 : i32
    %c0_i32_0 = arith.constant 0 : i32
    return %arg0, %c0_i32 : i32, i32
  }
  func.func @transform_1(%arg0: i32) -> (i32, i32) {
    %c0_i32 = arith.constant 0 : i32
    %c0_i32_0 = arith.constant 0 : i32
    %c0_i32_1 = arith.constant 0 : i32
    return %c0_i32, %c0_i32_0 : i32, i32
  }
  func.func @transform_2(%arg0: i32) -> (i32, i32) {
    %c0_i32 = arith.constant 0 : i32
    %c0_i32_0 = arith.constant 0 : i32
    %c0_i32_1 = arith.constant 0 : i32
    return %c0_i32, %c0_i32_0 : i32, i32
  }
  func.func @transform_3(%arg0: i32) -> (i32, i32) {
    %c0_i32 = arith.constant 0 : i32
    %c0_i32_0 = arith.constant 0 : i32
    return %arg0, %c0_i32 : i32, i32
  }
  func.func @transform_4(%arg0: i32) -> (i32, i32) {
    %c0_i32 = arith.constant 0 : i32
    %c0_i32_0 = arith.constant 0 : i32
    return %arg0, %c0_i32 : i32, i32
  }
}

module attributes {stable_mosaic.version = 11 : i64} {
  func.func @_attention_kernel(%arg0: i32, %arg1: memref<4x8x96xbf16, #tpu.memory_space<vmem>>, %arg2: memref<4x8x32xbf16, #tpu.memory_space<vmem>>) attributes {dimension_semantics = [#tpu.dimension_semantics<parallel>], iteration_bounds = array<i64: 1>, scalar_prefetch = 0 : i64, scratch_operands = 0 : i64, tpu.core_type = #tpu.core_type<tc>, window_params = [{transform_indices = @transform_0, window_bounds = array<i64: 4, 8, 96>}, {transform_indices = @transform_1, window_bounds = array<i64: 4, 8, 32>}]} {
    %c0 = arith.constant 0 : index
    %c0_0 = arith.constant 0 : index
    %c0_1 = arith.constant 0 : index
    %0 = vector.load %arg1[%c0, %c0_0, %c0_1] : memref<4x8x96xbf16, #tpu.memory_space<vmem>>, vector<4x8x96xbf16>
    %1 = vector.extract_strided_slice %0 {offsets = [0, 0, 0], sizes = [4, 8, 8], strides = [1, 1, 1]} : vector<4x8x96xbf16> to vector<4x8x8xbf16>
    %2 = vector.extract_strided_slice %0 {offsets = [0, 0, 32], sizes = [4, 8, 8], strides = [1, 1, 1]} : vector<4x8x96xbf16> to vector<4x8x8xbf16>
    %3 = vector.extract_strided_slice %0 {offsets = [0, 0, 64], sizes = [4, 8, 8], strides = [1, 1, 1]} : vector<4x8x96xbf16> to vector<4x8x8xbf16>
    "tpu.trace_start"() <{level = 10 : i32, message = "bqd,bkd->bqk"}> : () -> ()
    %cst = arith.constant dense<0.000000e+00> : vector<4x8x8xf32>
    %4 = tpu.matmul %1, %2, %cst {dimension_numbers = #tpu.dot_dimension_numbers<[2], [2], [1], [1], [0, 0, 0, 1, 1, 1], [0], [0]>} : vector<4x8x8xbf16>, vector<4x8x8xbf16>, vector<4x8x8xf32> -> vector<4x8x8xf32>
    "tpu.trace_stop"() : () -> ()
    %cst_2 = arith.constant 0.353553385 : f32
    %5 = vector.broadcast %cst_2 : f32 to vector<4x8x8xf32>
    %6 = arith.mulf %4, %5 : vector<4x8x8xf32>
    %cst_3 = arith.constant dense<0xFF800000> : vector<4x8xf32>
    %7 = vector.multi_reduction <maximumf>, %6, %cst_3 [2] : vector<4x8x8xf32> to vector<4x8xf32>
    %8 = vector.shape_cast %7 : vector<4x8xf32> to vector<4x8x1xf32>
    %9 = vector.broadcast %8 : vector<4x8x1xf32> to vector<4x8x8xf32>
    %10 = arith.subf %6, %9 : vector<4x8x8xf32>
    %11 = math.exp %10 : vector<4x8x8xf32>
    %cst_4 = arith.constant dense<0.000000e+00> : vector<4x8xf32>
    %12 = vector.multi_reduction <add>, %11, %cst_4 [2] : vector<4x8x8xf32> to vector<4x8xf32>
    %13 = vector.shape_cast %12 : vector<4x8xf32> to vector<4x8x1xf32>
    %14 = tpu.reciprocal %13 {approx = true} : vector<4x8x1xf32> -> vector<4x8x1xf32>
    %15 = vector.broadcast %14 : vector<4x8x1xf32> to vector<4x8x8xf32>
    %16 = arith.mulf %11, %15 : vector<4x8x8xf32>
    %17 = arith.truncf %16 : vector<4x8x8xf32> to vector<4x8x8xbf16>
    "tpu.trace_start"() <{level = 10 : i32, message = "bqk,bkd->bqd"}> : () -> ()
    %cst_5 = arith.constant dense<0.000000e+00> : vector<4x8x8xf32>
    %18 = tpu.matmul %17, %3, %cst_5 {dimension_numbers = #tpu.dot_dimension_numbers<[2], [1], [1], [2], [0, 0, 0, 1, 1, 2], [0], [0]>} : vector<4x8x8xbf16>, vector<4x8x8xbf16>, vector<4x8x8xf32> -> vector<4x8x8xf32>
    "tpu.trace_stop"() : () -> ()
    %19 = arith.truncf %18 : vector<4x8x8xf32> to vector<4x8x8xbf16>
    %20 = vector.extract_strided_slice %0 {offsets = [0, 0, 8], sizes = [4, 8, 8], strides = [1, 1, 1]} : vector<4x8x96xbf16> to vector<4x8x8xbf16>
    %21 = vector.extract_strided_slice %0 {offsets = [0, 0, 40], sizes = [4, 8, 8], strides = [1, 1, 1]} : vector<4x8x96xbf16> to vector<4x8x8xbf16>
    %22 = vector.extract_strided_slice %0 {offsets = [0, 0, 72], sizes = [4, 8, 8], strides = [1, 1, 1]} : vector<4x8x96xbf16> to vector<4x8x8xbf16>
    "tpu.trace_start"() <{level = 10 : i32, message = "bqd,bkd->bqk"}> : () -> ()
    %cst_6 = arith.constant dense<0.000000e+00> : vector<4x8x8xf32>
    %23 = tpu.matmul %20, %21, %cst_6 {dimension_numbers = #tpu.dot_dimension_numbers<[2], [2], [1], [1], [0, 0, 0, 1, 1, 1], [0], [0]>} : vector<4x8x8xbf16>, vector<4x8x8xbf16>, vector<4x8x8xf32> -> vector<4x8x8xf32>
    "tpu.trace_stop"() : () -> ()
    %cst_7 = arith.constant 0.353553385 : f32
    %24 = vector.broadcast %cst_7 : f32 to vector<4x8x8xf32>
    %25 = arith.mulf %23, %24 : vector<4x8x8xf32>
    %cst_8 = arith.constant dense<0xFF800000> : vector<4x8xf32>
    %26 = vector.multi_reduction <maximumf>, %25, %cst_8 [2] : vector<4x8x8xf32> to vector<4x8xf32>
    %27 = vector.shape_cast %26 : vector<4x8xf32> to vector<4x8x1xf32>
    %28 = vector.broadcast %27 : vector<4x8x1xf32> to vector<4x8x8xf32>
    %29 = arith.subf %25, %28 : vector<4x8x8xf32>
    %30 = math.exp %29 : vector<4x8x8xf32>
    %cst_9 = arith.constant dense<0.000000e+00> : vector<4x8xf32>
    %31 = vector.multi_reduction <add>, %30, %cst_9 [2] : vector<4x8x8xf32> to vector<4x8xf32>
    %32 = vector.shape_cast %31 : vector<4x8xf32> to vector<4x8x1xf32>
    %33 = tpu.reciprocal %32 {approx = true} : vector<4x8x1xf32> -> vector<4x8x1xf32>
    %34 = vector.broadcast %33 : vector<4x8x1xf32> to vector<4x8x8xf32>
    %35 = arith.mulf %30, %34 : vector<4x8x8xf32>
    %36 = arith.truncf %35 : vector<4x8x8xf32> to vector<4x8x8xbf16>
    "tpu.trace_start"() <{level = 10 : i32, message = "bqk,bkd->bqd"}> : () -> ()
    %cst_10 = arith.constant dense<0.000000e+00> : vector<4x8x8xf32>
    %37 = tpu.matmul %36, %22, %cst_10 {dimension_numbers = #tpu.dot_dimension_numbers<[2], [1], [1], [2], [0, 0, 0, 1, 1, 2], [0], [0]>} : vector<4x8x8xbf16>, vector<4x8x8xbf16>, vector<4x8x8xf32> -> vector<4x8x8xf32>
    "tpu.trace_stop"() : () -> ()
    %38 = arith.truncf %37 : vector<4x8x8xf32> to vector<4x8x8xbf16>
    %39 = vector.extract_strided_slice %0 {offsets = [0, 0, 16], sizes = [4, 8, 8], strides = [1, 1, 1]} : vector<4x8x96xbf16> to vector<4x8x8xbf16>
    %40 = vector.extract_strided_slice %0 {offsets = [0, 0, 48], sizes = [4, 8, 8], strides = [1, 1, 1]} : vector<4x8x96xbf16> to vector<4x8x8xbf16>
    %41 = vector.extract_strided_slice %0 {offsets = [0, 0, 80], sizes = [4, 8, 8], strides = [1, 1, 1]} : vector<4x8x96xbf16> to vector<4x8x8xbf16>
    "tpu.trace_start"() <{level = 10 : i32, message = "bqd,bkd->bqk"}> : () -> ()
    %cst_11 = arith.constant dense<0.000000e+00> : vector<4x8x8xf32>
    %42 = tpu.matmul %39, %40, %cst_11 {dimension_numbers = #tpu.dot_dimension_numbers<[2], [2], [1], [1], [0, 0, 0, 1, 1, 1], [0], [0]>} : vector<4x8x8xbf16>, vector<4x8x8xbf16>, vector<4x8x8xf32> -> vector<4x8x8xf32>
    "tpu.trace_stop"() : () -> ()
    %cst_12 = arith.constant 0.353553385 : f32
    %43 = vector.broadcast %cst_12 : f32 to vector<4x8x8xf32>
    %44 = arith.mulf %42, %43 : vector<4x8x8xf32>
    %cst_13 = arith.constant dense<0xFF800000> : vector<4x8xf32>
    %45 = vector.multi_reduction <maximumf>, %44, %cst_13 [2] : vector<4x8x8xf32> to vector<4x8xf32>
    %46 = vector.shape_cast %45 : vector<4x8xf32> to vector<4x8x1xf32>
    %47 = vector.broadcast %46 : vector<4x8x1xf32> to vector<4x8x8xf32>
    %48 = arith.subf %44, %47 : vector<4x8x8xf32>
    %49 = math.exp %48 : vector<4x8x8xf32>
    %cst_14 = arith.constant dense<0.000000e+00> : vector<4x8xf32>
    %50 = vector.multi_reduction <add>, %49, %cst_14 [2] : vector<4x8x8xf32> to vector<4x8xf32>
    %51 = vector.shape_cast %50 : vector<4x8xf32> to vector<4x8x1xf32>
    %52 = tpu.reciprocal %51 {approx = true} : vector<4x8x1xf32> -> vector<4x8x1xf32>
    %53 = vector.broadcast %52 : vector<4x8x1xf32> to vector<4x8x8xf32>
    %54 = arith.mulf %49, %53 : vector<4x8x8xf32>
    %55 = arith.truncf %54 : vector<4x8x8xf32> to vector<4x8x8xbf16>
    "tpu.trace_start"() <{level = 10 : i32, message = "bqk,bkd->bqd"}> : () -> ()
    %cst_15 = arith.constant dense<0.000000e+00> : vector<4x8x8xf32>
    %56 = tpu.matmul %55, %41, %cst_15 {dimension_numbers = #tpu.dot_dimension_numbers<[2], [1], [1], [2], [0, 0, 0, 1, 1, 2], [0], [0]>} : vector<4x8x8xbf16>, vector<4x8x8xbf16>, vector<4x8x8xf32> -> vector<4x8x8xf32>
    "tpu.trace_stop"() : () -> ()
    %57 = arith.truncf %56 : vector<4x8x8xf32> to vector<4x8x8xbf16>
    %58 = vector.extract_strided_slice %0 {offsets = [0, 0, 24], sizes = [4, 8, 8], strides = [1, 1, 1]} : vector<4x8x96xbf16> to vector<4x8x8xbf16>
    %59 = vector.extract_strided_slice %0 {offsets = [0, 0, 56], sizes = [4, 8, 8], strides = [1, 1, 1]} : vector<4x8x96xbf16> to vector<4x8x8xbf16>
    %60 = vector.extract_strided_slice %0 {offsets = [0, 0, 88], sizes = [4, 8, 8], strides = [1, 1, 1]} : vector<4x8x96xbf16> to vector<4x8x8xbf16>
    "tpu.trace_start"() <{level = 10 : i32, message = "bqd,bkd->bqk"}> : () -> ()
    %cst_16 = arith.constant dense<0.000000e+00> : vector<4x8x8xf32>
    %61 = tpu.matmul %58, %59, %cst_16 {dimension_numbers = #tpu.dot_dimension_numbers<[2], [2], [1], [1], [0, 0, 0, 1, 1, 1], [0], [0]>} : vector<4x8x8xbf16>, vector<4x8x8xbf16>, vector<4x8x8xf32> -> vector<4x8x8xf32>
    "tpu.trace_stop"() : () -> ()
    %cst_17 = arith.constant 0.353553385 : f32
    %62 = vector.broadcast %cst_17 : f32 to vector<4x8x8xf32>
    %63 = arith.mulf %61, %62 : vector<4x8x8xf32>
    %cst_18 = arith.constant dense<0xFF800000> : vector<4x8xf32>
    %64 = vector.multi_reduction <maximumf>, %63, %cst_18 [2] : vector<4x8x8xf32> to vector<4x8xf32>
    %65 = vector.shape_cast %64 : vector<4x8xf32> to vector<4x8x1xf32>
    %66 = vector.broadcast %65 : vector<4x8x1xf32> to vector<4x8x8xf32>
    %67 = arith.subf %63, %66 : vector<4x8x8xf32>
    %68 = math.exp %67 : vector<4x8x8xf32>
    %cst_19 = arith.constant dense<0.000000e+00> : vector<4x8xf32>
    %69 = vector.multi_reduction <add>, %68, %cst_19 [2] : vector<4x8x8xf32> to vector<4x8xf32>
    %70 = vector.shape_cast %69 : vector<4x8xf32> to vector<4x8x1xf32>
    %71 = tpu.reciprocal %70 {approx = true} : vector<4x8x1xf32> -> vector<4x8x1xf32>
    %72 = vector.broadcast %71 : vector<4x8x1xf32> to vector<4x8x8xf32>
    %73 = arith.mulf %68, %72 : vector<4x8x8xf32>
    %74 = arith.truncf %73 : vector<4x8x8xf32> to vector<4x8x8xbf16>
    "tpu.trace_start"() <{level = 10 : i32, message = "bqk,bkd->bqd"}> : () -> ()
    %cst_20 = arith.constant dense<0.000000e+00> : vector<4x8x8xf32>
    %75 = tpu.matmul %74, %60, %cst_20 {dimension_numbers = #tpu.dot_dimension_numbers<[2], [1], [1], [2], [0, 0, 0, 1, 1, 2], [0], [0]>} : vector<4x8x8xbf16>, vector<4x8x8xbf16>, vector<4x8x8xf32> -> vector<4x8x8xf32>
    "tpu.trace_stop"() : () -> ()
    %76 = arith.truncf %75 : vector<4x8x8xf32> to vector<4x8x8xbf16>
    %77 = tpu.concatenate %19, %38, %57, %76 in 2 : vector<4x8x8xbf16>, vector<4x8x8xbf16>, vector<4x8x8xbf16>, vector<4x8x8xbf16> -> vector<4x8x32xbf16>
    %c0_21 = arith.constant 0 : index
    %c0_22 = arith.constant 0 : index
    %c0_23 = arith.constant 0 : index
    %78 = vector.load %arg2[%c0_21, %c0_22, %c0_23] : memref<4x8x32xbf16, #tpu.memory_space<vmem>>, vector<4x8x32xbf16>
    tpu.vector_store %arg2[%c0_21, %c0_22, %c0_23], %77 {strides = array<i32>} : memref<4x8x32xbf16, #tpu.memory_space<vmem>>, vector<4x8x32xbf16>,
    return
  }
  func.func @transform_0(%arg0: i32) -> (i32, i32, i32) {
    %c0_i32 = arith.constant 0 : i32
    %c0_i32_0 = arith.constant 0 : i32
    %c0_i32_1 = arith.constant 0 : i32
    return %arg0, %c0_i32, %c0_i32_0 : i32, i32, i32
  }
  func.func @transform_1(%arg0: i32) -> (i32, i32, i32) {
    %c0_i32 = arith.constant 0 : i32
    %c0_i32_0 = arith.constant 0 : i32
    %c0_i32_1 = arith.constant 0 : i32
    return %arg0, %c0_i32, %c0_i32_0 : i32, i32, i32
  }
}

module attributes {stable_mosaic.version = 11 : i64} {
  func.func @_fused_linear_kernel(%arg0: i32, %arg1: memref<32x32xf32, #tpu.memory_space<vmem>>, %arg2: memref<32x128xbf16, #tpu.memory_space<vmem>>, %arg3: memref<1x128xf32, #tpu.memory_space<vmem>>, %arg4: memref<32x128xbf16, #tpu.memory_space<vmem>>) attributes {dimension_semantics = [#tpu.dimension_semantics<parallel>], iteration_bounds = array<i64: 1>, scalar_prefetch = 0 : i64, scratch_operands = 0 : i64, tpu.core_type = #tpu.core_type<tc>, window_params = [{transform_indices = @transform_0, window_bounds = array<i64: 32, 32>}, {pipeline_mode = #tpu.pipeline_mode<synchronous>, transform_indices = @transform_1, window_bounds = array<i64: 32, 128>}, {pipeline_mode = #tpu.pipeline_mode<synchronous>, transform_indices = @transform_2, window_bounds = array<i64: 1, 128>}, {transform_indices = @transform_3, window_bounds = array<i64: 32, 128>}]} {
    %c0 = arith.constant 0 : index
    %c0_0 = arith.constant 0 : index
    %0 = vector.load %arg1[%c0, %c0_0] : memref<32x32xf32, #tpu.memory_space<vmem>>, vector<32x32xf32>
    %cst = arith.constant dense<0.000000e+00> : vector<32xf32>
    %1 = vector.multi_reduction <add>, %0, %cst [1] : vector<32x32xf32> to vector<32xf32>
    %2 = vector.shape_cast %1 : vector<32xf32> to vector<32x1xf32>
    %cst_1 = arith.constant 3.200000e+01 : f32
    %3 = vector.broadcast %cst_1 : f32 to vector<32x1xf32>
    %4 = arith.divf %2, %3 : vector<32x1xf32>
    %5 = vector.broadcast %4 : vector<32x1xf32> to vector<32x32xf32>
    %6 = arith.subf %0, %5 : vector<32x32xf32>
    %7 = arith.mulf %6, %6 : vector<32x32xf32>
    %cst_2 = arith.constant dense<0.000000e+00> : vector<32xf32>
    %8 = vector.multi_reduction <add>, %7, %cst_2 [1] : vector<32x32xf32> to vector<32xf32>
    %9 = vector.shape_cast %8 : vector<32xf32> to vector<32x1xf32>
    %cst_3 = arith.constant 3.200000e+01 : f32
    %10 = vector.broadcast %cst_3 : f32 to vector<32x1xf32>
    %11 = arith.divf %9, %10 : vector<32x1xf32>
    %cst_4 = arith.constant 9.99999997E-7 : f32
    %12 = vector.broadcast %cst_4 : f32 to vector<32x1xf32>
    %13 = arith.addf %11, %12 : vector<32x1xf32>
    %14 = math.rsqrt %13 : vector<32x1xf32>
    %15 = vector.broadcast %14 : vector<32x1xf32> to vector<32x32xf32>
    %16 = arith.mulf %6, %15 : vector<32x32xf32>
    %17 = arith.truncf %16 : vector<32x32xf32> to vector<32x32xbf16>
    %c0_5 = arith.constant 0 : index
    %c0_6 = arith.constant 0 : index
    %18 = vector.load %arg2[%c0_5, %c0_6] : memref<32x128xbf16, #tpu.memory_space<vmem>>, vector<32x128xbf16>
    %cst_7 = arith.constant dense<0.000000e+00> : vector<32x128xf32>
    %19 = tpu.matmul %17, %18, %cst_7 {dimension_numbers = #tpu.dot_dimension_numbers<[1], [0], [0], [1], [0, 0, 1, 1], [], []>} : vector<32x32xbf16>, vector<32x128xbf16>, vector<32x128xf32> -> vector<32x128xf32>
    %c0_8 = arith.constant 0 : index
    %c0_9 = arith.constant 0 : index
    %20 = vector.load %arg3[%c0_8, %c0_9] : memref<1x128xf32, #tpu.memory_space<vmem>>, vector<1x128xf32>
    %21 = vector.broadcast %20 : vector<1x128xf32> to vector<32x128xf32>
    %22 = arith.addf %19, %21 : vector<32x128xf32>
    %cst_10 = arith.constant 5.000000e-01 : f32
    %23 = vector.broadcast %cst_10 : f32 to vector<32x128xf32>
    %24 = arith.mulf %23, %22 : vector<32x128xf32>
    %cst_11 = arith.constant 4.471500e-02 : f32
    %25 = vector.broadcast %cst_11 : f32 to vector<32x128xf32>
    %26 = arith.mulf %25, %22 : vector<32x128xf32>
    %27 = arith.mulf %26, %22 : vector<32x128xf32>
    %28 = arith.mulf %27, %22 : vector<32x128xf32>
    %29 = arith.addf %22, %28 : vector<32x128xf32>
    %cst_12 = arith.constant 0.797884583 : f32
    %30 = vector.broadcast %cst_12 : f32 to vector<32x128xf32>
    %31 = arith.mulf %30, %29 : vector<32x128xf32>
    %32 = math.tanh %31 : vector<32x128xf32>
    %cst_13 = arith.constant 1.000000e+00 : f32
    %33 = vector.broadcast %cst_13 : f32 to vector<32x128xf32>
    %34 = arith.addf %33, %32 : vector<32x128xf32>
    %35 = arith.mulf %24, %34 : vector<32x128xf32>
    %36 = arith.truncf %35 : vector<32x128xf32> to vector<32x128xbf16>
    %c0_14 = arith.constant 0 : index
    %c0_15 = arith.constant 0 : index
    %37 = vector.load %arg4[%c0_14, %c0_15] : memref<32x128xbf16, #tpu.memory_space<vmem>>, vector<32x128xbf16>
    tpu.vector_store %arg4[%c0_14, %c0_15], %36 {strides = array<i32>} : memref<32x128xbf16, #tpu.memory_space<vmem>>, vector<32x128xbf16>,
    return
  }
  func.func @transform_0(%arg0: i32) -> (i32, i32) {
    %c0_i32 = arith.constant 0 : i32
    %c0_i32_0 = arith.constant 0 : i32
    return %arg0, %c0_i32 : i32, i32
  }
  func.func @transform_1(%arg0: i32) -> (i32, i32) {
    %c0_i32 = arith.constant 0 : i32
    %c0_i32_0 = arith.constant 0 : i32
    %c0_i32_1 = arith.constant 0 : i32
    return %c0_i32, %c0_i32_0 : i32, i32
  }
  func.func @transform_2(%arg0: i32) -> (i32, i32) {
    %c0_i32 = arith.constant 0 : i32
    %c0_i32_0 = arith.constant 0 : i32
    %c0_i32_1 = arith.constant 0 : i32
    return %c0_i32, %c0_i32_0 : i32, i32
  }
  func.func @transform_3(%arg0: i32) -> (i32, i32) {
    %c0_i32 = arith.constant 0 : i32
    %c0_i32_0 = arith.constant 0 : i32
    return %arg0, %c0_i32 : i32, i32
  }
}

module attributes {stable_mosaic.version = 11 : i64} {
  func.func @_fused_linear_kernel(%arg0: i32, %arg1: memref<32x128xbf16, #tpu.memory_space<vmem>>, %arg2: memref<128x32xbf16, #tpu.memory_space<vmem>>, %arg3: memref<1x32xf32, #tpu.memory_space<vmem>>, %arg4: memref<32x32xf32, #tpu.memory_space<vmem>>, %arg5: memref<32x32xf32, #tpu.memory_space<vmem>>) attributes {dimension_semantics = [#tpu.dimension_semantics<parallel>], iteration_bounds = array<i64: 1>, scalar_prefetch = 0 : i64, scratch_operands = 0 : i64, tpu.core_type = #tpu.core_type<tc>, window_params = [{transform_indices = @transform_0, window_bounds = array<i64: 32, 128>}, {pipeline_mode = #tpu.pipeline_mode<synchronous>, transform_indices = @transform_1, window_bounds = array<i64: 128, 32>}, {pipeline_mode = #tpu.pipeline_mode<synchronous>, transform_indices = @transform_2, window_bounds = array<i64: 1, 32>}, {transform_indices = @transform_3, window_bounds = array<i64: 32, 32>}, {transform_indices = @transform_4, window_bounds = array<i64: 32, 32>}]} {
    %c0 = arith.constant 0 : index
    %c0_0 = arith.constant 0 : index
    %0 = vector.load %arg1[%c0, %c0_0] : memref<32x128xbf16, #tpu.memory_space<vmem>>, vector<32x128xbf16>
    %c0_1 = arith.constant 0 : index
    %c0_2 = arith.constant 0 : index
    %1 = vector.load %arg2[%c0_1, %c0_2] : memref<128x32xbf16, #tpu.memory_space<vmem>>, vector<128x32xbf16>
    %cst = arith.constant dense<0.000000e+00> : vector<32x32xf32>
    %2 = tpu.matmul %0, %1, %cst {dimension_numbers = #tpu.dot_dimension_numbers<[1], [0], [0], [1], [0, 0, 1, 1], [], []>} : vector<32x128xbf16>, vector<128x32xbf16>, vector<32x32xf32> -> vector<32x32xf32>
    %c0_3 = arith.constant 0 : index
    %c0_4 = arith.constant 0 : index
    %3 = vector.load %arg3[%c0_3, %c0_4] : memref<1x32xf32, #tpu.memory_space<vmem>>, vector<1x32xf32>
    %4 = vector.broadcast %3 : vector<1x32xf32> to vector<32x32xf32>
    %5 = arith.addf %2, %4 : vector<32x32xf32>
    %c0_5 = arith.constant 0 : index
    %c0_6 = arith.constant 0 : index
    %6 = vector.load %arg4[%c0_5, %c0_6] : memref<32x32xf32, #tpu.memory_space<vmem>>, vector<32x32xf32>
    %7 = arith.addf %5, %6 : vector<32x32xf32>
    %c0_7 = arith.constant 0 : index
    %c0_8 = arith.constant 0 : index
    %8 = vector.load %arg5[%c0_7, %c0_8] : memref<32x32xf32, #tpu.memory_space<vmem>>, vector<32x32xf32>
    tpu.vector_store %arg5[%c0_7, %c0_8], %7 {strides = array<i32>} : memref<32x32xf32, #tpu.memory_space<vmem>>, vector<32x32xf32>,
    return
  }
  func.func @transform_0(%arg0: i32) -> (i32, i32) {
    %c0_i32 = arith.constant 0 : i32
    %c0_i32_0 = arith.constant 0 : i32
    return %arg0, %c0_i32 : i32, i32
  }
  func.func @transform_1(%arg0: i32) -> (i32, i32) {
    %c0_i32 = arith.constant 0 : i32
    %c0_i32_0 = arith.constant 0 : i32
    %c0_i32_1 = arith.constant 0 : i32
    return %c0_i32, %c0_i32_0 : i32, i32
  }
  func.func @transform_2(%arg0: i32) -> (i32, i32) {
    %c0_i32 = arith.constant 0 : i32
    %c0_i32_0 = arith.constant 0 : i32
    %c0_i32_1 = arith.constant 0 : i32
    return %c0_i32, %c0_i32_0 : i32, i32
  }
  func.func @transform_3(%arg0: i32) -> (i32, i32) {
    %c0_i32 = arith.constant 0 : i32
    %c0_i32_0 = arith.constant 0 : i32
    return %arg0, %c0_i32 : i32, i32
  }
  func.func @transform_4(%arg0: i32) -> (i32, i32) {
    %c0_i32 = arith.constant 0 : i32
    %c0_i32_0 = arith.constant 0 : i32
    return %arg0, %c0_i32 : i32, i32
  }
}

module attributes {stable_mosaic.version = 11 : i64} {
  func.func @_attention_kernel(%arg0: i32, %arg1: memref<8x4x96xbf16, #tpu.memory_space<vmem>>, %arg2: memref<8x4x32xbf16, #tpu.memory_space<vmem>>) attributes {dimension_semantics = [#tpu.dimension_semantics<parallel>], iteration_bounds = array<i64: 1>, scalar_prefetch = 0 : i64, scratch_operands = 0 : i64, tpu.core_type = #tpu.core_type<tc>, window_params = [{transform_indices = @transform_0, window_bounds = array<i64: 8, 4, 96>}, {transform_indices = @transform_1, window_bounds = array<i64: 8, 4, 32>}]} {
    %c0 = arith.constant 0 : index
    %c0_0 = arith.constant 0 : index
    %c0_1 = arith.constant 0 : index
    %0 = vector.load %arg1[%c0, %c0_0, %c0_1] : memref<8x4x96xbf16, #tpu.memory_space<vmem>>, vector<8x4x96xbf16>
    %1 = vector.extract_strided_slice %0 {offsets = [0, 0, 0], sizes = [8, 4, 8], strides = [1, 1, 1]} : vector<8x4x96xbf16> to vector<8x4x8xbf16>
    %2 = vector.extract_strided_slice %0 {offsets = [0, 0, 32], sizes = [8, 4, 8], strides = [1, 1, 1]} : vector<8x4x96xbf16> to vector<8x4x8xbf16>
    %3 = vector.extract_strided_slice %0 {offsets = [0, 0, 64], sizes = [8, 4, 8], strides = [1, 1, 1]} : vector<8x4x96xbf16> to vector<8x4x8xbf16>
    "tpu.trace_start"() <{level = 10 : i32, message = "bqd,bkd->bqk"}> : () -> ()
    %cst = arith.constant dense<0.000000e+00> : vector<8x4x4xf32>
    %4 = tpu.matmul %1, %2, %cst {dimension_numbers = #tpu.dot_dimension_numbers<[2], [2], [1], [1], [0, 0, 0, 1, 1, 1], [0], [0]>} : vector<8x4x8xbf16>, vector<8x4x8xbf16>, vector<8x4x4xf32> -> vector<8x4x4xf32>
    "tpu.trace_stop"() : () -> ()
    %cst_2 = arith.constant 0.353553385 : f32
    %5 = vector.broadcast %cst_2 : f32 to vector<8x4x4xf32>
    %6 = arith.mulf %4, %5 : vector<8x4x4xf32>
    %cst_3 = arith.constant dense<0xFF800000> : vector<8x4xf32>
    %7 = vector.multi_reduction <maximumf>, %6, %cst_3 [2] : vector<8x4x4xf32> to vector<8x4xf32>
    %8 = vector.shape_cast %7 : vector<8x4xf32> to vector<8x4x1xf32>
    %9 = vector.broadcast %8 : vector<8x4x1xf32> to vector<8x4x4xf32>
    %10 = arith.subf %6, %9 : vector<8x4x4xf32>
    %11 = math.exp %10 : vector<8x4x4xf32>
    %cst_4 = arith.constant dense<0.000000e+00> : vector<8x4xf32>
    %12 = vector.multi_reduction <add>, %11, %cst_4 [2] : vector<8x4x4xf32> to vector<8x4xf32>
    %13 = vector.shape_cast %12 : vector<8x4xf32> to vector<8x4x1xf32>
    %14 = tpu.reciprocal %13 {approx = true} : vector<8x4x1xf32> -> vector<8x4x1xf32>
    %15 = vector.broadcast %14 : vector<8x4x1xf32> to vector<8x4x4xf32>
    %16 = arith.mulf %11, %15 : vector<8x4x4xf32>
    %17 = arith.truncf %16 : vector<8x4x4xf32> to vector<8x4x4xbf16>
    "tpu.trace_start"() <{level = 10 : i32, message = "bqk,bkd->bqd"}> : () -> ()
    %cst_5 = arith.constant dense<0.000000e+00> : vector<8x4x8xf32>
    %18 = tpu.matmul %17, %3, %cst_5 {dimension_numbers = #tpu.dot_dimension_numbers<[2], [1], [1], [2], [0, 0, 0, 1, 1, 2], [0], [0]>} : vector<8x4x4xbf16>, vector<8x4x8xbf16>, vector<8x4x8xf32> -> vector<8x4x8xf32>
    "tpu.trace_stop"() : () -> ()
    %19 = arith.truncf %18 : vector<8x4x8xf32> to vector<8x4x8xbf16>
    %20 = vector.extract_strided_slice %0 {offsets = [0, 0, 8], sizes = [8, 4, 8], strides = [1, 1, 1]} : vector<8x4x96xbf16> to vector<8x4x8xbf16>
    %21 = vector.extract_strided_slice %0 {offsets = [0, 0, 40], sizes = [8, 4, 8], strides = [1, 1, 1]} : vector<8x4x96xbf16> to vector<8x4x8xbf16>
    %22 = vector.extract_strided_slice %0 {offsets = [0, 0, 72], sizes = [8, 4, 8], strides = [1, 1, 1]} : vector<8x4x96xbf16> to vector<8x4x8xbf16>
    "tpu.trace_start"() <{level = 10 : i32, message = "bqd,bkd->bqk"}> : () -> ()
    %cst_6 = arith.constant dense<0.000000e+00> : vector<8x4x4xf32>
    %23 = tpu.matmul %20, %21, %cst_6 {dimension_numbers = #tpu.dot_dimension_numbers<[2], [2], [1], [1], [0, 0, 0, 1, 1, 1], [0], [0]>} : vector<8x4x8xbf16>, vector<8x4x8xbf16>, vector<8x4x4xf32> -> vector<8x4x4xf32>
    "tpu.trace_stop"() : () -> ()
    %cst_7 = arith.constant 0.353553385 : f32
    %24 = vector.broadcast %cst_7 : f32 to vector<8x4x4xf32>
    %25 = arith.mulf %23, %24 : vector<8x4x4xf32>
    %cst_8 = arith.constant dense<0xFF800000> : vector<8x4xf32>
    %26 = vector.multi_reduction <maximumf>, %25, %cst_8 [2] : vector<8x4x4xf32> to vector<8x4xf32>
    %27 = vector.shape_cast %26 : vector<8x4xf32> to vector<8x4x1xf32>
    %28 = vector.broadcast %27 : vector<8x4x1xf32> to vector<8x4x4xf32>
    %29 = arith.subf %25, %28 : vector<8x4x4xf32>
    %30 = math.exp %29 : vector<8x4x4xf32>
    %cst_9 = arith.constant dense<0.000000e+00> : vector<8x4xf32>
    %31 = vector.multi_reduction <add>, %30, %cst_9 [2] : vector<8x4x4xf32> to vector<8x4xf32>
    %32 = vector.shape_cast %31 : vector<8x4xf32> to vector<8x4x1xf32>
    %33 = tpu.reciprocal %32 {approx = true} : vector<8x4x1xf32> -> vector<8x4x1xf32>
    %34 = vector.broadcast %33 : vector<8x4x1xf32> to vector<8x4x4xf32>
    %35 = arith.mulf %30, %34 : vector<8x4x4xf32>
    %36 = arith.truncf %35 : vector<8x4x4xf32> to vector<8x4x4xbf16>
    "tpu.trace_start"() <{level = 10 : i32, message = "bqk,bkd->bqd"}> : () -> ()
    %cst_10 = arith.constant dense<0.000000e+00> : vector<8x4x8xf32>
    %37 = tpu.matmul %36, %22, %cst_10 {dimension_numbers = #tpu.dot_dimension_numbers<[2], [1], [1], [2], [0, 0, 0, 1, 1, 2], [0], [0]>} : vector<8x4x4xbf16>, vector<8x4x8xbf16>, vector<8x4x8xf32> -> vector<8x4x8xf32>
    "tpu.trace_stop"() : () -> ()
    %38 = arith.truncf %37 : vector<8x4x8xf32> to vector<8x4x8xbf16>
    %39 = vector.extract_strided_slice %0 {offsets = [0, 0, 16], sizes = [8, 4, 8], strides = [1, 1, 1]} : vector<8x4x96xbf16> to vector<8x4x8xbf16>
    %40 = vector.extract_strided_slice %0 {offsets = [0, 0, 48], sizes = [8, 4, 8], strides = [1, 1, 1]} : vector<8x4x96xbf16> to vector<8x4x8xbf16>
    %41 = vector.extract_strided_slice %0 {offsets = [0, 0, 80], sizes = [8, 4, 8], strides = [1, 1, 1]} : vector<8x4x96xbf16> to vector<8x4x8xbf16>
    "tpu.trace_start"() <{level = 10 : i32, message = "bqd,bkd->bqk"}> : () -> ()
    %cst_11 = arith.constant dense<0.000000e+00> : vector<8x4x4xf32>
    %42 = tpu.matmul %39, %40, %cst_11 {dimension_numbers = #tpu.dot_dimension_numbers<[2], [2], [1], [1], [0, 0, 0, 1, 1, 1], [0], [0]>} : vector<8x4x8xbf16>, vector<8x4x8xbf16>, vector<8x4x4xf32> -> vector<8x4x4xf32>
    "tpu.trace_stop"() : () -> ()
    %cst_12 = arith.constant 0.353553385 : f32
    %43 = vector.broadcast %cst_12 : f32 to vector<8x4x4xf32>
    %44 = arith.mulf %42, %43 : vector<8x4x4xf32>
    %cst_13 = arith.constant dense<0xFF800000> : vector<8x4xf32>
    %45 = vector.multi_reduction <maximumf>, %44, %cst_13 [2] : vector<8x4x4xf32> to vector<8x4xf32>
    %46 = vector.shape_cast %45 : vector<8x4xf32> to vector<8x4x1xf32>
    %47 = vector.broadcast %46 : vector<8x4x1xf32> to vector<8x4x4xf32>
    %48 = arith.subf %44, %47 : vector<8x4x4xf32>
    %49 = math.exp %48 : vector<8x4x4xf32>
    %cst_14 = arith.constant dense<0.000000e+00> : vector<8x4xf32>
    %50 = vector.multi_reduction <add>, %49, %cst_14 [2] : vector<8x4x4xf32> to vector<8x4xf32>
    %51 = vector.shape_cast %50 : vector<8x4xf32> to vector<8x4x1xf32>
    %52 = tpu.reciprocal %51 {approx = true} : vector<8x4x1xf32> -> vector<8x4x1xf32>
    %53 = vector.broadcast %52 : vector<8x4x1xf32> to vector<8x4x4xf32>
    %54 = arith.mulf %49, %53 : vector<8x4x4xf32>
    %55 = arith.truncf %54 : vector<8x4x4xf32> to vector<8x4x4xbf16>
    "tpu.trace_start"() <{level = 10 : i32, message = "bqk,bkd->bqd"}> : () -> ()
    %cst_15 = arith.constant dense<0.000000e+00> : vector<8x4x8xf32>
    %56 = tpu.matmul %55, %41, %cst_15 {dimension_numbers = #tpu.dot_dimension_numbers<[2], [1], [1], [2], [0, 0, 0, 1, 1, 2], [0], [0]>} : vector<8x4x4xbf16>, vector<8x4x8xbf16>, vector<8x4x8xf32> -> vector<8x4x8xf32>
    "tpu.trace_stop"() : () -> ()
    %57 = arith.truncf %56 : vector<8x4x8xf32> to vector<8x4x8xbf16>
    %58 = vector.extract_strided_slice %0 {offsets = [0, 0, 24], sizes = [8, 4, 8], strides = [1, 1, 1]} : vector<8x4x96xbf16> to vector<8x4x8xbf16>
    %59 = vector.extract_strided_slice %0 {offsets = [0, 0, 56], sizes = [8, 4, 8], strides = [1, 1, 1]} : vector<8x4x96xbf16> to vector<8x4x8xbf16>
    %60 = vector.extract_strided_slice %0 {offsets = [0, 0, 88], sizes = [8, 4, 8], strides = [1, 1, 1]} : vector<8x4x96xbf16> to vector<8x4x8xbf16>
    "tpu.trace_start"() <{level = 10 : i32, message = "bqd,bkd->bqk"}> : () -> ()
    %cst_16 = arith.constant dense<0.000000e+00> : vector<8x4x4xf32>
    %61 = tpu.matmul %58, %59, %cst_16 {dimension_numbers = #tpu.dot_dimension_numbers<[2], [2], [1], [1], [0, 0, 0, 1, 1, 1], [0], [0]>} : vector<8x4x8xbf16>, vector<8x4x8xbf16>, vector<8x4x4xf32> -> vector<8x4x4xf32>
    "tpu.trace_stop"() : () -> ()
    %cst_17 = arith.constant 0.353553385 : f32
    %62 = vector.broadcast %cst_17 : f32 to vector<8x4x4xf32>
    %63 = arith.mulf %61, %62 : vector<8x4x4xf32>
    %cst_18 = arith.constant dense<0xFF800000> : vector<8x4xf32>
    %64 = vector.multi_reduction <maximumf>, %63, %cst_18 [2] : vector<8x4x4xf32> to vector<8x4xf32>
    %65 = vector.shape_cast %64 : vector<8x4xf32> to vector<8x4x1xf32>
    %66 = vector.broadcast %65 : vector<8x4x1xf32> to vector<8x4x4xf32>
    %67 = arith.subf %63, %66 : vector<8x4x4xf32>
    %68 = math.exp %67 : vector<8x4x4xf32>
    %cst_19 = arith.constant dense<0.000000e+00> : vector<8x4xf32>
    %69 = vector.multi_reduction <add>, %68, %cst_19 [2] : vector<8x4x4xf32> to vector<8x4xf32>
    %70 = vector.shape_cast %69 : vector<8x4xf32> to vector<8x4x1xf32>
    %71 = tpu.reciprocal %70 {approx = true} : vector<8x4x1xf32> -> vector<8x4x1xf32>
    %72 = vector.broadcast %71 : vector<8x4x1xf32> to vector<8x4x4xf32>
    %73 = arith.mulf %68, %72 : vector<8x4x4xf32>
    %74 = arith.truncf %73 : vector<8x4x4xf32> to vector<8x4x4xbf16>
    "tpu.trace_start"() <{level = 10 : i32, message = "bqk,bkd->bqd"}> : () -> ()
    %cst_20 = arith.constant dense<0.000000e+00> : vector<8x4x8xf32>
    %75 = tpu.matmul %74, %60, %cst_20 {dimension_numbers = #tpu.dot_dimension_numbers<[2], [1], [1], [2], [0, 0, 0, 1, 1, 2], [0], [0]>} : vector<8x4x4xbf16>, vector<8x4x8xbf16>, vector<8x4x8xf32> -> vector<8x4x8xf32>
    "tpu.trace_stop"() : () -> ()
    %76 = arith.truncf %75 : vector<8x4x8xf32> to vector<8x4x8xbf16>
    %77 = tpu.concatenate %19, %38, %57, %76 in 2 : vector<8x4x8xbf16>, vector<8x4x8xbf16>, vector<8x4x8xbf16>, vector<8x4x8xbf16> -> vector<8x4x32xbf16>
    %c0_21 = arith.constant 0 : index
    %c0_22 = arith.constant 0 : index
    %c0_23 = arith.constant 0 : index
    %78 = vector.load %arg2[%c0_21, %c0_22, %c0_23] : memref<8x4x32xbf16, #tpu.memory_space<vmem>>, vector<8x4x32xbf16>
    tpu.vector_store %arg2[%c0_21, %c0_22, %c0_23], %77 {strides = array<i32>} : memref<8x4x32xbf16, #tpu.memory_space<vmem>>, vector<8x4x32xbf16>,
    return
  }
  func.func @transform_0(%arg0: i32) -> (i32, i32, i32) {
    %c0_i32 = arith.constant 0 : i32
    %c0_i32_0 = arith.constant 0 : i32
    %c0_i32_1 = arith.constant 0 : i32
    return %arg0, %c0_i32, %c0_i32_0 : i32, i32, i32
  }
  func.func @transform_1(%arg0: i32) -> (i32, i32, i32) {
    %c0_i32 = arith.constant 0 : i32
    %c0_i32_0 = arith.constant 0 : i32
    %c0_i32_1 = arith.constant 0 : i32
    return %arg0, %c0_i32, %c0_i32_0 : i32, i32, i32
  }
}

module attributes {stable_mosaic.version = 11 : i64} {
  func.func @_fused_linear_kernel(%arg0: i32, %arg1: memref<32x32xf32, #tpu.memory_space<vmem>>, %arg2: memref<32x16xbf16, #tpu.memory_space<vmem>>, %arg3: memref<1x16xf32, #tpu.memory_space<vmem>>, %arg4: memref<32x16xf32, #tpu.memory_space<vmem>>) attributes {dimension_semantics = [#tpu.dimension_semantics<parallel>], iteration_bounds = array<i64: 1>, scalar_prefetch = 0 : i64, scratch_operands = 0 : i64, tpu.core_type = #tpu.core_type<tc>, window_params = [{transform_indices = @transform_0, window_bounds = array<i64: 32, 32>}, {pipeline_mode = #tpu.pipeline_mode<synchronous>, transform_indices = @transform_1, window_bounds = array<i64: 32, 16>}, {pipeline_mode = #tpu.pipeline_mode<synchronous>, transform_indices = @transform_2, window_bounds = array<i64: 1, 16>}, {transform_indices = @transform_3, window_bounds = array<i64: 32, 16>}]} {
    %c0 = arith.constant 0 : index
    %c0_0 = arith.constant 0 : index
    %0 = vector.load %arg1[%c0, %c0_0] : memref<32x32xf32, #tpu.memory_space<vmem>>, vector<32x32xf32>
    %1 = arith.truncf %0 : vector<32x32xf32> to vector<32x32xbf16>
    %c0_1 = arith.constant 0 : index
    %c0_2 = arith.constant 0 : index
    %2 = vector.load %arg2[%c0_1, %c0_2] : memref<32x16xbf16, #tpu.memory_space<vmem>>, vector<32x16xbf16>
    %cst = arith.constant dense<0.000000e+00> : vector<32x16xf32>
    %3 = tpu.matmul %1, %2, %cst {dimension_numbers = #tpu.dot_dimension_numbers<[1], [0], [0], [1], [0, 0, 1, 1], [], []>} : vector<32x32xbf16>, vector<32x16xbf16>, vector<32x16xf32> -> vector<32x16xf32>
    %c0_3 = arith.constant 0 : index
    %c0_4 = arith.constant 0 : index
    %4 = vector.load %arg3[%c0_3, %c0_4] : memref<1x16xf32, #tpu.memory_space<vmem>>, vector<1x16xf32>
    %5 = vector.broadcast %4 : vector<1x16xf32> to vector<32x16xf32>
    %6 = arith.addf %3, %5 : vector<32x16xf32>
    %c0_5 = arith.constant 0 : index
    %c0_6 = arith.constant 0 : index
    %7 = vector.load %arg4[%c0_5, %c0_6] : memref<32x16xf32, #tpu.memory_space<vmem>>, vector<32x16xf32>
    tpu.vector_store %arg4[%c0_5, %c0_6], %6 {strides = array<i32>} : memref<32x16xf32, #tpu.memory_space<vmem>>, vector<32x16xf32>,
    return
  }
  func.func @transform_0(%arg0: i32) -> (i32, i32) {
    %c0_i32 = arith.constant 0 : i32
    %c0_i32_0 = arith.constant 0 : i32
    return %arg0, %c0_i32 : i32, i32
  }
  func.func @transform_1(%arg0: i32) -> (i32, i32) {
    %c0_i32 = arith.constant 0 : i32
    %c0_i32_0 = arith.constant 0 : i32
    %c0_i32_1 = arith.constant 0 : i32
    return %c0_i32, %c0_i32_0 : i32, i32
  }
  func.func @transform_2(%arg0: i32) -> (i32, i32) {
    %c0_i32 = arith.constant 0 : i32
    %c0_i32_0 = arith.constant 0 : i32
    %c0_i32_1 = arith.constant 0 : i32
    return %c0_i32, %c0_i32_0 : i32, i32
  }
  func.func @transform_3(%arg0: i32) -> (i32, i32) {
    %c0_i32 = arith.constant 0 : i32
    %c0_i32_0 = arith.constant 0 : i32
    return %arg0, %c0_i32 : i32, i32
  }
}

</mosaic_0001>

<bundles_post_ra>
// kernel: _lambda_.24
= control target key start
LH: loop header
LB: loop body
LE: loop exit
PB: predicated region body
PF: predicated region fallthrough
CT: control target
= control target key end

     0   :  { %vm42_vm0 = vcmask 1045504   ;;  %vm35_vm1 = vcmask 97280   ;;  %vm99_vm2 = vcmask 130048   ;;  %s173_s1 = inlined_call_operand.vmem [shape: bf16[12,16], index: 1, kind: input, shape index: {}]   ;;  %s174_s0 = inlined_call_operand.vmem [shape: f32[32,12], index: 0, kind: input, shape index: {}]   ;;  %s175_s2 = inlined_call_operand.vmem [shape: f32[1,16], index: 2, kind: input, shape index: {}]   ;;  %s176_s3 = inlined_call_operand.vmem [shape: f32[32,16], index: 3, kind: output, shape index: {}]  }
   0x1   :  { %v122_v0 = vld [vmem:[%s173_s1] sm:$0x3f]   ;;  %v16_v2 = vld [vmem:[%s174_s0 + $0x8] sm:$0xff]  ;;  %v17_v3 = vld [vmem:[%s174_s0 + $0x10] sm:$0xff] }
   0x2   :  { %v15_v1 = vld [vmem:[%s174_s0] sm:$0xff]  ;;  %121 = vmatprep.subr.msk.bf16.mxu0 %vm42_vm0, %v122_v0  ;;  %v44_v4 = vsel %vm42_vm0, %v122_v0, 0  ;;  %v18_v6 = vld [vmem:[%s174_s0 + $0x18] sm:$0xff] }
   0x3   :  { %v19_v5 = vpack.c.bf16 %v16_v2, %v15_v1  ;;  %116 = vmatpush3.bf16.msra.mxu0 %v44_v4  ;;  %v20_v7 = vpack.c.bf16 %v18_v6, %v17_v3  ;;  %v108_v8 = vld [vmem:[%s175_s2] ss:$0 sm:$0xff] }
   0x5   :  { %117 = vmatprep.mubr.msk.bf16.mxu0 %vm35_vm1, %v19_v5 }
   0x6   :  { %118 = vmatmul.mubr.msk.bf16.vlgmr.msra.gmra.mrb[0].mxu0 %vm35_vm1, %v20_v7 }
  0xd9   :  { %v119_v9 = vpop.f32.mrb[0].mxu0 }
  0xda   :  { %v89_v10 = vadd.f32 %v119_v9, %v108_v8  ;;  %v80_v11 = vpop.f32.mrb[1].mxu0 }
  0xdb   :  { %v81_v12 = vadd.f32 %v108_v8, %v80_v11  ;;  %v120_v13 = vpop.f32.mrb[2].mxu0 }
  0xdc   :  { %v97_v14 = vmax.f32 %v89_v10, 0.0  ;;  %v92_v15 = vadd.f32 %v120_v13, %v108_v8  ;;  %v83_v16 = vpop.f32.mrb[3].mxu0 }
  0xdd   :  { %v95_v17 = vmax.f32 %v81_v12, 0.0  ;;  %v84_v18 = vadd.f32 %v108_v8, %v83_v16 }
  0xde   :  { %102 = vst.msk [vmem:[%s176_s3 + $0x10] sm:$0xff] %vm99_vm2, %v97_v14  ;;  %v98_v19 = vmax.f32 %v92_v15, 0.0 }
  0xdf   :  { %100 = vst.msk [vmem:[%s176_s3] sm:$0xff] %vm99_vm2, %v95_v17  ;;  %v96_v20 = vmax.f32 %v84_v18, 0.0 }
  0xe0   :  { %103 = vst.msk [vmem:[%s176_s3 + $0x18] sm:$0xff] %vm99_vm2, %v98_v19 }
  0xe1   :  { %101 = vst.msk [vmem:[%s176_s3 + $0x8] sm:$0xff] %vm99_vm2, %v96_v20 }

// kernel: _lambda_.25
= control target key start
LH: loop header
LB: loop body
LE: loop exit
PB: predicated region body
PF: predicated region fallthrough
CT: control target
= control target key end

     0   :  { %vm36_vm0 = vcmask 130048   ;;  %s174_s1 = inlined_call_operand.vmem [shape: bf16[16,16], index: 1, kind: input, shape index: {}]   ;;  %s175_s0 = inlined_call_operand.vmem [shape: f32[32,16], index: 0, kind: input, shape index: {}]   ;;  %s176_s2 = inlined_call_operand.vmem [shape: f32[1,16], index: 2, kind: input, shape index: {}]   ;;  %s177_s3 = inlined_call_operand.vmem [shape: f32[32,16], index: 3, kind: output, shape index: {}]  }
   0x1   :  { %v117_v0 = vld [vmem:[%s174_s1] sm:$0xff]   ;;  %v16_v2 = vld [vmem:[%s175_s0 + $0x8] sm:$0xff]  ;;  %v17_v3 = vld [vmem:[%s175_s0 + $0x10] sm:$0xff] }
   0x2   :  { %v15_v1 = vld [vmem:[%s175_s0] sm:$0xff]  ;;  %111 = vmatprep.subr.bf16.mxu0 %v117_v0  ;;  %v18_v5 = vld [vmem:[%s175_s0 + $0x18] sm:$0xff] }
   0x3   :  { %v19_v4 = vpack.c.bf16 %v16_v2, %v15_v1  ;;  %112 = vmatpush3.bf16.msra.mxu0 %v117_v0  ;;  %v20_v6 = vpack.c.bf16 %v18_v5, %v17_v3  ;;  %v104_v7 = vld [vmem:[%s176_s2] ss:$0 sm:$0xff] }
   0x5   :  { %113 = vmatprep.mubr.msk.bf16.mxu0 %vm36_vm0, %v19_v4 }
   0x6   :  { %114 = vmatmul.mubr.msk.bf16.vlgmr.msra.gmra.mrb[0].mxu0 %vm36_vm0, %v20_v6 }
  0xd9   :  { %v115_v8 = vpop.f32.mrb[0].mxu0 }
  0xda   :  { %v86_v9 = vadd.f32 %v115_v8, %v104_v7  ;;  %v77_v10 = vpop.f32.mrb[1].mxu0 }
  0xdb   :  { %v78_v11 = vadd.f32 %v104_v7, %v77_v10  ;;  %v116_v12 = vpop.f32.mrb[2].mxu0 }
  0xdc   :  { %v94_v13 = vmax.f32 %v86_v9, 0.0  ;;  %v89_v14 = vadd.f32 %v116_v12, %v104_v7  ;;  %v80_v15 = vpop.f32.mrb[3].mxu0 }
  0xdd   :  { %v92_v16 = vmax.f32 %v78_v11, 0.0  ;;  %v81_v17 = vadd.f32 %v104_v7, %v80_v15 }
  0xde   :  { %98 = vst.msk [vmem:[%s177_s3 + $0x10] sm:$0xff] %vm36_vm0, %v94_v13  ;;  %v95_v18 = vmax.f32 %v89_v14, 0.0 }
  0xdf   :  { %96 = vst.msk [vmem:[%s177_s3] sm:$0xff] %vm36_vm0, %v92_v16  ;;  %v93_v19 = vmax.f32 %v81_v17, 0.0 }
  0xe0   :  { %99 = vst.msk [vmem:[%s177_s3 + $0x18] sm:$0xff] %vm36_vm0, %v95_v18 }
  0xe1   :  { %97 = vst.msk [vmem:[%s177_s3 + $0x8] sm:$0xff] %vm36_vm0, %v93_v19 }

// kernel: _lambda_.26
= control target key start
LH: loop header
LB: loop body
LE: loop exit
PB: predicated region body
PF: predicated region fallthrough
CT: control target
= control target key end

     0   :  { %vm36_vm0 = vcmask 130048   ;;  %vm92_vm1 = vcmask 261120   ;;  %s165_s1 = inlined_call_operand.vmem [shape: bf16[16,32], index: 1, kind: input, shape index: {}]   ;;  %s166_s0 = inlined_call_operand.vmem [shape: f32[32,16], index: 0, kind: input, shape index: {}]   ;;  %s167_s2 = inlined_call_operand.vmem [shape: f32[1,32], index: 2, kind: input, shape index: {}]   ;;  %s168_s3 = inlined_call_operand.vmem [shape: f32[32,32], index: 3, kind: output, shape index: {}]  }
   0x1   :  { %v114_v0 = vld [vmem:[%s165_s1] sm:$0xff]   ;;  %v16_v2 = vld [vmem:[%s166_s0 + $0x8] sm:$0xff]  ;;  %v17_v3 = vld [vmem:[%s166_s0 + $0x10] sm:$0xff] }
   0x2   :  { %v15_v1 = vld [vmem:[%s166_s0] sm:$0xff]  ;;  %108 = vmatprep.subr.bf16.mxu0 %v114_v0  ;;  %v18_v5 = vld [vmem:[%s166_s0 + $0x18] sm:$0xff] }
   0x3   :  { %v19_v4 = vpack.c.bf16 %v16_v2, %v15_v1  ;;  %109 = vmatpush3.bf16.msra.mxu0 %v114_v0  ;;  %v20_v6 = vpack.c.bf16 %v18_v5, %v17_v3  ;;  %v101_v7 = vld [vmem:[%s167_s2] ss:$0 sm:$0xff] }
   0x5   :  { %110 = vmatprep.mubr.msk.bf16.mxu0 %vm36_vm0, %v19_v4 }
   0x6   :  { %111 = vmatmul.mubr.msk.bf16.vlgmr.msra.gmra.mrb[0].mxu0 %vm36_vm0, %v20_v6 }
  0xd9   :  { %v112_v8 = vpop.f32.mrb[0].mxu0 }
  0xda   :  { %v86_v9 = vadd.f32 %v112_v8, %v101_v7  ;;  %v77_v10 = vpop.f32.mrb[1].mxu0 }
  0xdb   :  { %v78_v11 = vadd.f32 %v101_v7, %v77_v10  ;;  %v113_v12 = vpop.f32.mrb[2].mxu0 }
  0xdc   :  { %95 = vst.msk [vmem:[%s168_s3 + $0x10] sm:$0xff] %vm92_vm1, %v86_v9  ;;  %v89_v13 = vadd.f32 %v113_v12, %v101_v7  ;;  %v80_v14 = vpop.f32.mrb[3].mxu0 }
  0xdd   :  { %93 = vst.msk [vmem:[%s168_s3] sm:$0xff] %vm92_vm1, %v78_v11  ;;  %v81_v15 = vadd.f32 %v101_v7, %v80_v14 }
  0xde   :  { %96 = vst.msk [vmem:[%s168_s3 + $0x18] sm:$0xff] %vm92_vm1, %v89_v13 }
  0xdf   :  { %94 = vst.msk [vmem:[%s168_s3 + $0x8] sm:$0xff] %vm92_vm1, %v81_v15 }

// kernel: _lambda_.27
= control target key start
LH: loop header
LB: loop body
LE: loop exit
PB: predicated region body
PF: predicated region fallthrough
CT: control target
= control target key end

     0   :  { %vm19_vm0 = vcmask 261120   ;;  %vm169_vm1 = vcmask 781312   ;;  %s276_s0 = inlined_call_operand.vmem [shape: f32[32,32], index: 0, kind: input, shape index: {}]   ;;  %s277_s1 = inlined_call_operand.vmem [shape: bf16[32,96], index: 1, kind: input, shape index: {}]   ;;  %s278_s2 = inlined_call_operand.vmem [shape: f32[1,96], index: 2, kind: input, shape index: {}]   ;;  %s279_s3 = inlined_call_operand.vmem [shape: bf16[32,96], index: 3, kind: output, shape index: {}]  }
   0x1   :  { %v15_v0 = vld [vmem:[%s276_s0] sm:$0xff]  ;;  %v17_v1 = vld [vmem:[%s276_s0 + $0x10] sm:$0xff]  ;;  %v16_v2 = vld [vmem:[%s276_s0 + $0x8] sm:$0xff] }
   0x2   :  { %v20_v3 = vsel %vm19_vm0, %v15_v0, 0.0  ;;  %v26_v4 = vsel %vm19_vm0, %v17_v1, 0.0  ;;  %v18_v5 = vld [vmem:[%s276_s0 + $0x18] sm:$0xff]  ;;  %v23_v6 = vsel %vm19_vm0, %v16_v2, 0.0  ;;  %v203_v28 = vld [vmem:[%s277_s1] sm:$0xff]   ;;  %v204_v29 = vld [vmem:[%s277_s1 + $0x8] sm:$0xff]  }
   0x3   :  { %21 = vadd.xlane.f32.xlu0 %v20_v3  ;;  %27 = vadd.xlane.f32.xlu1 %v26_v4  ;;  %v29_v7 = vsel %vm19_vm0, %v18_v5, 0.0  ;;  %v178_v52 = vld [vmem:[%s278_s2] ss:$0 sm:$0xff] }
   0x4   :  { %195 = vmatprep.subr.bf16.mxu0 %v203_v28 }
   0x5   :  { %196 = vmatpush3.bf16.msra.mxu0 %v203_v28 }
   0x6   :  { %197 = vmatprep.subr.bf16.mxu0 %v204_v29 }
   0x7   :  { %24 = vadd.xlane.f32.xlu0 %v23_v6  ;;  %30 = vadd.xlane.f32.xlu1 %v29_v7 }
   0x9   :  { %198 = vmatpush3.bf16.msra.mxu0 %v204_v29 }
  0x90   :  { %v22_v8 = vpop.xlane.xlu0 %21  ;;  %v28_v9 = vpop.xlane.xlu1 %27 }
  0x91   :  { %v33_v10 = vmul.f32 0.03125, %v22_v8  ;;  %v35_v11 = vmul.f32 0.03125, %v28_v9 }
  0x93   :  { %v37_v12 = vsub.f32 %v15_v0, %v33_v10  ;;  %v39_v13 = vsub.f32 %v17_v1, %v35_v11 }
  0x94   :  { %v25_v14 = vpop.xlane.xlu0 %24  ;;  %v31_v15 = vpop.xlane.xlu1 %30 }
  0x95   :  { %v34_v16 = vmul.f32 0.03125, %v25_v14  ;;  %v36_v17 = vmul.f32 0.03125, %v31_v15  ;;  %v41_v18 = vmul.f32 %v37_v12, %v37_v12  ;;  %v43_v19 = vmul.f32 %v39_v13, %v39_v13 }
  0x97   :  { %v38_v20 = vsub.f32 %v16_v2, %v34_v16  ;;  %v40_v21 = vsub.f32 %v18_v5, %v36_v17  ;;  %v45_v22 = vsel %vm19_vm0, %v41_v18, 0.0  ;;  %v51_v23 = vsel %vm19_vm0, %v43_v19, 0.0 }
  0x98   :  { %46 = vadd.xlane.f32.xlu0 %v45_v22 }
  0x99   :  { %v42_v24 = vmul.f32 %v38_v20, %v38_v20  ;;  %v44_v25 = vmul.f32 %v40_v21, %v40_v21 }
  0x9b   :  { %v48_v26 = vsel %vm19_vm0, %v42_v24, 0.0  ;;  %v54_v27 = vsel %vm19_vm0, %v44_v25, 0.0 }
  0x9c   :  { %52 = vadd.xlane.f32.xlu0 %v51_v23  ;;  %49 = vadd.xlane.f32.xlu1 %v48_v26 }
  0xa0   :  { %55 = vadd.xlane.f32.xlu1 %v54_v27 }
 0x125   :  { %v47_v30 = vpop.xlane.xlu0 %46 }
 0x126   :  { %v57_v31 = vmul.f32 0.03125, %v47_v30 }
 0x128   :  { %v61_v32 = vadd.f32 1e-06, %v57_v31 }
 0x129   :  { %v50_v33 = vpop.xlane.xlu1 %49  ;;  %v53_v34 = vpop.xlane.xlu0 %52 }
 0x12a   :  { %v58_v35 = vmul.f32 0.03125, %v50_v33  ;;  %v59_v36 = vmul.f32 0.03125, %v53_v34  ;;  %205 = vrsqrt.f32 %v61_v32 }
 0x12c   :  { %v62_v37 = vadd.f32 1e-06, %v58_v35  ;;  %v63_v38 = vadd.f32 1e-06, %v59_v36 }
 0x12d   :  { %v56_v39 = vpop.xlane.xlu1 %55 }
 0x12e   :  { %207 = vrsqrt.f32 %v62_v37  ;;  %v60_v40 = vmul.f32 0.03125, %v56_v39 }
 0x12f   :  { %209 = vrsqrt.f32 %v63_v38 }
 0x130   :  { %v64_v41 = vadd.f32 1e-06, %v60_v40 }
 0x132   :  { %211 = vrsqrt.f32 %v64_v41 }
 0x134   :  { %v206_v42 = vpop.eup %205 }
 0x135   :  { %v69_v44 = vmul.f32 %v206_v42, %v37_v12 }
 0x138   :  { %v208_v43 = vpop.eup %207 }
 0x139   :  { %v70_v45 = vmul.f32 %v208_v43, %v38_v20  ;;  %v210_v46 = vpop.eup %209 }
 0x13a   :  { %v71_v49 = vmul.f32 %v210_v46, %v39_v13 }
 0x13b   :  { %v73_v47 = vpack.c.bf16 %v70_v45, %v69_v44 }
 0x13c   :  { %v212_v48 = vpop.eup %211 }
 0x13d   :  { %199 = vmatprep.mubr.msk.bf16.mxu0 %vm19_vm0, %v73_v47  ;;  %v72_v50 = vmul.f32 %v212_v48, %v40_v21 }
 0x13f   :  { %v74_v51 = vpack.c.bf16 %v72_v50, %v71_v49 }
 0x141   :  { %200 = vmatmul.mubr.msk.bf16.vlgmr.msra.gmra.mrb[0].mxu0 %vm19_vm0, %v74_v51 }
 0x214   :  { %v201_v53 = vpop.f32.mrb[0].mxu0 }
 0x215   :  { %v147_v54 = vadd.f32 %v201_v53, %v178_v52  ;;  %v138_v55 = vpop.f32.mrb[1].mxu0 }
 0x216   :  { %v139_v56 = vadd.f32 %v178_v52, %v138_v55  ;;  %v202_v57 = vpop.f32.mrb[2].mxu0 }
 0x217   :  { %v189_v58 = vpack.c.bf16 %v147_v54, %v147_v54  ;;  %v150_v59 = vadd.f32 %v202_v57, %v178_v52  ;;  %v141_v60 = vpop.f32.mrb[3].mxu0 }
 0x218   :  { %v187_v61 = vpack.c.bf16 %v139_v56, %v139_v56  ;;  %v142_v62 = vadd.f32 %v178_v52, %v141_v60 }
 0x219   :  { %172 = vst.msk [vmem:[%s279_s3 + $0x8] sm:$0xf] %vm169_vm1, %v189_v58  ;;  %v190_v63 = vpack.c.bf16 %v150_v59, %v150_v59 }
 0x21a   :  { %170 = vst.msk [vmem:[%s279_s3] sm:$0xf] %vm169_vm1, %v187_v61  ;;  %v188_v0 = vpack.c.bf16 %v142_v62, %v142_v62 }
 0x21b   :  { %173 = vst.msk [vmem:[%s279_s3 + $0xc] sm:$0xf] %vm169_vm1, %v190_v63 }
 0x21c   :  { %171 = vst.msk [vmem:[%s279_s3 + $0x4] sm:$0xf] %vm169_vm1, %v188_v0 }

// kernel: _lambda_.29
= control target key start
LH: loop header
LB: loop body
LE: loop exit
PB: predicated region body
PF: predicated region fallthrough
CT: control target
= control target key end

     0   :  { %vm55_vm0 = vcmask 261120   ;;  %s220_s1 = inlined_call_operand.vmem [shape: bf16[32,32], index: 1, kind: input, shape index: {}]   ;;  %s221_s0 = inlined_call_operand.vmem [shape: bf16[32,32], index: 0, kind: input, shape index: {}]   ;;  %s222_s2 = inlined_call_operand.vmem [shape: f32[1,32], index: 2, kind: input, shape index: {}]   ;;  %s223_s3 = inlined_call_operand.vmem [shape: f32[32,32], index: 3, kind: input, shape index: {}]   ;;  %s224_s4 = inlined_call_operand.vmem [shape: f32[32,32], index: 4, kind: output, shape index: {}]  }
   0x1   :  { %v146_v0 = vld [vmem:[%s220_s1] sm:$0xff]   ;;  %v147_v1 = vld [vmem:[%s220_s1 + $0x8] sm:$0xff]   ;;  %v113_v6 = vld [vmem:[%s223_s3 + $0x10] sm:$0xff] }
   0x2   :  { %138 = vmatprep.subr.bf16.mxu0 %v146_v0  ;;  %v148_v2 = vld [vmem:[%s221_s0] sm:$0xff]   ;;  %v149_v3 = vld [vmem:[%s221_s0 + $0x8] sm:$0xff]   ;;  %v114_v12 = vld [vmem:[%s223_s3 + $0x18] sm:$0xff] }
   0x3   :  { %139 = vmatpush3.bf16.msra.mxu0 %v146_v0  ;;  %142 = vmatprep.mubr.msk.bf16.mxu0 %vm55_vm0, %v148_v2  ;;  %v127_v4 = vld [vmem:[%s222_s2] ss:$0 sm:$0xff]  ;;  %v112_v16 = vld [vmem:[%s223_s3 + $0x8] sm:$0xff] }
   0x4   :  { %140 = vmatprep.subr.bf16.mxu0 %v147_v1  ;;  %v111_v9 = vld [vmem:[%s223_s3] sm:$0xff] }
   0x7   :  { %141 = vmatpush3.bf16.msra.mxu0 %v147_v1 }
   0xa   :  { %143 = vmatmul.mubr.msk.bf16.vlgmr.msra.gmra.mrb[0].mxu0 %vm55_vm0, %v149_v3 }
  0xdd   :  { %v144_v5 = vpop.f32.mrb[0].mxu0 }
  0xde   :  { %v105_v7 = vadd.f32 %v144_v5, %v127_v4  ;;  %v96_v8 = vpop.f32.mrb[1].mxu0 }
  0xdf   :  { %v97_v10 = vadd.f32 %v127_v4, %v96_v8  ;;  %v145_v11 = vpop.f32.mrb[2].mxu0 }
  0xe0   :  { %v117_v13 = vadd.f32 %v113_v6, %v105_v7  ;;  %v108_v14 = vadd.f32 %v145_v11, %v127_v4  ;;  %v99_v15 = vpop.f32.mrb[3].mxu0 }
  0xe1   :  { %v115_v17 = vadd.f32 %v111_v9, %v97_v10  ;;  %v100_v18 = vadd.f32 %v127_v4, %v99_v15 }
  0xe2   :  { %121 = vst.msk [vmem:[%s224_s4 + $0x10] sm:$0xff] %vm55_vm0, %v117_v13  ;;  %v118_v19 = vadd.f32 %v114_v12, %v108_v14 }
  0xe3   :  { %119 = vst.msk [vmem:[%s224_s4] sm:$0xff] %vm55_vm0, %v115_v17  ;;  %v116_v20 = vadd.f32 %v112_v16, %v100_v18 }
  0xe4   :  { %122 = vst.msk [vmem:[%s224_s4 + $0x18] sm:$0xff] %vm55_vm0, %v118_v19 }
  0xe5   :  { %120 = vst.msk [vmem:[%s224_s4 + $0x8] sm:$0xff] %vm55_vm0, %v116_v20 }

// kernel: _lambda_.30
= control target key start
LH: loop header
LB: loop body
LE: loop exit
PB: predicated region body
PF: predicated region fallthrough
CT: control target
= control target key end

     0   :  { %vm19_vm0 = vcmask 261120   ;;  %s324_s0 = inlined_call_operand.vmem [shape: f32[32,32], index: 0, kind: input, shape index: {}]   ;;  %s325_s1 = inlined_call_operand.vmem [shape: bf16[32,128], index: 1, kind: input, shape index: {}]   ;;  %s326_s2 = inlined_call_operand.vmem [shape: f32[1,128], index: 2, kind: input, shape index: {}]   ;;  %s327_s3 = inlined_call_operand.vmem [shape: bf16[32,128], index: 3, kind: output, shape index: {}]  }
   0x1   :  { %v15_v0 = vld [vmem:[%s324_s0] sm:$0xff]  ;;  %v17_v1 = vld [vmem:[%s324_s0 + $0x10] sm:$0xff]  ;;  %v16_v2 = vld [vmem:[%s324_s0 + $0x8] sm:$0xff] }
   0x2   :  { %v20_v3 = vsel %vm19_vm0, %v15_v0, 0.0  ;;  %v26_v4 = vsel %vm19_vm0, %v17_v1, 0.0  ;;  %v18_v5 = vld [vmem:[%s324_s0 + $0x18] sm:$0xff]  ;;  %v23_v6 = vsel %vm19_vm0, %v16_v2, 0.0  ;;  %v249_v28 = vld [vmem:[%s325_s1] sm:$0xff]   ;;  %v250_v29 = vld [vmem:[%s325_s1 + $0x8] sm:$0xff]  }
   0x3   :  { %21 = vadd.xlane.f32.xlu0 %v20_v3  ;;  %27 = vadd.xlane.f32.xlu1 %v26_v4  ;;  %v29_v7 = vsel %vm19_vm0, %v18_v5, 0.0  ;;  %v213_v52 = vld [vmem:[%s326_s2] ss:$0 sm:$0xff] }
   0x4   :  { %241 = vmatprep.subr.bf16.mxu0 %v249_v28 }
   0x5   :  { %242 = vmatpush3.bf16.msra.mxu0 %v249_v28 }
   0x6   :  { %243 = vmatprep.subr.bf16.mxu0 %v250_v29 }
   0x7   :  { %24 = vadd.xlane.f32.xlu0 %v23_v6  ;;  %30 = vadd.xlane.f32.xlu1 %v29_v7 }
   0x9   :  { %244 = vmatpush3.bf16.msra.mxu0 %v250_v29 }
  0x90   :  { %v22_v8 = vpop.xlane.xlu0 %21  ;;  %v28_v9 = vpop.xlane.xlu1 %27 }
  0x91   :  { %v33_v10 = vmul.f32 0.03125, %v22_v8  ;;  %v35_v11 = vmul.f32 0.03125, %v28_v9 }
  0x93   :  { %v37_v12 = vsub.f32 %v15_v0, %v33_v10  ;;  %v39_v13 = vsub.f32 %v17_v1, %v35_v11 }
  0x94   :  { %v25_v14 = vpop.xlane.xlu0 %24  ;;  %v31_v15 = vpop.xlane.xlu1 %30 }
  0x95   :  { %v34_v16 = vmul.f32 0.03125, %v25_v14  ;;  %v36_v17 = vmul.f32 0.03125, %v31_v15  ;;  %v41_v18 = vmul.f32 %v37_v12, %v37_v12  ;;  %v43_v19 = vmul.f32 %v39_v13, %v39_v13 }
  0x97   :  { %v38_v20 = vsub.f32 %v16_v2, %v34_v16  ;;  %v40_v21 = vsub.f32 %v18_v5, %v36_v17  ;;  %v45_v22 = vsel %vm19_vm0, %v41_v18, 0.0  ;;  %v51_v23 = vsel %vm19_vm0, %v43_v19, 0.0 }
  0x98   :  { %46 = vadd.xlane.f32.xlu0 %v45_v22 }
  0x99   :  { %v42_v24 = vmul.f32 %v38_v20, %v38_v20  ;;  %v44_v25 = vmul.f32 %v40_v21, %v40_v21 }
  0x9b   :  { %v48_v26 = vsel %vm19_vm0, %v42_v24, 0.0  ;;  %v54_v27 = vsel %vm19_vm0, %v44_v25, 0.0 }
  0x9c   :  { %52 = vadd.xlane.f32.xlu0 %v51_v23  ;;  %49 = vadd.xlane.f32.xlu1 %v48_v26 }
  0xa0   :  { %55 = vadd.xlane.f32.xlu1 %v54_v27 }
 0x125   :  { %v47_v30 = vpop.xlane.xlu0 %46 }
 0x126   :  { %v57_v31 = vmul.f32 0.03125, %v47_v30 }
 0x128   :  { %v61_v32 = vadd.f32 1e-06, %v57_v31 }
 0x129   :  { %v50_v33 = vpop.xlane.xlu1 %49  ;;  %v53_v34 = vpop.xlane.xlu0 %52 }
 0x12a   :  { %v58_v35 = vmul.f32 0.03125, %v50_v33  ;;  %v59_v36 = vmul.f32 0.03125, %v53_v34  ;;  %251 = vrsqrt.f32 %v61_v32 }
 0x12c   :  { %v62_v37 = vadd.f32 1e-06, %v58_v35  ;;  %v63_v38 = vadd.f32 1e-06, %v59_v36 }
 0x12d   :  { %v56_v39 = vpop.xlane.xlu1 %55 }
 0x12e   :  { %253 = vrsqrt.f32 %v62_v37  ;;  %v60_v40 = vmul.f32 0.03125, %v56_v39 }
 0x12f   :  { %255 = vrsqrt.f32 %v63_v38 }
 0x130   :  { %v64_v41 = vadd.f32 1e-06, %v60_v40 }
 0x132   :  { %257 = vrsqrt.f32 %v64_v41 }
 0x134   :  { %v252_v42 = vpop.eup %251 }
 0x135   :  { %v69_v44 = vmul.f32 %v252_v42, %v37_v12 }
 0x138   :  { %v254_v43 = vpop.eup %253 }
 0x139   :  { %v70_v45 = vmul.f32 %v254_v43, %v38_v20  ;;  %v256_v46 = vpop.eup %255 }
 0x13a   :  { %v71_v49 = vmul.f32 %v256_v46, %v39_v13 }
 0x13b   :  { %v73_v47 = vpack.c.bf16 %v70_v45, %v69_v44 }
 0x13c   :  { %v258_v48 = vpop.eup %257 }
 0x13d   :  { %245 = vmatprep.mubr.msk.bf16.mxu0 %vm19_vm0, %v73_v47  ;;  %v72_v50 = vmul.f32 %v258_v48, %v40_v21 }
 0x13f   :  { %v74_v51 = vpack.c.bf16 %v72_v50, %v71_v49 }
 0x141   :  { %246 = vmatmul.mubr.msk.bf16.vlgmr.msra.gmra.mrb[0].mxu0 %vm19_vm0, %v74_v51 }
 0x214   :  { %v247_v53 = vpop.f32.mrb[0].mxu0 }
 0x215   :  { %v147_v54 = vadd.f32 %v247_v53, %v213_v52  ;;  %v138_v55 = vpop.f32.mrb[1].mxu0 }
 0x216   :  { %v139_v56 = vadd.f32 %v213_v52, %v138_v55  ;;  %v248_v57 = vpop.f32.mrb[2].mxu0 }
 0x217   :  { %v159_v58 = vmul.f32 0.044715, %v147_v54  ;;  %v150_v59 = vadd.f32 %v248_v57, %v213_v52  ;;  %v141_v60 = vpop.f32.mrb[3].mxu0  ;;  %v155_v23 = vmul.f32 0.5, %v147_v54 }
 0x218   :  { %v157_v61 = vmul.f32 0.044715, %v139_v56  ;;  %v142_v62 = vadd.f32 %v213_v52, %v141_v60  ;;  %v153_v26 = vmul.f32 0.5, %v139_v56 }
 0x219   :  { %v163_v63 = vmul.f32 %v159_v58, %v147_v54  ;;  %v160_v0 = vmul.f32 0.044715, %v150_v59  ;;  %v156_v24 = vmul.f32 0.5, %v150_v59 }
 0x21a   :  { %v161_v1 = vmul.f32 %v157_v61, %v139_v56  ;;  %v158_v2 = vmul.f32 0.044715, %v142_v62  ;;  %v154_v27 = vmul.f32 0.5, %v142_v62 }
 0x21b   :  { %v167_v3 = vmul.f32 %v163_v63, %v147_v54  ;;  %v164_v4 = vmul.f32 %v160_v0, %v150_v59 }
 0x21c   :  { %v165_v5 = vmul.f32 %v161_v1, %v139_v56  ;;  %v162_v6 = vmul.f32 %v158_v2, %v142_v62 }
 0x21d   :  { %v171_v7 = vadd.f32 %v167_v3, %v147_v54  ;;  %v168_v8 = vmul.f32 %v164_v4, %v150_v59 }
 0x21e   :  { %v169_v9 = vadd.f32 %v165_v5, %v139_v56  ;;  %v166_v10 = vmul.f32 %v162_v6, %v142_v62 }
 0x21f   :  { %v175_v11 = vmul.f32 0.7978846, %v171_v7  ;;  %v172_v12 = vadd.f32 %v168_v8, %v150_v59 }
 0x220   :  { %v173_v13 = vmul.f32 0.7978846, %v169_v9  ;;  %v170_v14 = vadd.f32 %v166_v10, %v142_v62 }
 0x221   :  { %259 = vtanh.f32 %v175_v11  ;;  %v176_v15 = vmul.f32 0.7978846, %v172_v12 }
 0x222   :  { %261 = vtanh.f32 %v173_v13  ;;  %v174_v16 = vmul.f32 0.7978846, %v170_v14 }
 0x223   :  { %263 = vtanh.f32 %v176_v15 }
 0x224   :  { %265 = vtanh.f32 %v174_v16 }
 0x22b   :  { %v260_v17 = vpop.eup %259 }
 0x22c   :  { %v262_v18 = vpop.eup %261  ;;  %v183_v19 = vadd.f32 1.0, %v260_v17 }
 0x22d   :  { %v264_v20 = vpop.eup %263  ;;  %v181_v21 = vadd.f32 1.0, %v262_v18 }
 0x22e   :  { %v266_v22 = vpop.eup %265  ;;  %v184_v25 = vadd.f32 1.0, %v264_v20  ;;  %v187_v29 = vmul.f32 %v183_v19, %v155_v23 }
 0x22f   :  { %v182_v28 = vadd.f32 1.0, %v266_v22  ;;  %v185_v31 = vmul.f32 %v181_v21, %v153_v26 }
 0x230   :  { %v188_v30 = vmul.f32 %v184_v25, %v156_v24 }
 0x231   :  { %v186_v32 = vmul.f32 %v182_v28, %v154_v27 }
 0x232   :  { %v234_v33 = vpack.c.bf16 %v188_v30, %v187_v29 }
 0x233   :  { %v229_v34 = vpack.c.bf16 %v186_v32, %v185_v31 }
 0x234   :  { %236 = vst [vmem:[%s327_s3 + $0x8] sm:$0xff] %v234_v33  }
 0x235   :  { %230 = vst [vmem:[%s327_s3] sm:$0xff] %v229_v34  }

// kernel: _lambda_.31
= control target key start
LH: loop header
LB: loop body
LE: loop exit
PB: predicated region body
PF: predicated region fallthrough
CT: control target
= control target key end

     0   :  { %vm162_vm0 = vcmask 261120   ;;  %s304_s1 = inlined_call_operand.vmem [shape: bf16[128,32], index: 1, kind: input, shape index: {}]   ;;  %s305_s0 = inlined_call_operand.vmem [shape: bf16[32,128], index: 0, kind: input, shape index: {}]   ;;  %s306_s2 = inlined_call_operand.vmem [shape: f32[1,32], index: 2, kind: input, shape index: {}]   ;;  %s307_s3 = inlined_call_operand.vmem [shape: f32[32,32], index: 3, kind: input, shape index: {}]   ;;  %s308_s4 = inlined_call_operand.vmem [shape: f32[32,32], index: 4, kind: output, shape index: {}]  }
   0x1   :  { %v212_v0 = vld [vmem:[%s304_s1] sm:$0xff]   ;;  %v213_v1 = vld [vmem:[%s304_s1 + $0x8] sm:$0xff]   ;;  %v214_v2 = vld [vmem:[%s304_s1 + $0x10] sm:$0xff]  }
   0x2   :  { %192 = vmatprep.subr.bf16.mxu0 %v212_v0  ;;  %v215_v3 = vld [vmem:[%s304_s1 + $0x18] sm:$0xff]   ;;  %v220_v4 = vld [vmem:[%s305_s0] sm:$0xff]   ;;  %v217_v6 = vld [vmem:[%s304_s1 + $0x28] sm:$0xff]  }
   0x3   :  { %193 = vmatpush3.bf16.msra.mxu0 %v212_v0  ;;  %208 = vmatprep.mubr.bf16.mxu0 %v220_v4  ;;  %v216_v5 = vld [vmem:[%s304_s1 + $0x20] sm:$0xff]   ;;  %v218_v7 = vld [vmem:[%s304_s1 + $0x30] sm:$0xff]   ;;  %v219_v8 = vld [vmem:[%s304_s1 + $0x38] sm:$0xff]  }
   0x4   :  { %194 = vmatprep.subr.bf16.mxu0 %v213_v1  ;;  %v221_v9 = vld [vmem:[%s305_s0 + $0x8] sm:$0xff]   ;;  %v171_v10 = vld [vmem:[%s306_s2] ss:$0 sm:$0xff]  ;;  %v156_v12 = vld [vmem:[%s307_s3 + $0x10] sm:$0xff] }
   0x5   :  { %v154_v15 = vld [vmem:[%s307_s3] sm:$0xff]  ;;  %v157_v18 = vld [vmem:[%s307_s3 + $0x18] sm:$0xff]  ;;  %v155_v22 = vld [vmem:[%s307_s3 + $0x8] sm:$0xff] }
   0x7   :  { %195 = vmatpush3.bf16.msra.mxu0 %v213_v1 }
   0x8   :  { %196 = vmatprep.subr.bf16.mxu0 %v214_v2 }
   0xb   :  { %197 = vmatpush3.bf16.msra.mxu0 %v214_v2 }
   0xc   :  { %198 = vmatprep.subr.bf16.mxu0 %v215_v3 }
   0xf   :  { %199 = vmatpush3.bf16.msra.mxu0 %v215_v3 }
  0x10   :  { %200 = vmatprep.subr.bf16.mxu0 %v216_v5 }
  0x13   :  { %201 = vmatpush3.bf16.msra.mxu0 %v216_v5 }
  0x14   :  { %202 = vmatprep.subr.bf16.mxu0 %v217_v6 }
  0x17   :  { %203 = vmatpush3.bf16.msra.mxu0 %v217_v6 }
  0x18   :  { %204 = vmatprep.subr.bf16.mxu0 %v218_v7 }
  0x1b   :  { %205 = vmatpush3.bf16.msra.mxu0 %v218_v7 }
  0x1c   :  { %206 = vmatprep.subr.bf16.mxu0 %v219_v8 }
  0x1f   :  { %207 = vmatpush3.bf16.msra.mxu0 %v219_v8 }
  0x22   :  { %209 = vmatmul.mubr.bf16.vlgmr.msra.gmra.mrb[0].mxu0 %v221_v9 }
  0xf5   :  { %v210_v11 = vpop.f32.mrb[0].mxu0 }
  0xf6   :  { %v148_v13 = vadd.f32 %v210_v11, %v171_v10  ;;  %v139_v14 = vpop.f32.mrb[1].mxu0 }
  0xf7   :  { %v140_v16 = vadd.f32 %v171_v10, %v139_v14  ;;  %v211_v17 = vpop.f32.mrb[2].mxu0 }
  0xf8   :  { %v160_v19 = vadd.f32 %v156_v12, %v148_v13  ;;  %v151_v20 = vadd.f32 %v211_v17, %v171_v10  ;;  %v142_v21 = vpop.f32.mrb[3].mxu0 }
  0xf9   :  { %v158_v23 = vadd.f32 %v154_v15, %v140_v16  ;;  %v143_v24 = vadd.f32 %v171_v10, %v142_v21 }
  0xfa   :  { %165 = vst.msk [vmem:[%s308_s4 + $0x10] sm:$0xff] %vm162_vm0, %v160_v19  ;;  %v161_v25 = vadd.f32 %v157_v18, %v151_v20 }
  0xfb   :  { %163 = vst.msk [vmem:[%s308_s4] sm:$0xff] %vm162_vm0, %v158_v23  ;;  %v159_v26 = vadd.f32 %v155_v22, %v143_v24 }
  0xfc   :  { %166 = vst.msk [vmem:[%s308_s4 + $0x18] sm:$0xff] %vm162_vm0, %v161_v25 }
  0xfd   :  { %164 = vst.msk [vmem:[%s308_s4 + $0x8] sm:$0xff] %vm162_vm0, %v159_v26 }

// kernel: _lambda_.28
= control target key start
LH: loop header
LB: loop body
LE: loop exit
PB: predicated region body
PF: predicated region fallthrough
CT: control target
= control target key end

     0   :  { %v2266_v3 = vmov 0.0   ;;  %vm2267_vm0 = vmmov 0   ;;  %s2268_s14 = smov 96   ;;  %vm18_vm1 = vcmask 64512   ;;  %vm275_vm2 = vcmask 1043456   ;;  %s2270_s15 = smov 88   ;;  %s2628_s0 = inlined_call_operand.vmem [shape: bf16[4,8,96], index: 0, kind: input, shape index: {}]   ;;  %s2629_s1 = inlined_call_operand.vmem [shape: bf16[4,8,32], index: 1, kind: output, shape index: {}]  }
   0x1   :  { %v9_v0 = vld [vmem:[%s2628_s0] sm:$0xf]  ;;  %v10_v1 = vld [vmem:[%s2628_s0 + $0x4] sm:$0xf]  ;;  %v11_v2 = vld [vmem:[%s2628_s0 + $0x8] sm:$0xf]  ;;  %1990 = vmatprep.subr.bf16.mxu0 %v2266_v3  ;;  %1996 = vmatprep.subr.bf16.mxu1 %v2266_v3 }
   0x2   :  { %v2303_v4 = vcombine.low %v9_v0, %v9_v0  ;;  %v2305_v5 = vcombine.low %v11_v2, %v11_v2  ;;  %v12_v6 = vld [vmem:[%s2628_s0 + $0xc] sm:$0xf]  ;;  %1992 = vmatprep.mubr.msk.bf16.mxu0 %vm2267_vm0, %v2266_v3  ;;  %1998 = vmatprep.mubr.msk.bf16.mxu1 %vm2267_vm0, %v2266_v3  ;;  %v2315_v7 = vcombine.low %v10_v1, %v10_v1  ;;  %s2269_s0 = smov 64   ;;  %s2271_s16 = smov 120   ;;  %vm1859_vm3 = vcmask 130048  }
   0x3   :  { %v2318_v8 = vcombine.low %v12_v6, %v12_v6  ;;  %s2272_s17 = smov 56   ;;  %s2273_s18 = smov 80   ;;  %vm1868_vm4 = vcmask 195584   ;;  %vm1881_vm5 = vcmask 257024  }
   0x4   :  { %16 = vrot.lane.b32.xlu0 %v2303_v4, %s2268_s14  ;;  %119 = vrot.lane.b32.xlu1 %v2305_v5, %s2268_s14  ;;  %s2274_s19 = smov 112   ;;  %s2275_s20 = smov 48  }
   0x5   :  { %s2276_s21 = smov 72   ;;  %s2277_s22 = smov 104  }
   0x6   :  { %s2278_s23 = smov 40   ;;  %s2279_s24 = smov 8  }
   0x7   :  { %s2280_s25 = smov 16   ;;  %s2281_s26 = smov 24  }
   0x8   :  { %68 = vrot.lane.b32.xlu0 %v2315_v7, %s2268_s14  ;;  %170 = vrot.lane.b32.xlu1 %v2318_v8, %s2268_s14 }
  0x76   :  { %v17_v9 = vpop.permute.xlu0 %16  ;;  %v120_v11 = vpop.permute.xlu1 %119 }
  0x77   :  { %v23_v10 = vsel %vm18_vm1, %v17_v9, 0  ;;  %v125_v14 = vsel %vm18_vm1, %v120_v11, 0 }
  0x78   :  { %1991 = vmatpush3.bf16.xpose.msra.mxu0 %v23_v10 }
  0x79   :  { %2002 = vmatprep.subr.bf16.mxu0 %v2266_v3 }
  0x7a   :  { %v69_v12 = vpop.permute.xlu0 %68  ;;  %v171_v15 = vpop.permute.xlu1 %170 }
  0x7b   :  { %v74_v13 = vsel %vm18_vm1, %v69_v12, 0  ;;  %v176_v16 = vsel %vm18_vm1, %v171_v15, 0 }
  0x7c   :  { %1997 = vmatpush3.bf16.xpose.msra.mxu1 %v74_v13 }
  0x7d   :  { %2008 = vmatprep.subr.bf16.mxu1 %v2266_v3 }
  0x7f   :  { %1993 = vmatmul.mubr.msk.bf16.vlgmr.msra.gmra.mrb[0].mxu0 %vm18_vm1, %v9_v0 }
  0x80   :  { %2003 = vmatpush3.bf16.xpose.msra.mxu0 %v125_v14  ;;  %2004 = vmatprep.mubr.msk.bf16.mxu0 %vm2267_vm0, %v2266_v3 }
  0x81   :  { %2014 = vmatprep.subr.bf16.mxu0 %v2266_v3 }
  0x83   :  { %1999 = vmatmul.mubr.msk.bf16.vlgmr.msra.gmra.mrb[0].mxu1 %vm18_vm1, %v10_v1 }
  0x84   :  { %2009 = vmatpush3.bf16.xpose.msra.mxu1 %v176_v16  ;;  %2010 = vmatprep.mubr.msk.bf16.mxu1 %vm2267_vm0, %v2266_v3 }
  0x85   :  { %2020 = vmatprep.subr.bf16.mxu1 %v2266_v3 }
  0x87   :  { %2005 = vmatmul.mubr.msk.bf16.vlgmr.msra.gmra.mrb[4].mxu0 %vm18_vm1, %v11_v2 }
  0x88   :  { %2016 = vmatprep.mubr.msk.bf16.mxu0 %vm2267_vm0, %v2266_v3 }
  0x8b   :  { %2011 = vmatmul.mubr.msk.bf16.vlgmr.msra.gmra.mrb[4].mxu1 %vm18_vm1, %v12_v6 }
  0x8c   :  { %2022 = vmatprep.mubr.msk.bf16.mxu1 %vm2267_vm0, %v2266_v3 }
 0x152   :  { %v59_v17 = vpop.f32.mrb[0].mxu0 }
 0x153   :  { %v218_v18 = vmul.f32 0.35355338, %v59_v17  ;;  %v1994_v19 = vpop.f32.mrb[1].mxu0 }
 0x154   :  { %v62_v20 = vpop.f32.mrb[2].mxu0 }
 0x155   :  { %v1995_v21 = vpop.f32.mrb[3].mxu0  ;;  %v222_v22 = vsel %vm18_vm1, %v218_v18, -inf }
 0x156   :  { %223 = vmax.xlane.f32.xlu0 %v222_v22  ;;  %v110_v23 = vpop.f32.mrb[0].mxu1 }
 0x157   :  { %v219_v24 = vmul.f32 0.35355338, %v110_v23  ;;  %v2000_v25 = vpop.f32.mrb[1].mxu1 }
 0x158   :  { %v113_v26 = vpop.f32.mrb[2].mxu1 }
 0x159   :  { %v225_v27 = vsel %vm18_vm1, %v219_v24, -inf  ;;  %v2001_v28 = vpop.f32.mrb[3].mxu1 }
 0x15a   :  { %v161_v29 = vpop.f32.mrb[4].mxu0  ;;  %226 = vmax.xlane.f32.xlu1 %v225_v27 }
 0x15b   :  { %v220_v30 = vmul.f32 0.35355338, %v161_v29  ;;  %v2006_v31 = vpop.f32.mrb[5].mxu0 }
 0x15c   :  { %v164_v32 = vpop.f32.mrb[6].mxu0 }
 0x15d   :  { %v228_v33 = vsel %vm18_vm1, %v220_v30, -inf  ;;  %v2007_v34 = vpop.f32.mrb[7].mxu0 }
 0x15e   :  { %229 = vmax.xlane.f32.xlu0 %v228_v33  ;;  %v212_v35 = vpop.f32.mrb[4].mxu1 }
 0x15f   :  { %v221_v36 = vmul.f32 0.35355338, %v212_v35  ;;  %v2012_v37 = vpop.f32.mrb[5].mxu1 }
 0x160   :  { %v215_v38 = vpop.f32.mrb[6].mxu1 }
 0x161   :  { %v231_v39 = vsel %vm18_vm1, %v221_v36, -inf  ;;  %v2013_v40 = vpop.f32.mrb[7].mxu1 }
 0x162   :  { %232 = vmax.xlane.f32.xlu0 %v231_v39 }
 0x16b   :  { %270 = vrot.lane.b32.xlu1 %v2303_v4, %s2269_s0 }
 0x1e3   :  { %v224_v41 = vpop.xlane.xlu0 %223 }
 0x1e4   :  { %v234_v42 = vsub.f32 %v218_v18, %v224_v41 }
 0x1e6   :  { %v238_v43 = vmul.f32 1.442695, %v234_v42 }
 0x1e7   :  { %v227_v44 = vpop.xlane.xlu1 %226 }
 0x1e8   :  { %2202 = vpow2.f32 %v238_v43  ;;  %v235_v45 = vsub.f32 %v219_v24, %v227_v44 }
 0x1ea   :  { %v240_v46 = vmul.f32 1.442695, %v235_v45 }
 0x1eb   :  { %v271_v47 = vpop.permute.xlu1 %270  ;;  %v230_v53 = vpop.xlane.xlu0 %229 }
 0x1ec   :  { %2204 = vpow2.f32 %v240_v46  ;;  %v277_v48 = vsel %vm275_vm2, %v271_v47, 0  ;;  %v236_v55 = vsub.f32 %v220_v30, %v230_v53 }
 0x1ed   :  { %2015 = vmatpush3.bf16.msra.mxu0 %v277_v48 }
 0x1ee   :  { %2026 = vmatprep.subr.bf16.mxu0 %v2266_v3  ;;  %v242_v57 = vmul.f32 1.442695, %v236_v55 }
 0x1ef   :  { %v233_v54 = vpop.xlane.xlu0 %232 }
 0x1f0   :  { %v237_v56 = vsub.f32 %v221_v36, %v233_v54  ;;  %2206 = vpow2.f32 %v242_v57 }
 0x1f2   :  { %v2203_v49 = vpop.eup %2202  ;;  %v244_v58 = vmul.f32 1.442695, %v237_v56 }
 0x1f3   :  { %v246_v50 = vsel %vm18_vm1, %v2203_v49, 0.0 }
 0x1f4   :  { %247 = vadd.xlane.f32.xlu1 %v246_v50  ;;  %2208 = vpow2.f32 %v244_v58 }
 0x1f6   :  { %v2205_v51 = vpop.eup %2204 }
 0x1f7   :  { %v249_v52 = vsel %vm18_vm1, %v2205_v51, 0.0 }
 0x1f8   :  { %250 = vadd.xlane.f32.xlu0 %v249_v52 }
 0x1fa   :  { %v2207_v59 = vpop.eup %2206 }
 0x1fb   :  { %v252_v61 = vsel %vm18_vm1, %v2207_v59, 0.0 }
 0x1fe   :  { %v2209_v60 = vpop.eup %2208 }
 0x1ff   :  { %v255_v62 = vsel %vm18_vm1, %v2209_v60, 0.0 }
 0x205   :  { %367 = vrot.lane.b32.xlu1 %v2305_v5, %s2269_s0 }
 0x209   :  { %415 = vrot.lane.b32.xlu1 %v2318_v8, %s2269_s0 }
 0x20e   :  { %319 = vrot.lane.b32.xlu0 %v2315_v7, %s2269_s0 }
 0x22d   :  { %253 = vadd.xlane.f32.xlu1 %v252_v61  ;;  %256 = vadd.xlane.f32.xlu0 %v255_v62 }
 0x23e   :  { %519 = vrot.lane.b32.xlu1 %v2315_v7, %s2270_s15 }
 0x242   :  { %517 = vrot.lane.b32.xlu1 %v2315_v7, %s2271_s16 }
 0x243   :  { %469 = vrot.lane.b32.xlu0 %v2303_v4, %s2270_s15 }
 0x246   :  { %619 = vrot.lane.b32.xlu1 %v2318_v8, %s2270_s15 }
 0x247   :  { %467 = vrot.lane.b32.xlu0 %v2303_v4, %s2271_s16 }
 0x24a   :  { %617 = vrot.lane.b32.xlu1 %v2318_v8, %s2271_s16 }
 0x24b   :  { %569 = vrot.lane.b32.xlu0 %v2305_v5, %s2270_s15 }
 0x24f   :  { %567 = vrot.lane.b32.xlu0 %v2305_v5, %s2271_s16 }
 0x281   :  { %v248_v63 = vpop.xlane.xlu1 %247 }
 0x282   :  { %2210 = vrcp.f32 %v248_v63 }
 0x285   :  { %v251_v0 = vpop.xlane.xlu0 %250  ;;  %v368_v9 = vpop.permute.xlu1 %367 }
 0x286   :  { %2212 = vrcp.f32 %v251_v0  ;;  %v373_v13 = vsel %vm275_vm2, %v368_v9, 0 }
 0x289   :  { %v320_v1 = vpop.permute.xlu0 %319  ;;  %v416_v15 = vpop.permute.xlu1 %415 }
 0x28a   :  { %v325_v2 = vsel %vm275_vm2, %v320_v1, 0  ;;  %v421_v17 = vsel %vm275_vm2, %v416_v15, 0 }
 0x28b   :  { %2021 = vmatpush3.bf16.msra.mxu1 %v325_v2 }
 0x28c   :  { %v2211_v6 = vpop.eup %2210  ;;  %2032 = vmatprep.subr.bf16.mxu1 %v2266_v3 }
 0x28d   :  { %v262_v10 = vmul.f32 %v2211_v6, %v2203_v49 }
 0x28f   :  { %v266_v11 = vpack.c.bf16 %v262_v10, %v262_v10 }
 0x290   :  { %v2213_v12 = vpop.eup %2212 }
 0x291   :  { %v263_v14 = vmul.f32 %v2213_v12, %v2205_v51  ;;  %2017 = vmatmul.mubr.msk.bf16.vlgmr.msra.gmra.mrb[8].mxu0 %vm18_vm1, %v266_v11 }
 0x292   :  { %2027 = vmatpush3.bf16.msra.mxu0 %v373_v13  ;;  %2028 = vmatprep.mubr.msk.bf16.mxu0 %vm2267_vm0, %v2266_v3 }
 0x293   :  { %v267_v16 = vpack.c.bf16 %v263_v14, %v263_v14  ;;  %2038 = vmatprep.subr.bf16.mxu0 %v2266_v3 }
 0x295   :  { %2023 = vmatmul.mubr.msk.bf16.vlgmr.msra.gmra.mrb[8].mxu1 %vm18_vm1, %v267_v16 }
 0x296   :  { %2033 = vmatpush3.bf16.msra.mxu1 %v421_v17  ;;  %2034 = vmatprep.mubr.msk.bf16.mxu1 %vm2267_vm0, %v2266_v3 }
 0x297   :  { %2044 = vmatprep.subr.bf16.mxu1 %v2266_v3 }
 0x2ba   :  { %v254_v18 = vpop.xlane.xlu1 %253  ;;  %v257_v19 = vpop.xlane.xlu0 %256 }
 0x2bb   :  { %2214 = vrcp.f32 %v254_v18 }
 0x2bc   :  { %2216 = vrcp.f32 %v257_v19 }
 0x2be   :  { %v470_v20 = vpop.permute.xlu0 %469  ;;  %v520_v21 = vpop.permute.xlu1 %519 }
 0x2bf   :  { %v475_v27 = vsel %vm18_vm1, %v470_v20, 0  ;;  %v525_v30 = vsel %vm18_vm1, %v520_v21, 0 }
 0x2c2   :  { %v468_v26 = vpop.permute.xlu0 %467  ;;  %v518_v29 = vpop.permute.xlu1 %517 }
 0x2c5   :  { %v2215_v22 = vpop.eup %2214 }
 0x2c6   :  { %v2217_v23 = vpop.eup %2216  ;;  %v264_v24 = vmul.f32 %v2215_v22, %v2207_v59  ;;  %v570_v32 = vpop.permute.xlu0 %569 }
 0x2c7   :  { %v265_v25 = vmul.f32 %v2217_v23, %v2209_v60  ;;  %v620_v33 = vpop.permute.xlu1 %619  ;;  %v575_v34 = vsel %vm18_vm1, %v570_v32, 0 }
 0x2c8   :  { %v268_v28 = vpack.c.bf16 %v264_v24, %v264_v24  ;;  %v625_v35 = vsel %vm18_vm1, %v620_v33, 0 }
 0x2c9   :  { %v269_v31 = vpack.c.bf16 %v265_v25, %v265_v25 }
 0x2ca   :  { %2029 = vmatmul.mubr.msk.bf16.vlgmr.msra.gmra.mrb[12].mxu0 %vm18_vm1, %v268_v28  ;;  %v568_v36 = vpop.permute.xlu0 %567 }
 0x2cb   :  { %2035 = vmatmul.mubr.msk.bf16.vlgmr.msra.gmra.mrb[12].mxu1 %vm18_vm1, %v269_v31  ;;  %2039 = vmatpush3.bf16.xpose.msra.mxu0 %v475_v27  ;;  %v618_v37 = vpop.permute.xlu1 %617 }
 0x2cc   :  { %2045 = vmatpush3.bf16.xpose.msra.mxu1 %v525_v30  ;;  %2040 = vmatprep.mubr.msk.bf16.mxu0 %vm2267_vm0, %v2266_v3 }
 0x2cd   :  { %2046 = vmatprep.mubr.msk.bf16.mxu1 %vm2267_vm0, %v2266_v3  ;;  %2050 = vmatprep.subr.bf16.mxu0 %v2266_v3 }
 0x2ce   :  { %2056 = vmatprep.subr.bf16.mxu1 %v2266_v3 }
 0x2d2   :  { %2041 = vmatmul.mubr.msk.bf16.vlgmr.msra.gmra.mrb[16].mxu0 %vm18_vm1, %v468_v26 }
 0x2d3   :  { %2047 = vmatmul.mubr.msk.bf16.vlgmr.msra.gmra.mrb[16].mxu1 %vm18_vm1, %v518_v29  ;;  %2051 = vmatpush3.bf16.xpose.msra.mxu0 %v575_v34 }
 0x2d4   :  { %2057 = vmatpush3.bf16.xpose.msra.mxu1 %v625_v35  ;;  %2052 = vmatprep.mubr.msk.bf16.mxu0 %vm2267_vm0, %v2266_v3 }
 0x2d5   :  { %2058 = vmatprep.mubr.msk.bf16.mxu1 %vm2267_vm0, %v2266_v3  ;;  %2062 = vmatprep.subr.bf16.mxu0 %v2266_v3 }
 0x2d6   :  { %2068 = vmatprep.subr.bf16.mxu1 %v2266_v3 }
 0x2da   :  { %2053 = vmatmul.mubr.msk.bf16.vlgmr.msra.gmra.mrb[20].mxu0 %vm18_vm1, %v568_v36 }
 0x2db   :  { %2059 = vmatmul.mubr.msk.bf16.vlgmr.msra.gmra.mrb[20].mxu1 %vm18_vm1, %v618_v37  ;;  %2064 = vmatprep.mubr.msk.bf16.mxu0 %vm2267_vm0, %v2266_v3 }
 0x2dc   :  { %2070 = vmatprep.mubr.msk.bf16.mxu1 %vm2267_vm0, %v2266_v3 }
 0x364   :  { %v2402_v38 = vpop.f32.mrb[8].mxu0 }
 0x365   :  { %v2018_v39 = vpop.f32.mrb[9].mxu0 }
 0x366   :  { %v316_v40 = vpop.f32.mrb[10].mxu0 }
 0x367   :  { %v2019_v41 = vpop.f32.mrb[11].mxu0 }
 0x368   :  { %v2404_v42 = vpop.f32.mrb[8].mxu1 }
 0x369   :  { %v2024_v43 = vpop.f32.mrb[9].mxu1 }
 0x36a   :  { %v364_v44 = vpop.f32.mrb[10].mxu1 }
 0x36b   :  { %v2025_v45 = vpop.f32.mrb[11].mxu1 }
 0x39d   :  { %v2406_v46 = vpop.f32.mrb[12].mxu0 }
 0x39e   :  { %v2408_v47 = vpop.f32.mrb[12].mxu1  ;;  %v2030_v48 = vpop.f32.mrb[13].mxu0 }
 0x39f   :  { %v2036_v49 = vpop.f32.mrb[13].mxu1  ;;  %v412_v50 = vpop.f32.mrb[14].mxu0 }
 0x3a0   :  { %v460_v51 = vpop.f32.mrb[14].mxu1  ;;  %v2031_v52 = vpop.f32.mrb[15].mxu0 }
 0x3a1   :  { %v2037_v53 = vpop.f32.mrb[15].mxu1 }
 0x3a5   :  { %v511_v54 = vpop.f32.mrb[16].mxu0 }
 0x3a6   :  { %v667_v55 = vmul.f32 0.35355338, %v511_v54  ;;  %v561_v56 = vpop.f32.mrb[16].mxu1  ;;  %v2042_v57 = vpop.f32.mrb[17].mxu0 }
 0x3a7   :  { %v668_v58 = vmul.f32 0.35355338, %v561_v56  ;;  %v514_v59 = vpop.f32.mrb[18].mxu0  ;;  %v2048_v60 = vpop.f32.mrb[17].mxu1 }
 0x3a8   :  { %v2043_v61 = vpop.f32.mrb[19].mxu0  ;;  %v671_v62 = vsel %vm18_vm1, %v667_v55, -inf  ;;  %v564_v63 = vpop.f32.mrb[18].mxu1 }
 0x3a9   :  { %v674_v0 = vsel %vm18_vm1, %v668_v58, -inf  ;;  %672 = vmax.xlane.f32.xlu0 %v671_v62  ;;  %v2049_v1 = vpop.f32.mrb[19].mxu1 }
 0x3aa   :  { %675 = vmax.xlane.f32.xlu1 %v674_v0 }
 0x3ad   :  { %v611_v2 = vpop.f32.mrb[20].mxu0 }
 0x3ae   :  { %v669_v6 = vmul.f32 0.35355338, %v611_v2  ;;  %v661_v9 = vpop.f32.mrb[20].mxu1  ;;  %v2054_v10 = vpop.f32.mrb[21].mxu0 }
 0x3af   :  { %v670_v11 = vmul.f32 0.35355338, %v661_v9  ;;  %v614_v12 = vpop.f32.mrb[22].mxu0  ;;  %v2060_v13 = vpop.f32.mrb[21].mxu1 }
 0x3b0   :  { %v677_v14 = vsel %vm18_vm1, %v669_v6, -inf  ;;  %v2055_v15 = vpop.f32.mrb[23].mxu0  ;;  %v664_v16 = vpop.f32.mrb[22].mxu1 }
 0x3b1   :  { %678 = vmax.xlane.f32.xlu0 %v677_v14  ;;  %v2061_v17 = vpop.f32.mrb[23].mxu1  ;;  %v680_v18 = vsel %vm18_vm1, %v670_v11, -inf }
 0x3b5   :  { %681 = vmax.xlane.f32.xlu0 %v680_v18 }
 0x3bb   :  { %719 = vrot.lane.b32.xlu1 %v2303_v4, %s2272_s17 }
 0x436   :  { %v673_v19 = vpop.xlane.xlu0 %672 }
 0x437   :  { %v676_v20 = vpop.xlane.xlu1 %675  ;;  %v683_v21 = vsub.f32 %v667_v55, %v673_v19 }
 0x438   :  { %v684_v22 = vsub.f32 %v668_v58, %v676_v20 }
 0x439   :  { %v687_v23 = vmul.f32 1.442695, %v683_v21 }
 0x43a   :  { %v689_v24 = vmul.f32 1.442695, %v684_v22 }
 0x43b   :  { %2218 = vpow2.f32 %v687_v23  ;;  %v720_v25 = vpop.permute.xlu1 %719 }
 0x43c   :  { %2220 = vpow2.f32 %v689_v24  ;;  %v725_v26 = vsel %vm275_vm2, %v720_v25, 0 }
 0x43d   :  { %2063 = vmatpush3.bf16.msra.mxu0 %v725_v26 }
 0x43e   :  { %2074 = vmatprep.subr.bf16.mxu0 %v2266_v3  ;;  %v679_v31 = vpop.xlane.xlu0 %678 }
 0x43f   :  { %v685_v34 = vsub.f32 %v669_v6, %v679_v31 }
 0x441   :  { %v691_v36 = vmul.f32 1.442695, %v685_v34 }
 0x442   :  { %v682_v32 = vpop.xlane.xlu0 %681 }
 0x443   :  { %v686_v33 = vsub.f32 %v670_v11, %v682_v32 }
 0x445   :  { %v2219_v27 = vpop.eup %2218  ;;  %v693_v35 = vmul.f32 1.442695, %v686_v33 }
 0x446   :  { %v2221_v28 = vpop.eup %2220  ;;  %v695_v29 = vsel %vm18_vm1, %v2219_v27, 0.0 }
 0x447   :  { %v698_v30 = vsel %vm18_vm1, %v2221_v28, 0.0  ;;  %696 = vadd.xlane.f32.xlu1 %v695_v29  ;;  %2222 = vpow2.f32 %v693_v35 }
 0x448   :  { %699 = vadd.xlane.f32.xlu0 %v698_v30  ;;  %2224 = vpow2.f32 %v691_v36 }
 0x451   :  { %v2223_v37 = vpop.eup %2222 }
 0x452   :  { %v2225_v39 = vpop.eup %2224  ;;  %v704_v40 = vsel %vm18_vm1, %v2223_v37, 0.0 }
 0x453   :  { %v701_v41 = vsel %vm18_vm1, %v2225_v39, 0.0 }
 0x458   :  { %815 = vrot.lane.b32.xlu1 %v2305_v5, %s2272_s17 }
 0x45c   :  { %863 = vrot.lane.b32.xlu1 %v2318_v8, %s2272_s17 }
 0x45e   :  { %767 = vrot.lane.b32.xlu0 %v2315_v7, %s2272_s17 }
 0x47d   :  { %705 = vadd.xlane.f32.xlu0 %v704_v40 }
 0x480   :  { %702 = vadd.xlane.f32.xlu1 %v701_v41 }
 0x491   :  { %967 = vrot.lane.b32.xlu1 %v2315_v7, %s2273_s18 }
 0x493   :  { %917 = vrot.lane.b32.xlu0 %v2303_v4, %s2273_s18 }
 0x495   :  { %965 = vrot.lane.b32.xlu1 %v2315_v7, %s2274_s19 }
 0x497   :  { %915 = vrot.lane.b32.xlu0 %v2303_v4, %s2274_s19 }
 0x499   :  { %1067 = vrot.lane.b32.xlu1 %v2318_v8, %s2273_s18 }
 0x49b   :  { %1017 = vrot.lane.b32.xlu0 %v2305_v5, %s2273_s18 }
 0x49d   :  { %1065 = vrot.lane.b32.xlu1 %v2318_v8, %s2274_s19 }
 0x49f   :  { %1015 = vrot.lane.b32.xlu0 %v2305_v5, %s2274_s19 }
 0x4d4   :  { %v697_v43 = vpop.xlane.xlu1 %696 }
 0x4d5   :  { %2226 = vrcp.f32 %v697_v43  ;;  %v700_v44 = vpop.xlane.xlu0 %699 }
 0x4d6   :  { %2228 = vrcp.f32 %v700_v44 }
 0x4d8   :  { %v816_v49 = vpop.permute.xlu1 %815 }
 0x4d9   :  { %v768_v45 = vpop.permute.xlu0 %767  ;;  %v821_v57 = vsel %vm275_vm2, %v816_v49, 0 }
 0x4da   :  { %v773_v48 = vsel %vm275_vm2, %v768_v45, 0 }
 0x4db   :  { %2069 = vmatpush3.bf16.msra.mxu1 %v773_v48 }
 0x4dc   :  { %2080 = vmatprep.subr.bf16.mxu1 %v2266_v3  ;;  %v864_v54 = vpop.permute.xlu1 %863 }
 0x4dd   :  { %v869_v58 = vsel %vm275_vm2, %v864_v54, 0 }
 0x4df   :  { %v2227_v50 = vpop.eup %2226 }
 0x4e0   :  { %v2229_v51 = vpop.eup %2228  ;;  %v711_v52 = vmul.f32 %v2227_v50, %v2219_v27 }
 0x4e1   :  { %v712_v53 = vmul.f32 %v2229_v51, %v2221_v28 }
 0x4e2   :  { %v715_v55 = vpack.c.bf16 %v711_v52, %v711_v52 }
 0x4e3   :  { %v716_v56 = vpack.c.bf16 %v712_v53, %v712_v53 }
 0x4e4   :  { %2065 = vmatmul.mubr.msk.bf16.vlgmr.msra.gmra.mrb[24].mxu0 %vm18_vm1, %v715_v55 }
 0x4e5   :  { %2071 = vmatmul.mubr.msk.bf16.vlgmr.msra.gmra.mrb[24].mxu1 %vm18_vm1, %v716_v56  ;;  %2075 = vmatpush3.bf16.msra.mxu0 %v821_v57 }
 0x4e6   :  { %2081 = vmatpush3.bf16.msra.mxu1 %v869_v58  ;;  %2082 = vmatprep.mubr.msk.bf16.mxu1 %vm2267_vm0, %v2266_v3 }
 0x4e7   :  { %2092 = vmatprep.subr.bf16.mxu1 %v2266_v3  ;;  %2076 = vmatprep.mubr.msk.bf16.mxu0 %vm2267_vm0, %v2266_v3 }
 0x4e8   :  { %2086 = vmatprep.subr.bf16.mxu0 %v2266_v3 }
 0x50a   :  { %v706_v59 = vpop.xlane.xlu0 %705 }
 0x50b   :  { %2230 = vrcp.f32 %v706_v59 }
 0x50d   :  { %v703_v60 = vpop.xlane.xlu1 %702 }
 0x50e   :  { %2232 = vrcp.f32 %v703_v60  ;;  %v918_v61 = vpop.permute.xlu0 %917 }
 0x50f   :  { %v923_v12 = vsel %vm18_vm1, %v918_v61, 0 }
 0x511   :  { %v968_v63 = vpop.permute.xlu1 %967 }
 0x512   :  { %v973_v2 = vsel %vm18_vm1, %v968_v63, 0  ;;  %v916_v11 = vpop.permute.xlu0 %915 }
 0x515   :  { %v2231_v62 = vpop.eup %2230  ;;  %v966_v10 = vpop.permute.xlu1 %965 }
 0x516   :  { %v714_v0 = vmul.f32 %v2231_v62, %v2223_v37  ;;  %v1018_v15 = vpop.permute.xlu0 %1017 }
 0x517   :  { %v1023_v17 = vsel %vm18_vm1, %v1018_v15, 0 }
 0x518   :  { %v2233_v1 = vpop.eup %2232  ;;  %v718_v6 = vpack.c.bf16 %v714_v0, %v714_v0 }
 0x519   :  { %v713_v9 = vmul.f32 %v2233_v1, %v2225_v39  ;;  %v1068_v14 = vpop.permute.xlu1 %1067 }
 0x51a   :  { %2083 = vmatmul.mubr.msk.bf16.vlgmr.msra.gmra.mrb[28].mxu1 %vm18_vm1, %v718_v6  ;;  %v1073_v16 = vsel %vm18_vm1, %v1068_v14, 0  ;;  %v1016_v19 = vpop.permute.xlu0 %1015 }
 0x51b   :  { %2093 = vmatpush3.bf16.xpose.msra.mxu1 %v973_v2  ;;  %v717_v13 = vpack.c.bf16 %v713_v9, %v713_v9  ;;  %2094 = vmatprep.mubr.msk.bf16.mxu1 %vm2267_vm0, %v2266_v3 }
 0x51c   :  { %2104 = vmatprep.subr.bf16.mxu1 %v2266_v3 }
 0x51d   :  { %2077 = vmatmul.mubr.msk.bf16.vlgmr.msra.gmra.mrb[28].mxu0 %vm18_vm1, %v717_v13  ;;  %v1066_v18 = vpop.permute.xlu1 %1065 }
 0x51e   :  { %2087 = vmatpush3.bf16.xpose.msra.mxu0 %v923_v12  ;;  %2088 = vmatprep.mubr.msk.bf16.mxu0 %vm2267_vm0, %v2266_v3 }
 0x51f   :  { %2098 = vmatprep.subr.bf16.mxu0 %v2266_v3 }
 0x522   :  { %2095 = vmatmul.mubr.msk.bf16.vlgmr.msra.gmra.mrb[32].mxu1 %vm18_vm1, %v966_v10 }
 0x523   :  { %2105 = vmatpush3.bf16.xpose.msra.mxu1 %v1073_v16  ;;  %2106 = vmatprep.mubr.msk.bf16.mxu1 %vm2267_vm0, %v2266_v3 }
 0x524   :  { %2116 = vmatprep.subr.bf16.mxu1 %v2266_v3 }
 0x525   :  { %2089 = vmatmul.mubr.msk.bf16.vlgmr.msra.gmra.mrb[32].mxu0 %vm18_vm1, %v916_v11 }
 0x526   :  { %2099 = vmatpush3.bf16.xpose.msra.mxu0 %v1023_v17  ;;  %2100 = vmatprep.mubr.msk.bf16.mxu0 %vm2267_vm0, %v2266_v3 }
 0x527   :  { %2110 = vmatprep.subr.bf16.mxu0 %v2266_v3 }
 0x52a   :  { %2107 = vmatmul.mubr.msk.bf16.vlgmr.msra.gmra.mrb[36].mxu1 %vm18_vm1, %v1066_v18 }
 0x52b   :  { %2118 = vmatprep.mubr.msk.bf16.mxu1 %vm2267_vm0, %v2266_v3 }
 0x52d   :  { %2101 = vmatmul.mubr.msk.bf16.vlgmr.msra.gmra.mrb[36].mxu0 %vm18_vm1, %v1016_v19 }
 0x52e   :  { %2112 = vmatprep.mubr.msk.bf16.mxu0 %vm2267_vm0, %v2266_v3 }
 0x5b7   :  { %v2470_v20 = vpop.f32.mrb[24].mxu0 }
 0x5b8   :  { %v2472_v21 = vpop.f32.mrb[24].mxu1  ;;  %v2066_v22 = vpop.f32.mrb[25].mxu0 }
 0x5b9   :  { %v2072_v23 = vpop.f32.mrb[25].mxu1  ;;  %v764_v24 = vpop.f32.mrb[26].mxu0 }
 0x5ba   :  { %v812_v25 = vpop.f32.mrb[26].mxu1  ;;  %v2067_v26 = vpop.f32.mrb[27].mxu0 }
 0x5bb   :  { %v2073_v27 = vpop.f32.mrb[27].mxu1 }
 0x5ed   :  { %v2474_v28 = vpop.f32.mrb[28].mxu1 }
 0x5ee   :  { %v2084_v29 = vpop.f32.mrb[29].mxu1 }
 0x5ef   :  { %v908_v30 = vpop.f32.mrb[30].mxu1 }
 0x5f0   :  { %v2085_v31 = vpop.f32.mrb[31].mxu1  ;;  %v2476_v32 = vpop.f32.mrb[28].mxu0 }
 0x5f1   :  { %v2078_v33 = vpop.f32.mrb[29].mxu0 }
 0x5f2   :  { %v860_v34 = vpop.f32.mrb[30].mxu0 }
 0x5f3   :  { %v2079_v35 = vpop.f32.mrb[31].mxu0 }
 0x5f5   :  { %v1009_v36 = vpop.f32.mrb[32].mxu1 }
 0x5f6   :  { %v1116_v37 = vmul.f32 0.35355338, %v1009_v36  ;;  %v2096_v39 = vpop.f32.mrb[33].mxu1 }
 0x5f7   :  { %v1012_v40 = vpop.f32.mrb[34].mxu1 }
 0x5f8   :  { %v1122_v41 = vsel %vm18_vm1, %v1116_v37, -inf  ;;  %v959_v43 = vpop.f32.mrb[32].mxu0  ;;  %v2097_v44 = vpop.f32.mrb[35].mxu1 }
 0x5f9   :  { %1123 = vmax.xlane.f32.xlu1 %v1122_v41  ;;  %v1115_v45 = vmul.f32 0.35355338, %v959_v43  ;;  %v2090_v48 = vpop.f32.mrb[33].mxu0 }
 0x5fa   :  { %v962_v49 = vpop.f32.mrb[34].mxu0 }
 0x5fb   :  { %v2091_v50 = vpop.f32.mrb[35].mxu0  ;;  %v1119_v51 = vsel %vm18_vm1, %v1115_v45, -inf }
 0x5fc   :  { %1120 = vmax.xlane.f32.xlu0 %v1119_v51 }
 0x5fd   :  { %v1109_v52 = vpop.f32.mrb[36].mxu1 }
 0x5fe   :  { %v2108_v53 = vpop.f32.mrb[37].mxu1  ;;  %v1118_v58 = vmul.f32 0.35355338, %v1109_v52 }
 0x5ff   :  { %v1112_v54 = vpop.f32.mrb[38].mxu1 }
 0x600   :  { %v1059_v55 = vpop.f32.mrb[36].mxu0  ;;  %v2109_v56 = vpop.f32.mrb[39].mxu1  ;;  %v1128_v63 = vsel %vm18_vm1, %v1118_v58, -inf }
 0x601   :  { %v1117_v57 = vmul.f32 0.35355338, %v1059_v55  ;;  %v2102_v59 = vpop.f32.mrb[37].mxu0 }
 0x602   :  { %v1062_v60 = vpop.f32.mrb[38].mxu0 }
 0x603   :  { %v1125_v61 = vsel %vm18_vm1, %v1117_v57, -inf  ;;  %v2103_v62 = vpop.f32.mrb[39].mxu0 }
 0x604   :  { %1126 = vmax.xlane.f32.xlu0 %v1125_v61 }
 0x608   :  { %1129 = vmax.xlane.f32.xlu0 %v1128_v63 }
 0x60a   :  { %1167 = vrot.lane.b32.xlu1 %v2303_v4, %s2275_s20 }
 0x686   :  { %v1124_v0 = vpop.xlane.xlu1 %1123 }
 0x687   :  { %v1132_v1 = vsub.f32 %v1116_v37, %v1124_v0 }
 0x689   :  { %v1137_v2 = vmul.f32 1.442695, %v1132_v1  ;;  %v1121_v6 = vpop.xlane.xlu0 %1120 }
 0x68a   :  { %v1131_v9 = vsub.f32 %v1115_v45, %v1121_v6  ;;  %v1168_v10 = vpop.permute.xlu1 %1167 }
 0x68b   :  { %2234 = vpow2.f32 %v1137_v2  ;;  %v1173_v11 = vsel %vm275_vm2, %v1168_v10, 0 }
 0x68c   :  { %v1135_v12 = vmul.f32 1.442695, %v1131_v9  ;;  %2111 = vmatpush3.bf16.msra.mxu0 %v1173_v11 }
 0x68d   :  { %2122 = vmatprep.subr.bf16.mxu0 %v2266_v3 }
 0x68e   :  { %2236 = vpow2.f32 %v1135_v12 }
 0x691   :  { %v1127_v17 = vpop.xlane.xlu0 %1126 }
 0x692   :  { %v1133_v23 = vsub.f32 %v1117_v57, %v1127_v17 }
 0x694   :  { %v1139_v24 = vmul.f32 1.442695, %v1133_v23 }
 0x695   :  { %v2235_v13 = vpop.eup %2234  ;;  %v1130_v18 = vpop.xlane.xlu0 %1129 }
 0x696   :  { %v1146_v14 = vsel %vm18_vm1, %v2235_v13, 0.0  ;;  %v1134_v19 = vsub.f32 %v1118_v58, %v1130_v18 }
 0x697   :  { %1147 = vadd.xlane.f32.xlu0 %v1146_v14 }
 0x698   :  { %v2237_v15 = vpop.eup %2236  ;;  %v1141_v22 = vmul.f32 1.442695, %v1134_v19 }
 0x699   :  { %v1143_v16 = vsel %vm18_vm1, %v2237_v15, 0.0 }
 0x69a   :  { %1144 = vadd.xlane.f32.xlu1 %v1143_v16  ;;  %2238 = vpow2.f32 %v1141_v22 }
 0x69b   :  { %2240 = vpow2.f32 %v1139_v24 }
 0x6a4   :  { %v2239_v25 = vpop.eup %2238 }
 0x6a5   :  { %v1152_v26 = vsel %vm18_vm1, %v2239_v25, 0.0  ;;  %v2241_v27 = vpop.eup %2240 }
 0x6a6   :  { %v1149_v29 = vsel %vm18_vm1, %v2241_v27, 0.0 }
 0x6ab   :  { %1263 = vrot.lane.b32.xlu1 %v2305_v5, %s2275_s20 }
 0x6ad   :  { %1215 = vrot.lane.b32.xlu0 %v2315_v7, %s2275_s20 }
 0x6af   :  { %1311 = vrot.lane.b32.xlu1 %v2318_v8, %s2275_s20 }
 0x6cc   :  { %1153 = vadd.xlane.f32.xlu0 %v1152_v26 }
 0x6d3   :  { %1150 = vadd.xlane.f32.xlu1 %v1149_v29 }
 0x6e2   :  { %1365 = vrot.lane.b32.xlu0 %v2303_v4, %s2276_s21 }
 0x6e4   :  { %1415 = vrot.lane.b32.xlu1 %v2315_v7, %s2276_s21 }
 0x6e6   :  { %1363 = vrot.lane.b32.xlu0 %v2303_v4, %s2277_s22 }
 0x6e8   :  { %1413 = vrot.lane.b32.xlu1 %v2315_v7, %s2277_s22 }
 0x6ea   :  { %1465 = vrot.lane.b32.xlu0 %v2305_v5, %s2276_s21 }
 0x6ec   :  { %1515 = vrot.lane.b32.xlu1 %v2318_v8, %s2276_s21 }
 0x6ee   :  { %1463 = vrot.lane.b32.xlu0 %v2305_v5, %s2277_s22 }
 0x6f0   :  { %1513 = vrot.lane.b32.xlu1 %v2318_v8, %s2277_s22 }
 0x724   :  { %v1148_v30 = vpop.xlane.xlu0 %1147 }
 0x725   :  { %2242 = vrcp.f32 %v1148_v30 }
 0x727   :  { %v1145_v31 = vpop.xlane.xlu1 %1144 }
 0x728   :  { %2244 = vrcp.f32 %v1145_v31  ;;  %v1216_v33 = vpop.permute.xlu0 %1215 }
 0x729   :  { %v1221_v34 = vsel %vm275_vm2, %v1216_v33, 0 }
 0x72a   :  { %2117 = vmatpush3.bf16.msra.mxu1 %v1221_v34 }
 0x72b   :  { %v1264_v35 = vpop.permute.xlu1 %1263  ;;  %2128 = vmatprep.subr.bf16.mxu1 %v2266_v3 }
 0x72c   :  { %v1269_v48 = vsel %vm275_vm2, %v1264_v35, 0 }
 0x72f   :  { %v2243_v36 = vpop.eup %2242  ;;  %v1312_v39 = vpop.permute.xlu1 %1311 }
 0x730   :  { %v1160_v37 = vmul.f32 %v2243_v36, %v2235_v13  ;;  %v1317_v44 = vsel %vm275_vm2, %v1312_v39, 0 }
 0x732   :  { %v2245_v40 = vpop.eup %2244  ;;  %v1164_v41 = vpack.c.bf16 %v1160_v37, %v1160_v37 }
 0x733   :  { %v1159_v43 = vmul.f32 %v2245_v40, %v2237_v15 }
 0x734   :  { %2119 = vmatmul.mubr.msk.bf16.vlgmr.msra.gmra.mrb[40].mxu1 %vm18_vm1, %v1164_v41 }
 0x735   :  { %2129 = vmatpush3.bf16.msra.mxu1 %v1317_v44  ;;  %v1163_v45 = vpack.c.bf16 %v1159_v43, %v1159_v43  ;;  %2130 = vmatprep.mubr.msk.bf16.mxu1 %vm2267_vm0, %v2266_v3 }
 0x736   :  { %2140 = vmatprep.subr.bf16.mxu1 %v2266_v3 }
 0x737   :  { %2113 = vmatmul.mubr.msk.bf16.vlgmr.msra.gmra.mrb[40].mxu0 %vm18_vm1, %v1163_v45 }
 0x738   :  { %2123 = vmatpush3.bf16.msra.mxu0 %v1269_v48  ;;  %2124 = vmatprep.mubr.msk.bf16.mxu0 %vm2267_vm0, %v2266_v3 }
 0x739   :  { %2134 = vmatprep.subr.bf16.mxu0 %v2266_v3 }
 0x759   :  { %v1154_v49 = vpop.xlane.xlu0 %1153 }
 0x75a   :  { %2246 = vrcp.f32 %v1154_v49 }
 0x75d   :  { %v1366_v56 = vpop.permute.xlu0 %1365 }
 0x75e   :  { %v1371_v62 = vsel %vm18_vm1, %v1366_v56, 0 }
 0x760   :  { %v1151_v50 = vpop.xlane.xlu1 %1150 }
 0x761   :  { %2248 = vrcp.f32 %v1151_v50  ;;  %v1364_v60 = vpop.permute.xlu0 %1363 }
 0x764   :  { %v2247_v51 = vpop.eup %2246  ;;  %v1416_v52 = vpop.permute.xlu1 %1415 }
 0x765   :  { %v1162_v53 = vmul.f32 %v2247_v51, %v2239_v25  ;;  %v1421_v54 = vsel %vm18_vm1, %v1416_v52, 0  ;;  %v1466_v1 = vpop.permute.xlu0 %1465 }
 0x766   :  { %v1471_v2 = vsel %vm18_vm1, %v1466_v1, 0 }
 0x767   :  { %v1166_v55 = vpack.c.bf16 %v1162_v53, %v1162_v53 }
 0x768   :  { %v1414_v57 = vpop.permute.xlu1 %1413 }
 0x769   :  { %2131 = vmatmul.mubr.msk.bf16.vlgmr.msra.gmra.mrb[44].mxu1 %vm18_vm1, %v1166_v55  ;;  %v1464_v9 = vpop.permute.xlu0 %1463 }
 0x76a   :  { %2141 = vmatpush3.bf16.xpose.msra.mxu1 %v1421_v54  ;;  %2142 = vmatprep.mubr.msk.bf16.mxu1 %vm2267_vm0, %v2266_v3 }
 0x76b   :  { %v2249_v58 = vpop.eup %2248  ;;  %2152 = vmatprep.subr.bf16.mxu1 %v2266_v3 }
 0x76c   :  { %v1161_v59 = vmul.f32 %v2249_v58, %v2241_v27  ;;  %v1516_v61 = vpop.permute.xlu1 %1515 }
 0x76d   :  { %v1521_v0 = vsel %vm18_vm1, %v1516_v61, 0 }
 0x76e   :  { %v1165_v63 = vpack.c.bf16 %v1161_v59, %v1161_v59 }
 0x770   :  { %2125 = vmatmul.mubr.msk.bf16.vlgmr.msra.gmra.mrb[44].mxu0 %vm18_vm1, %v1165_v63  ;;  %v1514_v6 = vpop.permute.xlu1 %1513 }
 0x771   :  { %2143 = vmatmul.mubr.msk.bf16.vlgmr.msra.gmra.mrb[48].mxu1 %vm18_vm1, %v1414_v57  ;;  %2135 = vmatpush3.bf16.xpose.msra.mxu0 %v1371_v62 }
 0x772   :  { %2136 = vmatprep.mubr.msk.bf16.mxu0 %vm2267_vm0, %v2266_v3  ;;  %2146 = vmatprep.subr.bf16.mxu0 %v2266_v3 }
 0x773   :  { %2153 = vmatpush3.bf16.xpose.msra.mxu1 %v1521_v0  ;;  %2154 = vmatprep.mubr.msk.bf16.mxu1 %vm2267_vm0, %v2266_v3 }
 0x774   :  { %2164 = vmatprep.subr.bf16.mxu1 %v2266_v3 }
 0x778   :  { %2137 = vmatmul.mubr.msk.bf16.vlgmr.msra.gmra.mrb[48].mxu0 %vm18_vm1, %v1364_v60 }
 0x779   :  { %2147 = vmatpush3.bf16.xpose.msra.mxu0 %v1471_v2  ;;  %2148 = vmatprep.mubr.msk.bf16.mxu0 %vm2267_vm0, %v2266_v3 }
 0x77a   :  { %2155 = vmatmul.mubr.msk.bf16.vlgmr.msra.gmra.mrb[52].mxu1 %vm18_vm1, %v1514_v6  ;;  %2158 = vmatprep.subr.bf16.mxu0 %v2266_v3 }
 0x77b   :  { %2166 = vmatprep.mubr.msk.bf16.mxu1 %vm2267_vm0, %v2266_v3 }
 0x780   :  { %2149 = vmatmul.mubr.msk.bf16.vlgmr.msra.gmra.mrb[52].mxu0 %vm18_vm1, %v1464_v9 }
 0x781   :  { %2160 = vmatprep.mubr.msk.bf16.mxu0 %vm2267_vm0, %v2266_v3 }
 0x807   :  { %v2538_v10 = vpop.f32.mrb[40].mxu1 }
 0x808   :  { %v2120_v11 = vpop.f32.mrb[41].mxu1 }
 0x809   :  { %v1260_v12 = vpop.f32.mrb[42].mxu1 }
 0x80a   :  { %v2121_v13 = vpop.f32.mrb[43].mxu1  ;;  %v2540_v14 = vpop.f32.mrb[40].mxu0 }
 0x80b   :  { %v2114_v15 = vpop.f32.mrb[41].mxu0 }
 0x80c   :  { %v1212_v16 = vpop.f32.mrb[42].mxu0 }
 0x80d   :  { %v2115_v17 = vpop.f32.mrb[43].mxu0 }
 0x83c   :  { %v2542_v18 = vpop.f32.mrb[44].mxu1 }
 0x83d   :  { %v2132_v19 = vpop.f32.mrb[45].mxu1 }
 0x83e   :  { %v1356_v22 = vpop.f32.mrb[46].mxu1 }
 0x83f   :  { %v2133_v23 = vpop.f32.mrb[47].mxu1 }
 0x843   :  { %v2544_v24 = vpop.f32.mrb[44].mxu0 }
 0x844   :  { %v1457_v25 = vpop.f32.mrb[48].mxu1  ;;  %v2126_v26 = vpop.f32.mrb[45].mxu0 }
 0x845   :  { %v1564_v27 = vmul.f32 0.35355338, %v1457_v25  ;;  %v1308_v29 = vpop.f32.mrb[46].mxu0  ;;  %v2144_v30 = vpop.f32.mrb[49].mxu1  ;;  %v912_v26 = vpack.c.bf16 %v2472_v21, %v2472_v21  ;;  %v1359_v21 = vpack.c.bf16 %v2540_v14, %v2540_v14 }
 0x846   :  { %v2127_v31 = vpop.f32.mrb[47].mxu0  ;;  %v1460_v33 = vpop.f32.mrb[50].mxu1  ;;  %v911_v29 = vpack.c.bf16 %v2470_v20, %v2470_v20  ;;  %v1361_v20 = vpack.c.bf16 %v2544_v24, %v2544_v24 }
 0x847   :  { %v1570_v34 = vsel %vm18_vm1, %v1564_v27, -inf  ;;  %v2145_v35 = vpop.f32.mrb[51].mxu1 }
 0x848   :  { %1571 = vmax.xlane.f32.xlu1 %v1570_v34 }
 0x84b   :  { %v1407_v36 = vpop.f32.mrb[48].mxu0 }
 0x84c   :  { %v1563_v37 = vmul.f32 0.35355338, %v1407_v36  ;;  %v2138_v39 = vpop.f32.mrb[49].mxu0 }
 0x84d   :  { %v1410_v40 = vpop.f32.mrb[50].mxu0  ;;  %v1557_v41 = vpop.f32.mrb[52].mxu1 }
 0x84e   :  { %v2139_v43 = vpop.f32.mrb[51].mxu0  ;;  %v1567_v44 = vsel %vm18_vm1, %v1563_v37, -inf  ;;  %v2156_v45 = vpop.f32.mrb[53].mxu1  ;;  %v1566_v53 = vmul.f32 0.35355338, %v1557_v41 }
 0x84f   :  { %1568 = vmax.xlane.f32.xlu0 %v1567_v44  ;;  %v1560_v48 = vpop.f32.mrb[54].mxu1 }
 0x850   :  { %v2157_v49 = vpop.f32.mrb[55].mxu1  ;;  %v1576_v57 = vsel %vm18_vm1, %v1566_v53, -inf }
 0x853   :  { %v1507_v50 = vpop.f32.mrb[52].mxu0 }
 0x854   :  { %v1565_v51 = vmul.f32 0.35355338, %v1507_v50  ;;  %v2150_v52 = vpop.f32.mrb[53].mxu0 }
 0x855   :  { %v1510_v54 = vpop.f32.mrb[54].mxu0 }
 0x856   :  { %v2151_v55 = vpop.f32.mrb[55].mxu0  ;;  %v1573_v56 = vsel %vm18_vm1, %v1565_v51, -inf }
 0x857   :  { %1574 = vmax.xlane.f32.xlu0 %v1573_v56 }
 0x859   :  { %1615 = vrot.lane.b32.xlu1 %v2303_v4, %s2278_s23 }
 0x85b   :  { %1577 = vmax.xlane.f32.xlu0 %v1576_v57 }
 0x8d5   :  { %v1572_v58 = vpop.xlane.xlu1 %1571 }
 0x8d6   :  { %v1580_v59 = vsub.f32 %v1564_v27, %v1572_v58  ;;  %v914_v27 = vpack.c.bf16 %v2474_v28, %v2474_v28 }
 0x8d8   :  { %v1585_v60 = vmul.f32 1.442695, %v1580_v59 }
 0x8d9   :  { %v1616_v61 = vpop.permute.xlu1 %1615 }
 0x8da   :  { %2250 = vpow2.f32 %v1585_v60  ;;  %v1621_v62 = vsel %vm275_vm2, %v1616_v61, 0 }
 0x8db   :  { %2159 = vmatpush3.bf16.msra.mxu0 %v1621_v62 }
 0x8dc   :  { %v1569_v63 = vpop.xlane.xlu0 %1568  ;;  %2170 = vmatprep.subr.bf16.mxu0 %v2266_v3 }
 0x8dd   :  { %v1579_v0 = vsub.f32 %v1563_v37, %v1569_v63 }
 0x8df   :  { %v1583_v1 = vmul.f32 1.442695, %v1579_v0 }
 0x8e1   :  { %2252 = vpow2.f32 %v1583_v1 }
 0x8e4   :  { %v2251_v2 = vpop.eup %2250  ;;  %v1575_v6 = vpop.xlane.xlu0 %1574 }
 0x8e5   :  { %v1581_v9 = vsub.f32 %v1565_v51, %v1575_v6  ;;  %v1594_v4 = vsel %vm18_vm1, %v2251_v2, 0.0 }
 0x8e6   :  { %1595 = vadd.xlane.f32.xlu0 %v1594_v4 }
 0x8e7   :  { %v1587_v11 = vmul.f32 1.442695, %v1581_v9 }
 0x8e8   :  { %v1578_v12 = vpop.xlane.xlu0 %1577 }
 0x8e9   :  { %2254 = vpow2.f32 %v1587_v11  ;;  %v1582_v13 = vsub.f32 %v1566_v53, %v1578_v12 }
 0x8eb   :  { %v2253_v15 = vpop.eup %2252  ;;  %v1589_v16 = vmul.f32 1.442695, %v1582_v13 }
 0x8ec   :  { %v1591_v17 = vsel %vm18_vm1, %v2253_v15, 0.0 }
 0x8ed   :  { %2256 = vpow2.f32 %v1589_v16  ;;  %1592 = vadd.xlane.f32.xlu1 %v1591_v17 }
 0x8f3   :  { %v2255_v19 = vpop.eup %2254 }
 0x8f4   :  { %v1597_v22 = vsel %vm18_vm1, %v2255_v19, 0.0 }
 0x8f5   :  { %1598 = vadd.xlane.f32.xlu1 %v1597_v22  ;;  %v463_v22 = vpack.c.bf16 %v2402_v38, %v2402_v38 }
 0x8f7   :  { %v2257_v23 = vpop.eup %2256 }
 0x8f8   :  { %v1600_v25 = vsel %vm18_vm1, %v2257_v23, 0.0 }
 0x8f9   :  { %1601 = vadd.xlane.f32.xlu0 %v1600_v25 }
 0x906   :  { %1711 = vrot.lane.b32.xlu1 %v2305_v5, %s2278_s23  ;;  %v1360_v5 = vpack.c.bf16 %v2538_v10, %v2538_v10 }
 0x90a   :  { %1759 = vrot.lane.b32.xlu1 %v2318_v8, %s2278_s23  ;;  %v913_v8 = vpack.c.bf16 %v2476_v32, %v2476_v32 }
 0x90e   :  { %1817 = vrot.lane.b32.xlu1 %v912_v26, %s2279_s24 }
 0x90f   :  { %1663 = vrot.lane.b32.xlu0 %v2315_v7, %s2278_s23  ;;  %v1362_v7 = vpack.c.bf16 %v2542_v18, %v2542_v18 }
 0x912   :  { %1821 = vrot.lane.b32.xlu1 %v914_v27, %s2279_s24 }
 0x913   :  { %1815 = vrot.lane.b32.xlu0 %v911_v29, %s2279_s24 }
 0x916   :  { %1829 = vrot.lane.b32.xlu1 %v1360_v5, %s2280_s25  ;;  %v464_v5 = vpack.c.bf16 %v2404_v42, %v2404_v42 }
 0x917   :  { %1819 = vrot.lane.b32.xlu0 %v913_v8, %s2279_s24  ;;  %v465_v8 = vpack.c.bf16 %v2406_v46, %v2406_v46  ;;  %v466_v46 = vpack.c.bf16 %v2408_v47, %v2408_v47 }
 0x91a   :  { %1833 = vrot.lane.b32.xlu1 %v1362_v7, %s2280_s25 }
 0x91b   :  { %1827 = vrot.lane.b32.xlu0 %v1359_v21, %s2280_s25 }
 0x91f   :  { %1831 = vrot.lane.b32.xlu0 %v1361_v20, %s2280_s25 }
 0x973   :  { %v1596_v28 = vpop.xlane.xlu0 %1595 }
 0x97a   :  { %v1593_v10 = vpop.xlane.xlu1 %1592 }
 0x97b   :  { %2258 = vrcp.f32 %v1593_v10 }
 0x97c   :  { %2260 = vrcp.f32 %v1596_v28 }
 0x982   :  { %v1599_v32 = vpop.xlane.xlu1 %1598 }
 0x983   :  { %2262 = vrcp.f32 %v1599_v32 }
 0x985   :  { %v2259_v30 = vpop.eup %2258 }
 0x986   :  { %v2261_v31 = vpop.eup %2260  ;;  %v1607_v33 = vmul.f32 %v2259_v30, %v2253_v15  ;;  %v1712_v34 = vpop.permute.xlu1 %1711 }
 0x987   :  { %v1602_v18 = vpop.xlane.xlu0 %1601  ;;  %v1717_v14 = vsel %vm275_vm2, %v1712_v34, 0  ;;  %v1608_v36 = vmul.f32 %v2261_v31, %v2251_v2 }
 0x988   :  { %2264 = vrcp.f32 %v1602_v18  ;;  %v1611_v35 = vpack.c.bf16 %v1607_v33, %v1607_v33 }
 0x989   :  { %v1612_v43 = vpack.c.bf16 %v1608_v36, %v1608_v36 }
 0x98a   :  { %2161 = vmatmul.mubr.msk.bf16.vlgmr.msra.gmra.mrb[56].mxu0 %vm18_vm1, %v1611_v35  ;;  %v1760_v39 = vpop.permute.xlu1 %1759 }
 0x98b   :  { %v1664_v24 = vpop.permute.xlu0 %1663  ;;  %2171 = vmatpush3.bf16.msra.mxu0 %v1717_v14  ;;  %2172 = vmatprep.mubr.msk.bf16.mxu0 %vm2267_vm0, %v2266_v3  ;;  %v1765_v41 = vsel %vm275_vm2, %v1760_v39, 0 }
 0x98c   :  { %v1669_v37 = vsel %vm275_vm2, %v1664_v24, 0 }
 0x98d   :  { %2165 = vmatpush3.bf16.msra.mxu1 %v1669_v37  ;;  %v2263_v40 = vpop.eup %2262 }
 0x98e   :  { %2176 = vmatprep.subr.bf16.mxu1 %v2266_v3  ;;  %v1609_v44 = vmul.f32 %v2263_v40, %v2255_v19  ;;  %v1818_v12 = vpop.permute.xlu1 %1817 }
 0x98f   :  { %v1816_v11 = vpop.permute.xlu0 %1815  ;;  %v1852_v38 = vsel %vm18_vm1, %v464_v5, %v1818_v12 }
 0x990   :  { %2167 = vmatmul.mubr.msk.bf16.vlgmr.msra.gmra.mrb[56].mxu1 %vm18_vm1, %v1612_v43  ;;  %v1613_v45 = vpack.c.bf16 %v1609_v44, %v1609_v44 }
 0x991   :  { %2177 = vmatpush3.bf16.msra.mxu1 %v1765_v41  ;;  %2178 = vmatprep.mubr.msk.bf16.mxu1 %vm2267_vm0, %v2266_v3 }
 0x992   :  { %v2265_v48 = vpop.eup %2264  ;;  %2173 = vmatmul.mubr.msk.bf16.vlgmr.msra.gmra.mrb[60].mxu0 %vm18_vm1, %v1613_v45  ;;  %v1822_v15 = vpop.permute.xlu1 %1821 }
 0x993   :  { %v1610_v49 = vmul.f32 %v2265_v48, %v2257_v23  ;;  %v1820_v13 = vpop.permute.xlu0 %1819  ;;  %v1849_v23 = vsel %vm18_vm1, %v463_v22, %v1816_v11  ;;  %v1858_v30 = vsel %vm18_vm1, %v466_v46, %v1822_v15 }
 0x994   :  { %v1855_v28 = vsel %vm18_vm1, %v465_v8, %v1820_v13 }
 0x995   :  { %v1614_v50 = vpack.c.bf16 %v1610_v49, %v1610_v49 }
 0x996   :  { %v1830_v17 = vpop.permute.xlu1 %1829 }
 0x997   :  { %v1828_v16 = vpop.permute.xlu0 %1827  ;;  %v1863_v7 = vsel %vm1859_vm3, %v1852_v38, %v1830_v17 }
 0x998   :  { %2179 = vmatmul.mubr.msk.bf16.vlgmr.msra.gmra.mrb[60].mxu1 %vm18_vm1, %v1614_v50  ;;  %v1861_v25 = vsel %vm1859_vm3, %v1849_v23, %v1828_v16 }
 0x99a   :  { %v1834_v27 = vpop.permute.xlu1 %1833 }
 0x99b   :  { %v1832_v19 = vpop.permute.xlu0 %1831  ;;  %v1867_v31 = vsel %vm1859_vm3, %v1858_v30, %v1834_v27 }
 0x99c   :  { %v1865_v42 = vsel %vm1859_vm3, %v1855_v28, %v1832_v19 }
 0xa5d   :  { %v1657_v51 = vpop.f32.mrb[56].mxu0 }
 0xa5e   :  { %v1807_v52 = vpack.c.bf16 %v1657_v51, %v1657_v51  ;;  %v2162_v53 = vpop.f32.mrb[57].mxu0 }
 0xa5f   :  { %v1660_v54 = vpop.f32.mrb[58].mxu0 }
 0xa60   :  { %v2163_v55 = vpop.f32.mrb[59].mxu0  ;;  %1839 = vrot.lane.b32.xlu0 %v1807_v52, %s2281_s26 }
 0xa63   :  { %v1705_v56 = vpop.f32.mrb[56].mxu1 }
 0xa64   :  { %v1808_v57 = vpack.c.bf16 %v1705_v56, %v1705_v56  ;;  %v2168_v58 = vpop.f32.mrb[57].mxu1 }
 0xa65   :  { %v1708_v59 = vpop.f32.mrb[58].mxu1  ;;  %v1753_v60 = vpop.f32.mrb[60].mxu0 }
 0xa66   :  { %1841 = vrot.lane.b32.xlu1 %v1808_v57, %s2281_s26  ;;  %v2169_v3 = vpop.f32.mrb[59].mxu1  ;;  %v1809_v61 = vpack.c.bf16 %v1753_v60, %v1753_v60  ;;  %v2174_v62 = vpop.f32.mrb[61].mxu0 }
 0xa67   :  { %v1756_v63 = vpop.f32.mrb[62].mxu0 }
 0xa68   :  { %v2175_v0 = vpop.f32.mrb[63].mxu0  ;;  %1843 = vrot.lane.b32.xlu0 %v1809_v61, %s2281_s26 }
 0xa6b   :  { %v1801_v1 = vpop.f32.mrb[60].mxu1 }
 0xa6c   :  { %v1810_v2 = vpack.c.bf16 %v1801_v1, %v1801_v1  ;;  %v2180_v6 = vpop.f32.mrb[61].mxu1 }
 0xa6d   :  { %v1804_v9 = vpop.f32.mrb[62].mxu1 }
 0xa6e   :  { %1845 = vrot.lane.b32.xlu1 %v1810_v2, %s2281_s26  ;;  %v2181_v4 = vpop.f32.mrb[63].mxu1 }
 0xad2   :  { %v1840_v26 = vpop.permute.xlu0 %1839 }
 0xad3   :  { %v1870_v29 = vsel %vm1868_vm4, %v1861_v25, %v1840_v26 }
 0xad4   :  { %1882 = vst.msk [vmem:[%s2629_s1] sm:$0xf] %vm1881_vm5, %v1870_v29 }
 0xad8   :  { %v1842_v21 = vpop.permute.xlu1 %1841 }
 0xad9   :  { %v1873_v20 = vsel %vm1868_vm4, %v1863_v7, %v1842_v21 }
 0xada   :  { %1883 = vst.msk [vmem:[%s2629_s1 + $0x4] sm:$0xf] %vm1881_vm5, %v1873_v20  ;;  %v1844_v10 = vpop.permute.xlu0 %1843 }
 0xadb   :  { %v1876_v32 = vsel %vm1868_vm4, %v1865_v42, %v1844_v10 }
 0xadc   :  { %1884 = vst.msk [vmem:[%s2629_s1 + $0x8] sm:$0xf] %vm1881_vm5, %v1876_v32 }
 0xae0   :  { %v1846_v33 = vpop.permute.xlu1 %1845 }
 0xae1   :  { %v1879_v34 = vsel %vm1868_vm4, %v1867_v31, %v1846_v33 }
 0xae2   :  { %1885 = vst.msk [vmem:[%s2629_s1 + $0xc] sm:$0xf] %vm1881_vm5, %v1879_v34 }

// kernel: _lambda_.47
= control target key start
LH: loop header
LB: loop body
LE: loop exit
PB: predicated region body
PF: predicated region fallthrough
CT: control target
= control target key end

     0   :  { %vm44_vm0 = vcmask 261120   ;;  %vm100_vm1 = vcmask 130048   ;;  %s181_s1 = inlined_call_operand.vmem [shape: bf16[32,16], index: 1, kind: input, shape index: {}]   ;;  %s182_s0 = inlined_call_operand.vmem [shape: f32[32,32], index: 0, kind: input, shape index: {}]   ;;  %s183_s2 = inlined_call_operand.vmem [shape: f32[1,16], index: 2, kind: input, shape index: {}]   ;;  %s184_s3 = inlined_call_operand.vmem [shape: f32[32,16], index: 3, kind: output, shape index: {}]  }
   0x1   :  { %v126_v0 = vld [vmem:[%s181_s1] sm:$0xff]   ;;  %v127_v1 = vld [vmem:[%s181_s1 + $0x8] sm:$0xff]   ;;  %v17_v5 = vld [vmem:[%s182_s0 + $0x10] sm:$0xff] }
   0x2   :  { %118 = vmatprep.subr.bf16.mxu0 %v126_v0  ;;  %v15_v2 = vld [vmem:[%s182_s0] sm:$0xff]  ;;  %v16_v3 = vld [vmem:[%s182_s0 + $0x8] sm:$0xff]  ;;  %v18_v6 = vld [vmem:[%s182_s0 + $0x18] sm:$0xff] }
   0x3   :  { %119 = vmatpush3.bf16.msra.mxu0 %v126_v0  ;;  %v19_v4 = vpack.c.bf16 %v16_v3, %v15_v2  ;;  %v20_v7 = vpack.c.bf16 %v18_v6, %v17_v5  ;;  %v109_v8 = vld [vmem:[%s183_s2] ss:$0 sm:$0xff] }
   0x4   :  { %120 = vmatprep.subr.bf16.mxu0 %v127_v1 }
   0x5   :  { %122 = vmatprep.mubr.msk.bf16.mxu0 %vm44_vm0, %v19_v4 }
   0x7   :  { %121 = vmatpush3.bf16.msra.mxu0 %v127_v1 }
   0xa   :  { %123 = vmatmul.mubr.msk.bf16.vlgmr.msra.gmra.mrb[0].mxu0 %vm44_vm0, %v20_v7 }
  0xdd   :  { %v124_v9 = vpop.f32.mrb[0].mxu0 }
  0xde   :  { %v94_v10 = vadd.f32 %v124_v9, %v109_v8  ;;  %v85_v11 = vpop.f32.mrb[1].mxu0 }
  0xdf   :  { %v86_v12 = vadd.f32 %v109_v8, %v85_v11  ;;  %v125_v13 = vpop.f32.mrb[2].mxu0 }
  0xe0   :  { %103 = vst.msk [vmem:[%s184_s3 + $0x10] sm:$0xff] %vm100_vm1, %v94_v10  ;;  %v97_v14 = vadd.f32 %v125_v13, %v109_v8  ;;  %v88_v15 = vpop.f32.mrb[3].mxu0 }
  0xe1   :  { %101 = vst.msk [vmem:[%s184_s3] sm:$0xff] %vm100_vm1, %v86_v12  ;;  %v89_v16 = vadd.f32 %v109_v8, %v88_v15 }
  0xe2   :  { %104 = vst.msk [vmem:[%s184_s3 + $0x18] sm:$0xff] %vm100_vm1, %v97_v14 }
  0xe3   :  { %102 = vst.msk [vmem:[%s184_s3 + $0x8] sm:$0xff] %vm100_vm1, %v89_v16 }

// kernel: _lambda_.33
= control target key start
LH: loop header
LB: loop body
LE: loop exit
PB: predicated region body
PF: predicated region fallthrough
CT: control target
= control target key end

     0   :  { %v21_v0 = vlaneseq  ;;  %v4525_v1 = vmov 1983009808   ;;  %v4526_v3 = vmov 0.0   ;;  %vm4527_vm0 = vmmov 0   ;;  %s4528_s14 = smov 96   ;;  %s4529_s23 = smov 64   ;;  %s5458_s0 = inlined_call_operand.vmem [shape: bf16[8,4,96], index: 0, kind: input, shape index: {}]   ;;  %s5459_s1 = inlined_call_operand.vmem [shape: bf16[8,4,32], index: 1, kind: output, shape index: {}]  }
   0x1   :  { %v19_v2 = vunpack.c.l.s4 %v4525_v1  ;;  %3996 = vmatprep.subr.bf16.mxu0 %v4526_v3  ;;  %4002 = vmatprep.subr.bf16.mxu1 %v4526_v3  ;;  %v9_v6 = vld [vmem:[%s5458_s0] sm:$0x3]  ;;  %v11_v7 = vld [vmem:[%s5458_s0 + $0x4] sm:$0x3]  ;;  %v10_v9 = vld [vmem:[%s5458_s0 + $0x2] sm:$0x3] }
   0x2   :  { %v22_v4 = vshrl.u32 %v21_v0, 7  ;;  %3998 = vmatprep.mubr.msk.bf16.mxu0 %vm4527_vm0, %v4526_v3  ;;  %4004 = vmatprep.mubr.msk.bf16.mxu1 %vm4527_vm0, %v4526_v3  ;;  %v12_v10 = vld [vmem:[%s5458_s0 + $0x6] sm:$0x3]  ;;  %v13_v15 = vld [vmem:[%s5458_s0 + $0x8] sm:$0x3]  ;;  %vm27_vm1 = vcmask 64512  }
   0x3   :  { %v20_v5 = vunpack.c.0.s8 %v19_v2  ;;  %v14_v16 = vld [vmem:[%s5458_s0 + $0xa] sm:$0x3]  ;;  %v15_v19 = vld [vmem:[%s5458_s0 + $0xc] sm:$0x3]  ;;  %v16_v20 = vld [vmem:[%s5458_s0 + $0xe] sm:$0x3] }
   0x4   :  { %vm577_vm2 = vcmask 1041408   ;;  %vm474_vm3 = vcmask 27648   ;;  %s4530_s0 = smov 88   ;;  %s4531_s24 = smov 120   ;;  %vm573_vm4 = vcmask 31744   ;;  %vm3749_vm5 = vcmask 130048  }
   0x5   :  { %v23_v8 = vsub.s32 %v20_v5, %v22_v4  ;;  %s4532_s25 = smov 56   ;;  %s4533_s26 = smov 80   ;;  %vm3766_vm6 = vcmask 195584   ;;  %vm3791_vm7 = vcmask 254976  }
   0x6   :  { %s4534_s27 = smov 112   ;;  %s4535_s28 = smov 48  }
   0x7   :  { %v4570_v11 = vrot.slane %v9_v6, %v23_v8  ;;  %v4572_v12 = vrot.slane %v11_v7, %v23_v8  ;;  %v4575_v13 = vrot.slane %v10_v9, %v23_v8  ;;  %v4578_v14 = vrot.slane %v12_v10, %v23_v8  ;;  %s4536_s29 = smov 72   ;;  %s4537_s30 = smov 104  }
   0x8   :  { %v4588_v17 = vrot.slane %v13_v15, %v23_v8  ;;  %v4590_v18 = vrot.slane %v14_v16, %v23_v8  ;;  %v4600_v21 = vrot.slane %v15_v19, %v23_v8  ;;  %v4602_v22 = vrot.slane %v16_v20, %v23_v8  ;;  %s4538_s2 = smov 40   ;;  %s4539_s3 = smov 8  }
   0x9   :  { %25 = vrot.lane.b32.xlu0 %v4570_v11, %s4528_s14  ;;  %138 = vrot.lane.b32.xlu1 %v4572_v12, %s4528_s14  ;;  %s4540_s4 = smov 16   ;;  %s4541_s5 = smov 24  }
   0xd   :  { %82 = vrot.lane.b32.xlu0 %v4575_v13, %s4528_s14  ;;  %194 = vrot.lane.b32.xlu1 %v4578_v14, %s4528_s14 }
  0x11   :  { %250 = vrot.lane.b32.xlu0 %v4588_v17, %s4528_s14  ;;  %306 = vrot.lane.b32.xlu1 %v4590_v18, %s4528_s14 }
  0x15   :  { %362 = vrot.lane.b32.xlu0 %v4600_v21, %s4528_s14  ;;  %418 = vrot.lane.b32.xlu1 %v4602_v22, %s4528_s14 }
  0x19   :  { %571 = vrot.lane.b32.xlu1 %v4570_v11, %s4529_s23  ;;  %621 = vrot.lane.b32.xlu0 %v4575_v13, %s4529_s23 }
  0x1d   :  { %669 = vrot.lane.b32.xlu1 %v4572_v12, %s4529_s23 }
  0x21   :  { %717 = vrot.lane.b32.xlu1 %v4578_v14, %s4529_s23 }
  0x7b   :  { %v26_v23 = vpop.permute.xlu0 %25  ;;  %v139_v25 = vpop.permute.xlu1 %138 }
  0x7c   :  { %v32_v24 = vsel %vm27_vm1, %v26_v23, 0  ;;  %v144_v28 = vsel %vm27_vm1, %v139_v25, 0 }
  0x7d   :  { %3997 = vmatpush3.bf16.xpose.msra.mxu0 %v32_v24 }
  0x7e   :  { %4008 = vmatprep.subr.bf16.mxu0 %v4526_v3 }
  0x7f   :  { %v83_v26 = vpop.permute.xlu0 %82  ;;  %v195_v29 = vpop.permute.xlu1 %194 }
  0x80   :  { %v88_v27 = vsel %vm27_vm1, %v83_v26, 0  ;;  %v200_v30 = vsel %vm27_vm1, %v195_v29, 0 }
  0x81   :  { %4003 = vmatpush3.bf16.xpose.msra.mxu1 %v88_v27 }
  0x82   :  { %4014 = vmatprep.subr.bf16.mxu1 %v4526_v3 }
  0x83   :  { %v251_v31 = vpop.permute.xlu0 %250  ;;  %v307_v33 = vpop.permute.xlu1 %306 }
  0x84   :  { %3999 = vmatmul.mubr.msk.bf16.vlgmr.msra.gmra.mrb[0].mxu0 %vm27_vm1, %v9_v6  ;;  %v256_v32 = vsel %vm27_vm1, %v251_v31, 0  ;;  %v312_v34 = vsel %vm27_vm1, %v307_v33, 0 }
  0x85   :  { %4009 = vmatpush3.bf16.xpose.msra.mxu0 %v144_v28  ;;  %4010 = vmatprep.mubr.msk.bf16.mxu0 %vm4527_vm0, %v4526_v3 }
  0x86   :  { %4020 = vmatprep.subr.bf16.mxu0 %v4526_v3 }
  0x87   :  { %v363_v35 = vpop.permute.xlu0 %362  ;;  %v419_v37 = vpop.permute.xlu1 %418 }
  0x88   :  { %4005 = vmatmul.mubr.msk.bf16.vlgmr.msra.gmra.mrb[0].mxu1 %vm27_vm1, %v10_v9  ;;  %v368_v36 = vsel %vm27_vm1, %v363_v35, 0  ;;  %v424_v38 = vsel %vm27_vm1, %v419_v37, 0 }
  0x89   :  { %4015 = vmatpush3.bf16.xpose.msra.mxu1 %v200_v30  ;;  %4016 = vmatprep.mubr.msk.bf16.mxu1 %vm4527_vm0, %v4526_v3 }
  0x8a   :  { %4026 = vmatprep.subr.bf16.mxu1 %v4526_v3 }
  0x8b   :  { %v572_v39 = vpop.permute.xlu1 %571  ;;  %v622_v40 = vpop.permute.xlu0 %621 }
  0x8c   :  { %4011 = vmatmul.mubr.msk.bf16.vlgmr.msra.gmra.mrb[4].mxu0 %vm27_vm1, %v11_v7  ;;  %v579_v41 = vsel %vm577_vm2, %v572_v39, 0  ;;  %v627_v42 = vsel %vm577_vm2, %v622_v40, 0 }
  0x8d   :  { %4021 = vmatpush3.bf16.xpose.msra.mxu0 %v256_v32  ;;  %4022 = vmatprep.mubr.msk.bf16.mxu0 %vm4527_vm0, %v4526_v3 }
  0x8e   :  { %4032 = vmatprep.subr.bf16.mxu0 %v4526_v3 }
  0x90   :  { %4017 = vmatmul.mubr.msk.bf16.vlgmr.msra.gmra.mrb[4].mxu1 %vm27_vm1, %v12_v10 }
  0x91   :  { %4027 = vmatpush3.bf16.xpose.msra.mxu1 %v312_v34  ;;  %4028 = vmatprep.mubr.msk.bf16.mxu1 %vm4527_vm0, %v4526_v3 }
  0x92   :  { %4038 = vmatprep.subr.bf16.mxu1 %v4526_v3 }
  0x94   :  { %4023 = vmatmul.mubr.msk.bf16.vlgmr.msra.gmra.mrb[8].mxu0 %vm27_vm1, %v13_v15 }
  0x95   :  { %4033 = vmatpush3.bf16.xpose.msra.mxu0 %v368_v36  ;;  %4034 = vmatprep.mubr.msk.bf16.mxu0 %vm4527_vm0, %v4526_v3  ;;  %v4673_v36 = vpop.permute.xlu1 %669 }
  0x96   :  { %4044 = vmatprep.subr.bf16.mxu0 %v4526_v3 }
  0x98   :  { %4029 = vmatmul.mubr.msk.bf16.vlgmr.msra.gmra.mrb[8].mxu1 %vm27_vm1, %v14_v16 }
  0x99   :  { %4039 = vmatpush3.bf16.xpose.msra.mxu1 %v424_v38  ;;  %4040 = vmatprep.mubr.msk.bf16.mxu1 %vm4527_vm0, %v4526_v3  ;;  %v4675_v37 = vpop.permute.xlu1 %717 }
  0x9a   :  { %4050 = vmatprep.subr.bf16.mxu1 %v4526_v3 }
  0x9c   :  { %4035 = vmatmul.mubr.msk.bf16.vlgmr.msra.gmra.mrb[12].mxu0 %vm27_vm1, %v15_v19 }
  0x9d   :  { %4046 = vmatprep.mubr.msk.bf16.mxu0 %vm4527_vm0, %v4526_v3  ;;  %4045 = vmatpush3.bf16.msra.mxu0 %v579_v41 }
  0x9e   :  { %4056 = vmatprep.subr.bf16.mxu0 %v4526_v3 }
  0xa0   :  { %4041 = vmatmul.mubr.msk.bf16.vlgmr.msra.gmra.mrb[12].mxu1 %vm27_vm1, %v16_v20 }
  0xa1   :  { %4052 = vmatprep.mubr.msk.bf16.mxu1 %vm4527_vm0, %v4526_v3  ;;  %4051 = vmatpush3.bf16.msra.mxu1 %v627_v42 }
  0xa2   :  { %4062 = vmatprep.subr.bf16.mxu1 %v4526_v3 }
 0x157   :  { %v68_v43 = vpop.f32.mrb[0].mxu0 }
 0x158   :  { %v466_v44 = vmul.f32 0.35355338, %v68_v43  ;;  %v4000_v45 = vpop.f32.mrb[1].mxu0 }
 0x159   :  { %v71_v46 = vpop.f32.mrb[2].mxu0 }
 0x15a   :  { %v4001_v47 = vpop.f32.mrb[3].mxu0  ;;  %v475_v48 = vsel %vm474_vm3, %v466_v44, -inf }
 0x15b   :  { %476 = vmax.xlane.f32.xlu0 %v475_v48  ;;  %v124_v49 = vpop.f32.mrb[0].mxu1 }
 0x15c   :  { %v467_v50 = vmul.f32 0.35355338, %v124_v49  ;;  %v4006_v51 = vpop.f32.mrb[1].mxu1 }
 0x15d   :  { %v127_v52 = vpop.f32.mrb[2].mxu1 }
 0x15e   :  { %v4007_v53 = vpop.f32.mrb[3].mxu1  ;;  %v478_v54 = vsel %vm474_vm3, %v467_v50, -inf }
 0x15f   :  { %v180_v55 = vpop.f32.mrb[4].mxu0  ;;  %479 = vmax.xlane.f32.xlu1 %v478_v54 }
 0x160   :  { %v468_v56 = vmul.f32 0.35355338, %v180_v55  ;;  %v4012_v57 = vpop.f32.mrb[5].mxu0 }
 0x161   :  { %v183_v58 = vpop.f32.mrb[6].mxu0 }
 0x162   :  { %v4013_v59 = vpop.f32.mrb[7].mxu0  ;;  %v481_v60 = vsel %vm474_vm3, %v468_v56, -inf }
 0x163   :  { %482 = vmax.xlane.f32.xlu0 %v481_v60  ;;  %v236_v61 = vpop.f32.mrb[4].mxu1 }
 0x164   :  { %v469_v62 = vmul.f32 0.35355338, %v236_v61  ;;  %v4018_v63 = vpop.f32.mrb[5].mxu1 }
 0x165   :  { %v239_v0 = vpop.f32.mrb[6].mxu1 }
 0x166   :  { %v4019_v1 = vpop.f32.mrb[7].mxu1  ;;  %v484_v2 = vsel %vm474_vm3, %v469_v62, -inf }
 0x167   :  { %485 = vmax.xlane.f32.xlu0 %v484_v2  ;;  %v292_v4 = vpop.f32.mrb[8].mxu0 }
 0x168   :  { %v470_v5 = vmul.f32 0.35355338, %v292_v4  ;;  %v4024_v6 = vpop.f32.mrb[9].mxu0 }
 0x169   :  { %v295_v7 = vpop.f32.mrb[10].mxu0 }
 0x16a   :  { %v4025_v8 = vpop.f32.mrb[11].mxu0  ;;  %v487_v9 = vsel %vm474_vm3, %v470_v5, -inf }
 0x16b   :  { %v348_v10 = vpop.f32.mrb[8].mxu1  ;;  %488 = vmax.xlane.f32.xlu1 %v487_v9 }
 0x16c   :  { %v471_v15 = vmul.f32 0.35355338, %v348_v10  ;;  %v4030_v16 = vpop.f32.mrb[9].mxu1 }
 0x16d   :  { %v351_v19 = vpop.f32.mrb[10].mxu1 }
 0x16e   :  { %v4031_v20 = vpop.f32.mrb[11].mxu1  ;;  %v490_v23 = vsel %vm474_vm3, %v471_v15, -inf }
 0x16f   :  { %491 = vmax.xlane.f32.xlu0 %v490_v23  ;;  %v404_v24 = vpop.f32.mrb[12].mxu0 }
 0x170   :  { %v4664_v25 = vmul.f32 0.35355338, %v404_v24  ;;  %v4036_v26 = vpop.f32.mrb[13].mxu0 }
 0x171   :  { %v407_v27 = vpop.f32.mrb[14].mxu0 }
 0x172   :  { %v493_v28 = vsel %vm474_vm3, %v4664_v25, -inf  ;;  %v4037_v29 = vpop.f32.mrb[15].mxu0 }
 0x173   :  { %v460_v30 = vpop.f32.mrb[12].mxu1  ;;  %494 = vmax.xlane.f32.xlu1 %v493_v28 }
 0x174   :  { %v473_v31 = vmul.f32 0.35355338, %v460_v30  ;;  %v4042_v32 = vpop.f32.mrb[13].mxu1 }
 0x175   :  { %v463_v33 = vpop.f32.mrb[14].mxu1 }
 0x176   :  { %v496_v34 = vsel %vm474_vm3, %v473_v31, -inf  ;;  %v4043_v35 = vpop.f32.mrb[15].mxu1  ;;  %v675_v33 = vsel %vm577_vm2, %v4673_v36, 0 }
 0x177   :  { %497 = vmax.xlane.f32.xlu0 %v496_v34 }
 0x184   :  { %813 = vrot.lane.b32.xlu1 %v4590_v18, %s4529_s23 }
 0x18d   :  { %765 = vrot.lane.b32.xlu0 %v4588_v17, %s4529_s23 }
 0x1e8   :  { %v477_v38 = vpop.xlane.xlu0 %476 }
 0x1e9   :  { %v499_v39 = vsub.f32 %v466_v44, %v477_v38 }
 0x1eb   :  { %v507_v40 = vmul.f32 1.442695, %v499_v39 }
 0x1ec   :  { %v480_v41 = vpop.xlane.xlu1 %479 }
 0x1ed   :  { %4397 = vpow2.f32 %v507_v40  ;;  %v500_v42 = vsub.f32 %v467_v50, %v480_v41  ;;  %v723_v40 = vsel %vm577_vm2, %v4675_v37, 0 }
 0x1ef   :  { %v509_v43 = vmul.f32 1.442695, %v500_v42 }
 0x1f0   :  { %v483_v45 = vpop.xlane.xlu0 %482 }
 0x1f1   :  { %4399 = vpow2.f32 %v509_v43  ;;  %v501_v46 = vsub.f32 %v468_v56, %v483_v45 }
 0x1f3   :  { %v511_v47 = vmul.f32 1.442695, %v501_v46 }
 0x1f4   :  { %v486_v48 = vpop.xlane.xlu0 %485 }
 0x1f5   :  { %4401 = vpow2.f32 %v511_v47  ;;  %v502_v49 = vsub.f32 %v469_v62, %v486_v48 }
 0x1f7   :  { %v4677_v51 = vpop.eup %4397  ;;  %v513_v52 = vmul.f32 1.442695, %v502_v49 }
 0x1f8   :  { %v489_v53 = vpop.xlane.xlu1 %488  ;;  %v523_v54 = vsel %vm474_vm3, %v4677_v51, 0.0 }
 0x1f9   :  { %4403 = vpow2.f32 %v513_v52  ;;  %v503_v44 = vsub.f32 %v470_v5, %v489_v53  ;;  %524 = vadd.xlane.f32.xlu1 %v523_v54 }
 0x1fb   :  { %v4681_v55 = vpop.eup %4399  ;;  %v515_v50 = vmul.f32 1.442695, %v503_v44 }
 0x1fc   :  { %v492_v57 = vpop.xlane.xlu0 %491  ;;  %v526_v56 = vsel %vm474_vm3, %v4681_v55, 0.0 }
 0x1fd   :  { %4405 = vpow2.f32 %v515_v50  ;;  %v504_v58 = vsub.f32 %v471_v15, %v492_v57  ;;  %527 = vadd.xlane.f32.xlu0 %v526_v56 }
 0x1ff   :  { %v4685_v59 = vpop.eup %4401  ;;  %v517_v60 = vmul.f32 1.442695, %v504_v58 }
 0x200   :  { %v529_v61 = vsel %vm474_vm3, %v4685_v59, 0.0  ;;  %v495_v5 = vpop.xlane.xlu1 %494 }
 0x201   :  { %4407 = vpow2.f32 %v517_v60  ;;  %530 = vadd.xlane.f32.xlu1 %v529_v61  ;;  %v505_v6 = vsub.f32 %v4664_v25, %v495_v5 }
 0x203   :  { %v4689_v62 = vpop.eup %4403  ;;  %v519_v8 = vmul.f32 1.442695, %v505_v6 }
 0x204   :  { %v532_v63 = vsel %vm474_vm3, %v4689_v62, 0.0  ;;  %v498_v7 = vpop.xlane.xlu0 %497  ;;  %v814_v23 = vpop.permute.xlu1 %813 }
 0x205   :  { %533 = vadd.xlane.f32.xlu0 %v532_v63  ;;  %v506_v9 = vsub.f32 %v473_v31, %v498_v7  ;;  %4409 = vpow2.f32 %v519_v8  ;;  %v819_v48 = vsel %vm577_vm2, %v814_v23, 0 }
 0x207   :  { %v4693_v0 = vpop.eup %4405  ;;  %v521_v10 = vmul.f32 1.442695, %v506_v9 }
 0x208   :  { %v535_v1 = vsel %vm474_vm3, %v4693_v0, 0.0  ;;  %v766_v24 = vpop.permute.xlu0 %765 }
 0x209   :  { %536 = vadd.xlane.f32.xlu1 %v535_v1  ;;  %4411 = vpow2.f32 %v521_v10  ;;  %v771_v45 = vsel %vm577_vm2, %v766_v24, 0 }
 0x20b   :  { %v4697_v2 = vpop.eup %4407 }
 0x20c   :  { %v538_v4 = vsel %vm474_vm3, %v4697_v2, 0.0 }
 0x20d   :  { %539 = vadd.xlane.f32.xlu0 %v538_v4 }
 0x20f   :  { %v4706_v15 = vpop.eup %4409 }
 0x210   :  { %v541_v16 = vsel %vm474_vm3, %v4706_v15, 0.0 }
 0x213   :  { %v4710_v19 = vpop.eup %4411 }
 0x214   :  { %v544_v20 = vsel %vm474_vm3, %v4710_v19, 0.0 }
 0x21a   :  { %909 = vrot.lane.b32.xlu1 %v4602_v22, %s4529_s23 }
 0x223   :  { %861 = vrot.lane.b32.xlu0 %v4600_v21, %s4529_s23 }
 0x23e   :  { %542 = vadd.xlane.f32.xlu1 %v541_v16 }
 0x242   :  { %545 = vadd.xlane.f32.xlu0 %v544_v20 }
 0x24f   :  { %1017 = vrot.lane.b32.xlu1 %v4575_v13, %s4530_s0 }
 0x253   :  { %1015 = vrot.lane.b32.xlu1 %v4575_v13, %s4531_s24 }
 0x257   :  { %1117 = vrot.lane.b32.xlu1 %v4578_v14, %s4530_s0 }
 0x258   :  { %967 = vrot.lane.b32.xlu0 %v4570_v11, %s4530_s0 }
 0x25b   :  { %1115 = vrot.lane.b32.xlu1 %v4578_v14, %s4531_s24 }
 0x25c   :  { %965 = vrot.lane.b32.xlu0 %v4570_v11, %s4531_s24 }
 0x25f   :  { %1217 = vrot.lane.b32.xlu1 %v4590_v18, %s4530_s0 }
 0x260   :  { %1067 = vrot.lane.b32.xlu0 %v4572_v12, %s4530_s0 }
 0x263   :  { %1215 = vrot.lane.b32.xlu1 %v4590_v18, %s4531_s24 }
 0x264   :  { %1065 = vrot.lane.b32.xlu0 %v4572_v12, %s4531_s24 }
 0x267   :  { %1317 = vrot.lane.b32.xlu1 %v4602_v22, %s4530_s0 }
 0x268   :  { %1167 = vrot.lane.b32.xlu0 %v4588_v17, %s4530_s0 }
 0x26b   :  { %1315 = vrot.lane.b32.xlu1 %v4602_v22, %s4531_s24 }
 0x26c   :  { %1165 = vrot.lane.b32.xlu0 %v4588_v17, %s4531_s24 }
 0x26f   :  { %1469 = vrot.lane.b32.xlu1 %v4570_v11, %s4532_s25 }
 0x270   :  { %1267 = vrot.lane.b32.xlu0 %v4600_v21, %s4530_s0 }
 0x273   :  { %1565 = vrot.lane.b32.xlu1 %v4572_v12, %s4532_s25 }
 0x274   :  { %1265 = vrot.lane.b32.xlu0 %v4600_v21, %s4531_s24 }
 0x277   :  { %1613 = vrot.lane.b32.xlu1 %v4578_v14, %s4532_s25 }
 0x278   :  { %1517 = vrot.lane.b32.xlu0 %v4575_v13, %s4532_s25 }
 0x286   :  { %v525_v25 = vpop.xlane.xlu1 %524 }
 0x287   :  { %4413 = vrcp.f32 %v525_v25 }
 0x28a   :  { %v528_v26 = vpop.xlane.xlu0 %527 }
 0x28b   :  { %4415 = vrcp.f32 %v528_v26 }
 0x28e   :  { %v531_v27 = vpop.xlane.xlu1 %530 }
 0x28f   :  { %4417 = vrcp.f32 %v531_v27 }
 0x291   :  { %v4414_v28 = vpop.eup %4413 }
 0x292   :  { %v534_v29 = vpop.xlane.xlu0 %533  ;;  %v555_v30 = vmul.f32 %v4414_v28, %v4677_v51 }
 0x293   :  { %4419 = vrcp.f32 %v534_v29 }
 0x294   :  { %v563_v31 = vpack.c.bf16 %v555_v30, %v555_v30 }
 0x295   :  { %v4416_v32 = vpop.eup %4415 }
 0x296   :  { %4047 = vmatmul.mubr.msk.bf16.vlgmr.msra.gmra.mrb[16].mxu0 %vm573_vm4, %v563_v31  ;;  %v537_v34 = vpop.xlane.xlu1 %536  ;;  %v556_v35 = vmul.f32 %v4416_v32, %v4681_v55 }
 0x297   :  { %4057 = vmatpush3.bf16.msra.mxu0 %v675_v33  ;;  %4421 = vrcp.f32 %v537_v34  ;;  %4058 = vmatprep.mubr.msk.bf16.mxu0 %vm4527_vm0, %v4526_v3 }
 0x298   :  { %v564_v38 = vpack.c.bf16 %v556_v35, %v556_v35  ;;  %4068 = vmatprep.subr.bf16.mxu0 %v4526_v3 }
 0x299   :  { %v4418_v39 = vpop.eup %4417 }
 0x29a   :  { %4053 = vmatmul.mubr.msk.bf16.vlgmr.msra.gmra.mrb[16].mxu1 %vm573_vm4, %v564_v38  ;;  %v540_v36 = vpop.xlane.xlu0 %539  ;;  %v557_v41 = vmul.f32 %v4418_v39, %v4685_v59  ;;  %v910_v55 = vpop.permute.xlu1 %909 }
 0x29b   :  { %4063 = vmatpush3.bf16.msra.mxu1 %v723_v40  ;;  %4423 = vrcp.f32 %v540_v36  ;;  %4064 = vmatprep.mubr.msk.bf16.mxu1 %vm4527_vm0, %v4526_v3  ;;  %v915_v57 = vsel %vm577_vm2, %v910_v55, 0 }
 0x29c   :  { %v565_v42 = vpack.c.bf16 %v557_v41, %v557_v41  ;;  %4074 = vmatprep.subr.bf16.mxu1 %v4526_v3 }
 0x29d   :  { %v4420_v43 = vpop.eup %4419 }
 0x29e   :  { %4059 = vmatmul.mubr.msk.bf16.vlgmr.msra.gmra.mrb[20].mxu0 %vm573_vm4, %v565_v42  ;;  %v558_v37 = vmul.f32 %v4420_v43, %v4689_v62  ;;  %v862_v51 = vpop.permute.xlu0 %861 }
 0x29f   :  { %4069 = vmatpush3.bf16.msra.mxu0 %v771_v45  ;;  %4070 = vmatprep.mubr.msk.bf16.mxu0 %vm4527_vm0, %v4526_v3  ;;  %v867_v54 = vsel %vm577_vm2, %v862_v51, 0 }
 0x2a0   :  { %v566_v46 = vpack.c.bf16 %v558_v37, %v558_v37  ;;  %4080 = vmatprep.subr.bf16.mxu0 %v4526_v3 }
 0x2a1   :  { %v4422_v47 = vpop.eup %4421 }
 0x2a2   :  { %4065 = vmatmul.mubr.msk.bf16.vlgmr.msra.gmra.mrb[20].mxu1 %vm573_vm4, %v566_v46  ;;  %v559_v49 = vmul.f32 %v4422_v47, %v4693_v0 }
 0x2a3   :  { %4075 = vmatpush3.bf16.msra.mxu1 %v819_v48  ;;  %4076 = vmatprep.mubr.msk.bf16.mxu1 %vm4527_vm0, %v4526_v3 }
 0x2a4   :  { %v567_v52 = vpack.c.bf16 %v559_v49, %v559_v49  ;;  %4086 = vmatprep.subr.bf16.mxu1 %v4526_v3 }
 0x2a5   :  { %v4424_v53 = vpop.eup %4423 }
 0x2a6   :  { %4071 = vmatmul.mubr.msk.bf16.vlgmr.msra.gmra.mrb[24].mxu0 %vm573_vm4, %v567_v52  ;;  %v560_v44 = vmul.f32 %v4424_v53, %v4697_v2 }
 0x2a7   :  { %4081 = vmatpush3.bf16.msra.mxu0 %v867_v54  ;;  %4082 = vmatprep.mubr.msk.bf16.mxu0 %vm4527_vm0, %v4526_v3 }
 0x2a8   :  { %v568_v50 = vpack.c.bf16 %v560_v44, %v560_v44  ;;  %4092 = vmatprep.subr.bf16.mxu0 %v4526_v3 }
 0x2aa   :  { %4077 = vmatmul.mubr.msk.bf16.vlgmr.msra.gmra.mrb[24].mxu1 %vm573_vm4, %v568_v50 }
 0x2ab   :  { %4087 = vmatpush3.bf16.msra.mxu1 %v915_v57  ;;  %4088 = vmatprep.mubr.msk.bf16.mxu1 %vm4527_vm0, %v4526_v3 }
 0x2ac   :  { %4098 = vmatprep.subr.bf16.mxu1 %v4526_v3 }
 0x2cb   :  { %v543_v56 = vpop.xlane.xlu1 %542 }
 0x2cc   :  { %4425 = vrcp.f32 %v543_v56 }
 0x2cf   :  { %v546_v58 = vpop.xlane.xlu0 %545  ;;  %v1018_v59 = vpop.permute.xlu1 %1017 }
 0x2d0   :  { %4427 = vrcp.f32 %v546_v58  ;;  %v1023_v8 = vsel %vm27_vm1, %v1018_v59, 0 }
 0x2d3   :  { %v968_v60 = vpop.permute.xlu0 %967  ;;  %v1016_v61 = vpop.permute.xlu1 %1015 }
 0x2d4   :  { %v973_v1 = vsel %vm27_vm1, %v968_v60, 0 }
 0x2d6   :  { %v4426_v62 = vpop.eup %4425 }
 0x2d7   :  { %v561_v63 = vmul.f32 %v4426_v62, %v4706_v15  ;;  %v966_v0 = vpop.permute.xlu0 %965  ;;  %v1118_v5 = vpop.permute.xlu1 %1117 }
 0x2d8   :  { %v1123_v20 = vsel %vm27_vm1, %v1118_v5, 0 }
 0x2d9   :  { %v569_v2 = vpack.c.bf16 %v561_v63, %v561_v63 }
 0x2da   :  { %v4428_v4 = vpop.eup %4427 }
 0x2db   :  { %4083 = vmatmul.mubr.msk.bf16.vlgmr.msra.gmra.mrb[28].mxu0 %vm573_vm4, %v569_v2  ;;  %v562_v6 = vmul.f32 %v4428_v4, %v4710_v19  ;;  %v1068_v7 = vpop.permute.xlu0 %1067  ;;  %v1116_v15 = vpop.permute.xlu1 %1115 }
 0x2dc   :  { %4093 = vmatpush3.bf16.xpose.msra.mxu0 %v973_v1  ;;  %4094 = vmatprep.mubr.msk.bf16.mxu0 %vm4527_vm0, %v4526_v3  ;;  %v1073_v16 = vsel %vm27_vm1, %v1068_v7, 0 }
 0x2dd   :  { %v570_v9 = vpack.c.bf16 %v562_v6, %v562_v6  ;;  %4104 = vmatprep.subr.bf16.mxu0 %v4526_v3 }
 0x2df   :  { %4089 = vmatmul.mubr.msk.bf16.vlgmr.msra.gmra.mrb[28].mxu1 %vm573_vm4, %v570_v9  ;;  %v1066_v10 = vpop.permute.xlu0 %1065  ;;  %v1218_v23 = vpop.permute.xlu1 %1217 }
 0x2e0   :  { %4099 = vmatpush3.bf16.xpose.msra.mxu1 %v1023_v8  ;;  %4100 = vmatprep.mubr.msk.bf16.mxu1 %vm4527_vm0, %v4526_v3  ;;  %v1223_v27 = vsel %vm27_vm1, %v1218_v23, 0 }
 0x2e1   :  { %4110 = vmatprep.subr.bf16.mxu1 %v4526_v3 }
 0x2e3   :  { %4095 = vmatmul.mubr.msk.bf16.vlgmr.msra.gmra.mrb[32].mxu0 %vm27_vm1, %v966_v0  ;;  %v1168_v19 = vpop.permute.xlu0 %1167  ;;  %v1216_v26 = vpop.permute.xlu1 %1215 }
 0x2e4   :  { %4105 = vmatpush3.bf16.xpose.msra.mxu0 %v1073_v16  ;;  %4106 = vmatprep.mubr.msk.bf16.mxu0 %vm4527_vm0, %v4526_v3  ;;  %v1173_v25 = vsel %vm27_vm1, %v1168_v19, 0 }
 0x2e5   :  { %4116 = vmatprep.subr.bf16.mxu0 %v4526_v3 }
 0x2e7   :  { %4101 = vmatmul.mubr.msk.bf16.vlgmr.msra.gmra.mrb[32].mxu1 %vm27_vm1, %v1016_v61  ;;  %v1166_v24 = vpop.permute.xlu0 %1165  ;;  %v1318_v30 = vpop.permute.xlu1 %1317 }
 0x2e8   :  { %4111 = vmatpush3.bf16.xpose.msra.mxu1 %v1123_v20  ;;  %4112 = vmatprep.mubr.msk.bf16.mxu1 %vm4527_vm0, %v4526_v3  ;;  %v1323_v31 = vsel %vm27_vm1, %v1318_v30, 0 }
 0x2e9   :  { %4122 = vmatprep.subr.bf16.mxu1 %v4526_v3 }
 0x2eb   :  { %4107 = vmatmul.mubr.msk.bf16.vlgmr.msra.gmra.mrb[36].mxu0 %vm27_vm1, %v1066_v10  ;;  %v1268_v28 = vpop.permute.xlu0 %1267  ;;  %v1316_v33 = vpop.permute.xlu1 %1315 }
 0x2ec   :  { %4117 = vmatpush3.bf16.xpose.msra.mxu0 %v1173_v25  ;;  %4118 = vmatprep.mubr.msk.bf16.mxu0 %vm4527_vm0, %v4526_v3  ;;  %v1273_v29 = vsel %vm27_vm1, %v1268_v28, 0 }
 0x2ed   :  { %4128 = vmatprep.subr.bf16.mxu0 %v4526_v3 }
 0x2ef   :  { %4113 = vmatmul.mubr.msk.bf16.vlgmr.msra.gmra.mrb[36].mxu1 %vm27_vm1, %v1116_v15  ;;  %v1266_v32 = vpop.permute.xlu0 %1265  ;;  %v1470_v46 = vpop.permute.xlu1 %1469 }
 0x2f0   :  { %4123 = vmatpush3.bf16.xpose.msra.mxu1 %v1223_v27  ;;  %4124 = vmatprep.mubr.msk.bf16.mxu1 %vm4527_vm0, %v4526_v3  ;;  %v1475_v48 = vsel %vm577_vm2, %v1470_v46, 0 }
 0x2f1   :  { %4134 = vmatprep.subr.bf16.mxu1 %v4526_v3 }
 0x2f3   :  { %4119 = vmatmul.mubr.msk.bf16.vlgmr.msra.gmra.mrb[40].mxu0 %vm27_vm1, %v1166_v24  ;;  %v1518_v49 = vpop.permute.xlu0 %1517 }
 0x2f4   :  { %4129 = vmatpush3.bf16.xpose.msra.mxu0 %v1273_v29  ;;  %4130 = vmatprep.mubr.msk.bf16.mxu0 %vm4527_vm0, %v4526_v3  ;;  %v1523_v52 = vsel %vm577_vm2, %v1518_v49, 0 }
 0x2f5   :  { %4140 = vmatprep.subr.bf16.mxu0 %v4526_v3 }
 0x2f7   :  { %4125 = vmatmul.mubr.msk.bf16.vlgmr.msra.gmra.mrb[40].mxu1 %vm27_vm1, %v1216_v26 }
 0x2f8   :  { %4135 = vmatpush3.bf16.xpose.msra.mxu1 %v1323_v31  ;;  %4136 = vmatprep.mubr.msk.bf16.mxu1 %vm4527_vm0, %v4526_v3 }
 0x2f9   :  { %4146 = vmatprep.subr.bf16.mxu1 %v4526_v3 }
 0x2fb   :  { %4131 = vmatmul.mubr.msk.bf16.vlgmr.msra.gmra.mrb[44].mxu0 %vm27_vm1, %v1266_v32 }
 0x2fc   :  { %4142 = vmatprep.mubr.msk.bf16.mxu0 %vm4527_vm0, %v4526_v3  ;;  %4141 = vmatpush3.bf16.msra.mxu0 %v1475_v48 }
 0x2fd   :  { %4152 = vmatprep.subr.bf16.mxu0 %v4526_v3 }
 0x2ff   :  { %4137 = vmatmul.mubr.msk.bf16.vlgmr.msra.gmra.mrb[44].mxu1 %vm27_vm1, %v1316_v33 }
 0x300   :  { %4148 = vmatprep.mubr.msk.bf16.mxu1 %vm4527_vm0, %v4526_v3  ;;  %4147 = vmatpush3.bf16.msra.mxu1 %v1523_v52 }
 0x301   :  { %4158 = vmatprep.subr.bf16.mxu1 %v4526_v3 }
 0x369   :  { %v4824_v34 = vpop.f32.mrb[16].mxu0 }
 0x36a   :  { %v4048_v35 = vpop.f32.mrb[17].mxu0 }
 0x36b   :  { %v618_v38 = vpop.f32.mrb[18].mxu0 }
 0x36c   :  { %v4049_v39 = vpop.f32.mrb[19].mxu0 }
 0x36d   :  { %v4826_v40 = vpop.f32.mrb[16].mxu1 }
 0x36e   :  { %v4054_v36 = vpop.f32.mrb[17].mxu1 }
 0x36f   :  { %v666_v41 = vpop.f32.mrb[18].mxu1 }
 0x370   :  { %v4055_v42 = vpop.f32.mrb[19].mxu1 }
 0x371   :  { %v4828_v43 = vpop.f32.mrb[20].mxu0 }
 0x372   :  { %v4060_v45 = vpop.f32.mrb[21].mxu0 }
 0x373   :  { %v714_v37 = vpop.f32.mrb[22].mxu0 }
 0x374   :  { %v4061_v47 = vpop.f32.mrb[23].mxu0 }
 0x375   :  { %v4831_v51 = vpop.f32.mrb[20].mxu1 }
 0x376   :  { %v4066_v53 = vpop.f32.mrb[21].mxu1 }
 0x377   :  { %v762_v54 = vpop.f32.mrb[22].mxu1 }
 0x378   :  { %v4067_v44 = vpop.f32.mrb[23].mxu1 }
 0x379   :  { %v4836_v55 = vpop.f32.mrb[24].mxu0 }
 0x37a   :  { %v4072_v50 = vpop.f32.mrb[25].mxu0 }
 0x37b   :  { %v810_v57 = vpop.f32.mrb[26].mxu0 }
 0x37c   :  { %v4073_v56 = vpop.f32.mrb[27].mxu0 }
 0x37d   :  { %v4838_v58 = vpop.f32.mrb[24].mxu1 }
 0x37e   :  { %v4078_v59 = vpop.f32.mrb[25].mxu1 }
 0x37f   :  { %v858_v60 = vpop.f32.mrb[26].mxu1 }
 0x380   :  { %v4079_v61 = vpop.f32.mrb[27].mxu1 }
 0x3ae   :  { %v4840_v62 = vpop.f32.mrb[28].mxu0 }
 0x3af   :  { %v4084_v63 = vpop.f32.mrb[29].mxu0 }
 0x3b0   :  { %v906_v0 = vpop.f32.mrb[30].mxu0 }
 0x3b1   :  { %v4085_v1 = vpop.f32.mrb[31].mxu0 }
 0x3b2   :  { %v4842_v2 = vpop.f32.mrb[28].mxu1 }
 0x3b3   :  { %v4090_v4 = vpop.f32.mrb[29].mxu1 }
 0x3b4   :  { %v954_v5 = vpop.f32.mrb[30].mxu1 }
 0x3b5   :  { %v4091_v6 = vpop.f32.mrb[31].mxu1 }
 0x3b6   :  { %v1009_v7 = vpop.f32.mrb[32].mxu0 }
 0x3b7   :  { %v1365_v8 = vmul.f32 0.35355338, %v1009_v7  ;;  %v4096_v9 = vpop.f32.mrb[33].mxu0 }
 0x3b8   :  { %v1012_v10 = vpop.f32.mrb[34].mxu0  ;;  %v4859_v9 = vpop.permute.xlu1 %1565 }
 0x3b9   :  { %v4097_v15 = vpop.f32.mrb[35].mxu0  ;;  %v1373_v16 = vsel %vm474_vm3, %v1365_v8, -inf }
 0x3ba   :  { %v1059_v19 = vpop.f32.mrb[32].mxu1  ;;  %1374 = vmax.xlane.f32.xlu0 %v1373_v16 }
 0x3bb   :  { %v1366_v20 = vmul.f32 0.35355338, %v1059_v19  ;;  %v4102_v23 = vpop.f32.mrb[33].mxu1 }
 0x3bc   :  { %v1062_v24 = vpop.f32.mrb[34].mxu1  ;;  %v4861_v10 = vpop.permute.xlu1 %1613 }
 0x3bd   :  { %v4103_v25 = vpop.f32.mrb[35].mxu1  ;;  %v1376_v26 = vsel %vm474_vm3, %v1366_v20, -inf }
 0x3be   :  { %1377 = vmax.xlane.f32.xlu1 %v1376_v26  ;;  %v1109_v27 = vpop.f32.mrb[36].mxu0 }
 0x3bf   :  { %v1367_v28 = vmul.f32 0.35355338, %v1109_v27  ;;  %v4108_v29 = vpop.f32.mrb[37].mxu0 }
 0x3c0   :  { %v1112_v30 = vpop.f32.mrb[38].mxu0 }
 0x3c1   :  { %v4109_v31 = vpop.f32.mrb[39].mxu0  ;;  %v1379_v32 = vsel %vm474_vm3, %v1367_v28, -inf }
 0x3c2   :  { %v1159_v33 = vpop.f32.mrb[36].mxu1  ;;  %1380 = vmax.xlane.f32.xlu0 %v1379_v32 }
 0x3c3   :  { %v1368_v35 = vmul.f32 0.35355338, %v1159_v33  ;;  %v4114_v38 = vpop.f32.mrb[37].mxu1 }
 0x3c4   :  { %v1162_v39 = vpop.f32.mrb[38].mxu1 }
 0x3c5   :  { %v4115_v36 = vpop.f32.mrb[39].mxu1  ;;  %v1382_v41 = vsel %vm474_vm3, %v1368_v35, -inf }
 0x3c6   :  { %1383 = vmax.xlane.f32.xlu0 %v1382_v41  ;;  %v1209_v42 = vpop.f32.mrb[40].mxu0 }
 0x3c7   :  { %v1369_v45 = vmul.f32 0.35355338, %v1209_v42  ;;  %v4120_v37 = vpop.f32.mrb[41].mxu0 }
 0x3c8   :  { %v1212_v46 = vpop.f32.mrb[42].mxu0 }
 0x3c9   :  { %v4121_v47 = vpop.f32.mrb[43].mxu0  ;;  %v1385_v48 = vsel %vm474_vm3, %v1369_v45, -inf }
 0x3ca   :  { %v1259_v49 = vpop.f32.mrb[40].mxu1  ;;  %1386 = vmax.xlane.f32.xlu1 %v1385_v48 }
 0x3cb   :  { %v1370_v52 = vmul.f32 0.35355338, %v1259_v49  ;;  %v4126_v53 = vpop.f32.mrb[41].mxu1 }
 0x3cc   :  { %v1262_v54 = vpop.f32.mrb[42].mxu1 }
 0x3cd   :  { %v4127_v44 = vpop.f32.mrb[43].mxu1  ;;  %v1388_v50 = vsel %vm474_vm3, %v1370_v52, -inf }
 0x3ce   :  { %1389 = vmax.xlane.f32.xlu0 %v1388_v50  ;;  %v1309_v57 = vpop.f32.mrb[44].mxu0 }
 0x3cf   :  { %v4850_v56 = vmul.f32 0.35355338, %v1309_v57  ;;  %v4132_v59 = vpop.f32.mrb[45].mxu0 }
 0x3d0   :  { %v1312_v60 = vpop.f32.mrb[46].mxu0 }
 0x3d1   :  { %v1391_v61 = vsel %vm474_vm3, %v4850_v56, -inf  ;;  %v4133_v63 = vpop.f32.mrb[47].mxu0 }
 0x3d2   :  { %v1359_v0 = vpop.f32.mrb[44].mxu1  ;;  %1392 = vmax.xlane.f32.xlu1 %v1391_v61 }
 0x3d3   :  { %v1372_v1 = vmul.f32 0.35355338, %v1359_v0  ;;  %v4138_v4 = vpop.f32.mrb[45].mxu1 }
 0x3d4   :  { %v1362_v5 = vpop.f32.mrb[46].mxu1 }
 0x3d5   :  { %v1394_v6 = vsel %vm474_vm3, %v1372_v1, -inf  ;;  %v4139_v7 = vpop.f32.mrb[47].mxu1 }
 0x3d6   :  { %1395 = vmax.xlane.f32.xlu0 %v1394_v6 }
 0x3e3   :  { %1709 = vrot.lane.b32.xlu1 %v4590_v18, %s4532_s25 }
 0x3ec   :  { %1661 = vrot.lane.b32.xlu0 %v4588_v17, %s4532_s25 }
 0x447   :  { %v1375_v15 = vpop.xlane.xlu0 %1374 }
 0x448   :  { %v1397_v16 = vsub.f32 %v1365_v8, %v1375_v15 }
 0x44a   :  { %v1405_v19 = vmul.f32 1.442695, %v1397_v16 }
 0x44b   :  { %v1378_v23 = vpop.xlane.xlu1 %1377 }
 0x44c   :  { %4429 = vpow2.f32 %v1405_v19  ;;  %v1398_v24 = vsub.f32 %v1366_v20, %v1378_v23 }
 0x44e   :  { %v1407_v25 = vmul.f32 1.442695, %v1398_v24 }
 0x44f   :  { %v1381_v26 = vpop.xlane.xlu0 %1380 }
 0x450   :  { %4431 = vpow2.f32 %v1407_v25  ;;  %v1399_v27 = vsub.f32 %v1367_v28, %v1381_v26  ;;  %v1571_v25 = vsel %vm577_vm2, %v4859_v9, 0 }
 0x452   :  { %v1409_v29 = vmul.f32 1.442695, %v1399_v27 }
 0x453   :  { %v1384_v30 = vpop.xlane.xlu0 %1383 }
 0x454   :  { %4433 = vpow2.f32 %v1409_v29  ;;  %v1400_v31 = vsub.f32 %v1368_v35, %v1384_v30 }
 0x456   :  { %v4863_v32 = vpop.eup %4429  ;;  %v1411_v33 = vmul.f32 1.442695, %v1400_v31  ;;  %v1619_v31 = vsel %vm577_vm2, %v4861_v10, 0 }
 0x457   :  { %v1387_v38 = vpop.xlane.xlu1 %1386  ;;  %v1421_v39 = vsel %vm474_vm3, %v4863_v32, 0.0 }
 0x458   :  { %4435 = vpow2.f32 %v1411_v33  ;;  %v1401_v8 = vsub.f32 %v1369_v45, %v1387_v38  ;;  %1422 = vadd.xlane.f32.xlu1 %v1421_v39 }
 0x45a   :  { %v4867_v36 = vpop.eup %4431  ;;  %v1413_v20 = vmul.f32 1.442695, %v1401_v8 }
 0x45b   :  { %v1390_v41 = vpop.xlane.xlu0 %1389  ;;  %v1424_v28 = vsel %vm474_vm3, %v4867_v36, 0.0 }
 0x45c   :  { %4437 = vpow2.f32 %v1413_v20  ;;  %v1402_v42 = vsub.f32 %v1370_v52, %v1390_v41  ;;  %1425 = vadd.xlane.f32.xlu0 %v1424_v28 }
 0x45e   :  { %v4871_v35 = vpop.eup %4433  ;;  %v1415_v37 = vmul.f32 1.442695, %v1402_v42 }
 0x45f   :  { %v1427_v46 = vsel %vm474_vm3, %v4871_v35, 0.0  ;;  %v1393_v54 = vpop.xlane.xlu1 %1392 }
 0x460   :  { %4439 = vpow2.f32 %v1415_v37  ;;  %1428 = vadd.xlane.f32.xlu1 %v1427_v46  ;;  %v1403_v44 = vsub.f32 %v4850_v56, %v1393_v54 }
 0x462   :  { %v4875_v45 = vpop.eup %4435  ;;  %v1417_v57 = vmul.f32 1.442695, %v1403_v44 }
 0x463   :  { %v1430_v47 = vsel %vm474_vm3, %v4875_v45, 0.0  ;;  %v1396_v50 = vpop.xlane.xlu0 %1395  ;;  %v1710_v56 = vpop.permute.xlu1 %1709 }
 0x464   :  { %1431 = vadd.xlane.f32.xlu0 %v1430_v47  ;;  %v1404_v59 = vsub.f32 %v1372_v1, %v1396_v50  ;;  %4441 = vpow2.f32 %v1417_v57  ;;  %v1715_v20 = vsel %vm577_vm2, %v1710_v56, 0 }
 0x466   :  { %v4879_v48 = vpop.eup %4437  ;;  %v1419_v60 = vmul.f32 1.442695, %v1404_v59 }
 0x467   :  { %v1433_v49 = vsel %vm474_vm3, %v4879_v48, 0.0  ;;  %v1662_v1 = vpop.permute.xlu0 %1661 }
 0x468   :  { %1434 = vadd.xlane.f32.xlu1 %v1433_v49  ;;  %4443 = vpow2.f32 %v1419_v60  ;;  %v1667_v39 = vsel %vm577_vm2, %v1662_v1, 0 }
 0x46a   :  { %v4883_v52 = vpop.eup %4439 }
 0x46b   :  { %v1436_v53 = vsel %vm474_vm3, %v4883_v52, 0.0 }
 0x46c   :  { %1437 = vadd.xlane.f32.xlu0 %v1436_v53 }
 0x46e   :  { %v4892_v61 = vpop.eup %4441 }
 0x46f   :  { %v1439_v63 = vsel %vm474_vm3, %v4892_v61, 0.0 }
 0x472   :  { %v4896_v0 = vpop.eup %4443 }
 0x473   :  { %v1442_v4 = vsel %vm474_vm3, %v4896_v0, 0.0 }
 0x479   :  { %1805 = vrot.lane.b32.xlu1 %v4602_v22, %s4532_s25 }
 0x482   :  { %1757 = vrot.lane.b32.xlu0 %v4600_v21, %s4532_s25 }
 0x49d   :  { %1440 = vadd.xlane.f32.xlu1 %v1439_v63 }
 0x4a1   :  { %1443 = vadd.xlane.f32.xlu0 %v1442_v4 }
 0x4ae   :  { %1913 = vrot.lane.b32.xlu1 %v4575_v13, %s4533_s26 }
 0x4b2   :  { %1911 = vrot.lane.b32.xlu1 %v4575_v13, %s4534_s27 }
 0x4b6   :  { %2013 = vrot.lane.b32.xlu1 %v4578_v14, %s4533_s26 }
 0x4b7   :  { %1863 = vrot.lane.b32.xlu0 %v4570_v11, %s4533_s26 }
 0x4ba   :  { %2011 = vrot.lane.b32.xlu1 %v4578_v14, %s4534_s27 }
 0x4bb   :  { %1861 = vrot.lane.b32.xlu0 %v4570_v11, %s4534_s27 }
 0x4be   :  { %2113 = vrot.lane.b32.xlu1 %v4590_v18, %s4533_s26 }
 0x4bf   :  { %1963 = vrot.lane.b32.xlu0 %v4572_v12, %s4533_s26 }
 0x4c2   :  { %2111 = vrot.lane.b32.xlu1 %v4590_v18, %s4534_s27 }
 0x4c3   :  { %1961 = vrot.lane.b32.xlu0 %v4572_v12, %s4534_s27 }
 0x4c6   :  { %2213 = vrot.lane.b32.xlu1 %v4602_v22, %s4533_s26 }
 0x4c7   :  { %2063 = vrot.lane.b32.xlu0 %v4588_v17, %s4533_s26 }
 0x4ca   :  { %2211 = vrot.lane.b32.xlu1 %v4602_v22, %s4534_s27 }
 0x4cb   :  { %2061 = vrot.lane.b32.xlu0 %v4588_v17, %s4534_s27 }
 0x4ce   :  { %2365 = vrot.lane.b32.xlu1 %v4570_v11, %s4535_s28 }
 0x4cf   :  { %2163 = vrot.lane.b32.xlu0 %v4600_v21, %s4533_s26 }
 0x4d2   :  { %2461 = vrot.lane.b32.xlu1 %v4572_v12, %s4535_s28 }
 0x4d3   :  { %2161 = vrot.lane.b32.xlu0 %v4600_v21, %s4534_s27 }
 0x4d6   :  { %2509 = vrot.lane.b32.xlu1 %v4578_v14, %s4535_s28 }
 0x4d7   :  { %2413 = vrot.lane.b32.xlu0 %v4575_v13, %s4535_s28 }
 0x4e5   :  { %v1423_v5 = vpop.xlane.xlu1 %1422 }
 0x4e6   :  { %4445 = vrcp.f32 %v1423_v5 }
 0x4e9   :  { %v1426_v6 = vpop.xlane.xlu0 %1425 }
 0x4ea   :  { %4447 = vrcp.f32 %v1426_v6 }
 0x4ed   :  { %v1429_v7 = vpop.xlane.xlu1 %1428 }
 0x4ee   :  { %4449 = vrcp.f32 %v1429_v7 }
 0x4f0   :  { %v4446_v15 = vpop.eup %4445 }
 0x4f1   :  { %v1432_v16 = vpop.xlane.xlu0 %1431  ;;  %v1453_v19 = vmul.f32 %v4446_v15, %v4863_v32 }
 0x4f2   :  { %4451 = vrcp.f32 %v1432_v16 }
 0x4f3   :  { %v1461_v23 = vpack.c.bf16 %v1453_v19, %v1453_v19 }
 0x4f4   :  { %v4448_v24 = vpop.eup %4447 }
 0x4f5   :  { %4143 = vmatmul.mubr.msk.bf16.vlgmr.msra.gmra.mrb[48].mxu0 %vm573_vm4, %v1461_v23  ;;  %v1435_v26 = vpop.xlane.xlu1 %1434  ;;  %v1454_v27 = vmul.f32 %v4448_v24, %v4867_v36 }
 0x4f6   :  { %4153 = vmatpush3.bf16.msra.mxu0 %v1571_v25  ;;  %4453 = vrcp.f32 %v1435_v26  ;;  %4154 = vmatprep.mubr.msk.bf16.mxu0 %vm4527_vm0, %v4526_v3 }
 0x4f7   :  { %v1462_v29 = vpack.c.bf16 %v1454_v27, %v1454_v27  ;;  %4164 = vmatprep.subr.bf16.mxu0 %v4526_v3 }
 0x4f8   :  { %v4450_v30 = vpop.eup %4449 }
 0x4f9   :  { %4149 = vmatmul.mubr.msk.bf16.vlgmr.msra.gmra.mrb[48].mxu1 %vm573_vm4, %v1462_v29  ;;  %v1438_v9 = vpop.xlane.xlu0 %1437  ;;  %v1455_v32 = vmul.f32 %v4450_v30, %v4871_v35 }
 0x4fa   :  { %4159 = vmatpush3.bf16.msra.mxu1 %v1619_v31  ;;  %4455 = vrcp.f32 %v1438_v9  ;;  %4160 = vmatprep.mubr.msk.bf16.mxu1 %vm4527_vm0, %v4526_v3 }
 0x4fb   :  { %v1463_v33 = vpack.c.bf16 %v1455_v32, %v1455_v32  ;;  %4170 = vmatprep.subr.bf16.mxu1 %v4526_v3 }
 0x4fc   :  { %v4452_v38 = vpop.eup %4451 }
 0x4fd   :  { %4155 = vmatmul.mubr.msk.bf16.vlgmr.msra.gmra.mrb[52].mxu0 %vm573_vm4, %v1463_v33  ;;  %v1456_v10 = vmul.f32 %v4452_v38, %v4875_v45  ;;  %v1758_v28 = vpop.permute.xlu0 %1757  ;;  %v1806_v45 = vpop.permute.xlu1 %1805 }
 0x4fe   :  { %4165 = vmatpush3.bf16.msra.mxu0 %v1667_v39  ;;  %4166 = vmatprep.mubr.msk.bf16.mxu0 %vm4527_vm0, %v4526_v3  ;;  %v1763_v37 = vsel %vm577_vm2, %v1758_v28, 0 }
 0x4ff   :  { %v1464_v8 = vpack.c.bf16 %v1456_v10, %v1456_v10  ;;  %4176 = vmatprep.subr.bf16.mxu0 %v4526_v3 }
 0x500   :  { %v4454_v36 = vpop.eup %4453 }
 0x501   :  { %4161 = vmatmul.mubr.msk.bf16.vlgmr.msra.gmra.mrb[52].mxu1 %vm573_vm4, %v1464_v8  ;;  %v1457_v41 = vmul.f32 %v4454_v36, %v4879_v48  ;;  %v1811_v48 = vsel %vm577_vm2, %v1806_v45, 0 }
 0x502   :  { %4171 = vmatpush3.bf16.msra.mxu1 %v1715_v20  ;;  %4172 = vmatprep.mubr.msk.bf16.mxu1 %vm4527_vm0, %v4526_v3 }
 0x503   :  { %v1465_v42 = vpack.c.bf16 %v1457_v41, %v1457_v41  ;;  %4182 = vmatprep.subr.bf16.mxu1 %v4526_v3 }
 0x504   :  { %v4456_v35 = vpop.eup %4455 }
 0x505   :  { %4167 = vmatmul.mubr.msk.bf16.vlgmr.msra.gmra.mrb[56].mxu0 %vm573_vm4, %v1465_v42  ;;  %v1458_v46 = vmul.f32 %v4456_v35, %v4883_v52 }
 0x506   :  { %4177 = vmatpush3.bf16.msra.mxu0 %v1763_v37  ;;  %4178 = vmatprep.mubr.msk.bf16.mxu0 %vm4527_vm0, %v4526_v3 }
 0x507   :  { %v1466_v47 = vpack.c.bf16 %v1458_v46, %v1458_v46  ;;  %4188 = vmatprep.subr.bf16.mxu0 %v4526_v3 }
 0x509   :  { %4173 = vmatmul.mubr.msk.bf16.vlgmr.msra.gmra.mrb[56].mxu1 %vm573_vm4, %v1466_v47 }
 0x50a   :  { %4183 = vmatpush3.bf16.msra.mxu1 %v1811_v48  ;;  %4184 = vmatprep.mubr.msk.bf16.mxu1 %vm4527_vm0, %v4526_v3 }
 0x50b   :  { %4194 = vmatprep.subr.bf16.mxu1 %v4526_v3 }
 0x52a   :  { %v1441_v49 = vpop.xlane.xlu1 %1440 }
 0x52b   :  { %4457 = vrcp.f32 %v1441_v49 }
 0x52e   :  { %v1444_v52 = vpop.xlane.xlu0 %1443  ;;  %v1914_v53 = vpop.permute.xlu1 %1913 }
 0x52f   :  { %4459 = vrcp.f32 %v1444_v52  ;;  %v1919_v6 = vsel %vm27_vm1, %v1914_v53, 0 }
 0x532   :  { %v1864_v54 = vpop.permute.xlu0 %1863  ;;  %v1912_v44 = vpop.permute.xlu1 %1911 }
 0x533   :  { %v1869_v60 = vsel %vm27_vm1, %v1864_v54, 0 }
 0x535   :  { %v4458_v50 = vpop.eup %4457 }
 0x536   :  { %v1459_v57 = vmul.f32 %v4458_v50, %v4892_v61  ;;  %v1862_v59 = vpop.permute.xlu0 %1861  ;;  %v2014_v56 = vpop.permute.xlu1 %2013 }
 0x537   :  { %v2019_v19 = vsel %vm27_vm1, %v2014_v56, 0 }
 0x538   :  { %v1467_v63 = vpack.c.bf16 %v1459_v57, %v1459_v57 }
 0x539   :  { %v4460_v4 = vpop.eup %4459 }
 0x53a   :  { %4179 = vmatmul.mubr.msk.bf16.vlgmr.msra.gmra.mrb[60].mxu0 %vm573_vm4, %v1467_v63  ;;  %v1460_v1 = vmul.f32 %v4460_v4, %v4896_v0  ;;  %v1964_v5 = vpop.permute.xlu0 %1963  ;;  %v2012_v15 = vpop.permute.xlu1 %2011 }
 0x53b   :  { %4189 = vmatpush3.bf16.xpose.msra.mxu0 %v1869_v60  ;;  %4190 = vmatprep.mubr.msk.bf16.mxu0 %vm4527_vm0, %v4526_v3  ;;  %v1969_v0 = vsel %vm27_vm1, %v1964_v5, 0 }
 0x53c   :  { %v1468_v7 = vpack.c.bf16 %v1460_v1, %v1460_v1  ;;  %4200 = vmatprep.subr.bf16.mxu0 %v4526_v3 }
 0x53e   :  { %4185 = vmatmul.mubr.msk.bf16.vlgmr.msra.gmra.mrb[60].mxu1 %vm573_vm4, %v1468_v7  ;;  %v1962_v61 = vpop.permute.xlu0 %1961  ;;  %v2114_v23 = vpop.permute.xlu1 %2113 }
 0x53f   :  { %4195 = vmatpush3.bf16.xpose.msra.mxu1 %v1919_v6  ;;  %4196 = vmatprep.mubr.msk.bf16.mxu1 %vm4527_vm0, %v4526_v3  ;;  %v2119_v27 = vsel %vm27_vm1, %v2114_v23, 0 }
 0x540   :  { %4206 = vmatprep.subr.bf16.mxu1 %v4526_v3 }
 0x542   :  { %4191 = vmatmul.mubr.msk.bf16.vlgmr.msra.gmra.mrb[64].mxu0 %vm27_vm1, %v1862_v59  ;;  %v2064_v16 = vpop.permute.xlu0 %2063  ;;  %v2112_v26 = vpop.permute.xlu1 %2111 }
 0x543   :  { %4201 = vmatpush3.bf16.xpose.msra.mxu0 %v1969_v0  ;;  %4202 = vmatprep.mubr.msk.bf16.mxu0 %vm4527_vm0, %v4526_v3  ;;  %v2069_v25 = vsel %vm27_vm1, %v2064_v16, 0 }
 0x544   :  { %4212 = vmatprep.subr.bf16.mxu0 %v4526_v3 }
 0x546   :  { %4197 = vmatmul.mubr.msk.bf16.vlgmr.msra.gmra.mrb[64].mxu1 %vm27_vm1, %v1912_v44  ;;  %v2062_v24 = vpop.permute.xlu0 %2061  ;;  %v2214_v31 = vpop.permute.xlu1 %2213 }
 0x547   :  { %4207 = vmatpush3.bf16.xpose.msra.mxu1 %v2019_v19  ;;  %4208 = vmatprep.mubr.msk.bf16.mxu1 %vm4527_vm0, %v4526_v3  ;;  %v2219_v9 = vsel %vm27_vm1, %v2214_v31, 0 }
 0x548   :  { %4218 = vmatprep.subr.bf16.mxu1 %v4526_v3 }
 0x54a   :  { %4203 = vmatmul.mubr.msk.bf16.vlgmr.msra.gmra.mrb[68].mxu0 %vm27_vm1, %v1962_v61  ;;  %v2164_v29 = vpop.permute.xlu0 %2163  ;;  %v2212_v33 = vpop.permute.xlu1 %2211 }
 0x54b   :  { %4213 = vmatpush3.bf16.xpose.msra.mxu0 %v2069_v25  ;;  %4214 = vmatprep.mubr.msk.bf16.mxu0 %vm4527_vm0, %v4526_v3  ;;  %v2169_v30 = vsel %vm27_vm1, %v2164_v29, 0 }
 0x54c   :  { %4224 = vmatprep.subr.bf16.mxu0 %v4526_v3 }
 0x54e   :  { %4209 = vmatmul.mubr.msk.bf16.vlgmr.msra.gmra.mrb[68].mxu1 %vm27_vm1, %v2012_v15  ;;  %v2162_v32 = vpop.permute.xlu0 %2161  ;;  %v2366_v46 = vpop.permute.xlu1 %2365 }
 0x54f   :  { %4219 = vmatpush3.bf16.xpose.msra.mxu1 %v2119_v27  ;;  %4220 = vmatprep.mubr.msk.bf16.mxu1 %vm4527_vm0, %v4526_v3  ;;  %v2371_v47 = vsel %vm577_vm2, %v2366_v46, 0 }
 0x550   :  { %4230 = vmatprep.subr.bf16.mxu1 %v4526_v3 }
 0x552   :  { %4215 = vmatmul.mubr.msk.bf16.vlgmr.msra.gmra.mrb[72].mxu0 %vm27_vm1, %v2062_v24  ;;  %v2414_v48 = vpop.permute.xlu0 %2413 }
 0x553   :  { %4225 = vmatpush3.bf16.xpose.msra.mxu0 %v2169_v30  ;;  %4226 = vmatprep.mubr.msk.bf16.mxu0 %vm4527_vm0, %v4526_v3  ;;  %v2419_v52 = vsel %vm577_vm2, %v2414_v48, 0 }
 0x554   :  { %4236 = vmatprep.subr.bf16.mxu0 %v4526_v3 }
 0x556   :  { %4221 = vmatmul.mubr.msk.bf16.vlgmr.msra.gmra.mrb[72].mxu1 %vm27_vm1, %v2112_v26 }
 0x557   :  { %4231 = vmatpush3.bf16.xpose.msra.mxu1 %v2219_v9  ;;  %4232 = vmatprep.mubr.msk.bf16.mxu1 %vm4527_vm0, %v4526_v3 }
 0x558   :  { %4242 = vmatprep.subr.bf16.mxu1 %v4526_v3 }
 0x55a   :  { %4227 = vmatmul.mubr.msk.bf16.vlgmr.msra.gmra.mrb[76].mxu0 %vm27_vm1, %v2162_v32 }
 0x55b   :  { %4238 = vmatprep.mubr.msk.bf16.mxu0 %vm4527_vm0, %v4526_v3  ;;  %4237 = vmatpush3.bf16.msra.mxu0 %v2371_v47 }
 0x55c   :  { %4248 = vmatprep.subr.bf16.mxu0 %v4526_v3 }
 0x55e   :  { %4233 = vmatmul.mubr.msk.bf16.vlgmr.msra.gmra.mrb[76].mxu1 %vm27_vm1, %v2212_v33 }
 0x55f   :  { %4244 = vmatprep.mubr.msk.bf16.mxu1 %vm4527_vm0, %v4526_v3  ;;  %4243 = vmatpush3.bf16.msra.mxu1 %v2419_v52 }
 0x560   :  { %4254 = vmatprep.subr.bf16.mxu1 %v4526_v3 }
 0x5c8   :  { %v5010_v38 = vpop.f32.mrb[48].mxu0 }
 0x5c9   :  { %v4144_v39 = vpop.f32.mrb[49].mxu0 }
 0x5ca   :  { %v1514_v10 = vpop.f32.mrb[50].mxu0 }
 0x5cb   :  { %v4145_v8 = vpop.f32.mrb[51].mxu0 }
 0x5cc   :  { %v5012_v36 = vpop.f32.mrb[48].mxu1 }
 0x5cd   :  { %v4150_v20 = vpop.f32.mrb[49].mxu1 }
 0x5ce   :  { %v1562_v41 = vpop.f32.mrb[50].mxu1 }
 0x5cf   :  { %v4151_v28 = vpop.f32.mrb[51].mxu1 }
 0x5d0   :  { %v5014_v42 = vpop.f32.mrb[52].mxu0 }
 0x5d1   :  { %v4156_v35 = vpop.f32.mrb[53].mxu0 }
 0x5d2   :  { %v1610_v37 = vpop.f32.mrb[54].mxu0 }
 0x5d3   :  { %v4157_v45 = vpop.f32.mrb[55].mxu0 }
 0x5d4   :  { %v5017_v49 = vpop.f32.mrb[52].mxu1 }
 0x5d5   :  { %v4162_v53 = vpop.f32.mrb[53].mxu1 }
 0x5d6   :  { %v1658_v54 = vpop.f32.mrb[54].mxu1 }
 0x5d7   :  { %v4163_v44 = vpop.f32.mrb[55].mxu1 }
 0x5d8   :  { %v5022_v50 = vpop.f32.mrb[56].mxu0 }
 0x5d9   :  { %v4168_v57 = vpop.f32.mrb[57].mxu0 }
 0x5da   :  { %v1706_v59 = vpop.f32.mrb[58].mxu0 }
 0x5db   :  { %v4169_v60 = vpop.f32.mrb[59].mxu0 }
 0x5dc   :  { %v5024_v63 = vpop.f32.mrb[56].mxu1 }
 0x5dd   :  { %v4174_v4 = vpop.f32.mrb[57].mxu1 }
 0x5de   :  { %v1754_v56 = vpop.f32.mrb[58].mxu1 }
 0x5df   :  { %v4175_v1 = vpop.f32.mrb[59].mxu1 }
 0x60d   :  { %v5026_v5 = vpop.f32.mrb[60].mxu0 }
 0x60e   :  { %v4180_v6 = vpop.f32.mrb[61].mxu0 }
 0x60f   :  { %v1802_v7 = vpop.f32.mrb[62].mxu0 }
 0x610   :  { %v4181_v61 = vpop.f32.mrb[63].mxu0 }
 0x611   :  { %v5028_v15 = vpop.f32.mrb[60].mxu1 }
 0x612   :  { %v4186_v0 = vpop.f32.mrb[61].mxu1 }
 0x613   :  { %v1850_v16 = vpop.f32.mrb[62].mxu1 }
 0x614   :  { %v4187_v19 = vpop.f32.mrb[63].mxu1 }
 0x615   :  { %v1905_v23 = vpop.f32.mrb[64].mxu0 }
 0x616   :  { %v2261_v24 = vmul.f32 0.35355338, %v1905_v23  ;;  %v4192_v25 = vpop.f32.mrb[65].mxu0 }
 0x617   :  { %v1908_v26 = vpop.f32.mrb[66].mxu0 }
 0x618   :  { %v4193_v27 = vpop.f32.mrb[67].mxu0  ;;  %v2269_v29 = vsel %vm474_vm3, %v2261_v24, -inf }
 0x619   :  { %v1955_v30 = vpop.f32.mrb[64].mxu1  ;;  %2270 = vmax.xlane.f32.xlu0 %v2269_v29 }
 0x61a   :  { %v2262_v31 = vmul.f32 0.35355338, %v1955_v30  ;;  %v4198_v9 = vpop.f32.mrb[65].mxu1 }
 0x61b   :  { %v1958_v32 = vpop.f32.mrb[66].mxu1 }
 0x61c   :  { %v4199_v33 = vpop.f32.mrb[67].mxu1  ;;  %v2272_v39 = vsel %vm474_vm3, %v2262_v31, -inf }
 0x61d   :  { %2273 = vmax.xlane.f32.xlu1 %v2272_v39  ;;  %v2005_v10 = vpop.f32.mrb[68].mxu0  ;;  %v5045_v39 = vpop.permute.xlu1 %2461 }
 0x61e   :  { %v2263_v8 = vmul.f32 0.35355338, %v2005_v10  ;;  %v4204_v20 = vpop.f32.mrb[69].mxu0 }
 0x61f   :  { %v2008_v41 = vpop.f32.mrb[70].mxu0 }
 0x620   :  { %v4205_v28 = vpop.f32.mrb[71].mxu0  ;;  %v2275_v35 = vsel %vm474_vm3, %v2263_v8, -inf }
 0x621   :  { %v2055_v37 = vpop.f32.mrb[68].mxu1  ;;  %2276 = vmax.xlane.f32.xlu0 %v2275_v35  ;;  %v5047_v10 = vpop.permute.xlu1 %2509 }
 0x622   :  { %v2264_v46 = vmul.f32 0.35355338, %v2055_v37  ;;  %v4210_v45 = vpop.f32.mrb[69].mxu1 }
 0x623   :  { %v2058_v47 = vpop.f32.mrb[70].mxu1 }
 0x624   :  { %v4211_v48 = vpop.f32.mrb[71].mxu1  ;;  %v2278_v52 = vsel %vm474_vm3, %v2264_v46, -inf }
 0x625   :  { %2279 = vmax.xlane.f32.xlu0 %v2278_v52  ;;  %v2105_v53 = vpop.f32.mrb[72].mxu0 }
 0x626   :  { %v2265_v54 = vmul.f32 0.35355338, %v2105_v53  ;;  %v4216_v44 = vpop.f32.mrb[73].mxu0 }
 0x627   :  { %v2108_v57 = vpop.f32.mrb[74].mxu0 }
 0x628   :  { %v4217_v59 = vpop.f32.mrb[75].mxu0  ;;  %v2281_v60 = vsel %vm474_vm3, %v2265_v54, -inf }
 0x629   :  { %v2155_v4 = vpop.f32.mrb[72].mxu1  ;;  %2282 = vmax.xlane.f32.xlu1 %v2281_v60 }
 0x62a   :  { %v2266_v56 = vmul.f32 0.35355338, %v2155_v4  ;;  %v4222_v1 = vpop.f32.mrb[73].mxu1 }
 0x62b   :  { %v2158_v6 = vpop.f32.mrb[74].mxu1 }
 0x62c   :  { %v4223_v7 = vpop.f32.mrb[75].mxu1  ;;  %v2284_v61 = vsel %vm474_vm3, %v2266_v56, -inf }
 0x62d   :  { %2285 = vmax.xlane.f32.xlu0 %v2284_v61  ;;  %v2205_v0 = vpop.f32.mrb[76].mxu0 }
 0x62e   :  { %v5036_v16 = vmul.f32 0.35355338, %v2205_v0  ;;  %v4228_v19 = vpop.f32.mrb[77].mxu0 }
 0x62f   :  { %v2208_v23 = vpop.f32.mrb[78].mxu0 }
 0x630   :  { %v2287_v25 = vsel %vm474_vm3, %v5036_v16, -inf  ;;  %v4229_v26 = vpop.f32.mrb[79].mxu0 }
 0x631   :  { %v2255_v27 = vpop.f32.mrb[76].mxu1  ;;  %2288 = vmax.xlane.f32.xlu1 %v2287_v25 }
 0x632   :  { %v2268_v29 = vmul.f32 0.35355338, %v2255_v27  ;;  %v4234_v30 = vpop.f32.mrb[77].mxu1 }
 0x633   :  { %v2258_v9 = vpop.f32.mrb[78].mxu1 }
 0x634   :  { %v2290_v32 = vsel %vm474_vm3, %v2268_v29, -inf  ;;  %v4235_v33 = vpop.f32.mrb[79].mxu1 }
 0x635   :  { %2291 = vmax.xlane.f32.xlu0 %v2290_v32 }
 0x642   :  { %2605 = vrot.lane.b32.xlu1 %v4590_v18, %s4535_s28 }
 0x64b   :  { %2557 = vrot.lane.b32.xlu0 %v4588_v17, %s4535_s28 }
 0x6a6   :  { %v2271_v20 = vpop.xlane.xlu0 %2270 }
 0x6a7   :  { %v2293_v41 = vsub.f32 %v2261_v24, %v2271_v20 }
 0x6a9   :  { %v2301_v28 = vmul.f32 1.442695, %v2293_v41 }
 0x6aa   :  { %v2274_v35 = vpop.xlane.xlu1 %2273 }
 0x6ab   :  { %4461 = vpow2.f32 %v2301_v28  ;;  %v2294_v37 = vsub.f32 %v2262_v31, %v2274_v35 }
 0x6ad   :  { %v2303_v45 = vmul.f32 1.442695, %v2294_v37 }
 0x6ae   :  { %v2277_v47 = vpop.xlane.xlu0 %2276 }
 0x6af   :  { %4463 = vpow2.f32 %v2303_v45  ;;  %v2295_v48 = vsub.f32 %v2263_v8, %v2277_v47 }
 0x6b1   :  { %v2305_v52 = vmul.f32 1.442695, %v2295_v48 }
 0x6b2   :  { %v2280_v53 = vpop.xlane.xlu0 %2279 }
 0x6b3   :  { %4465 = vpow2.f32 %v2305_v52  ;;  %v2296_v44 = vsub.f32 %v2264_v46, %v2280_v53 }
 0x6b5   :  { %v5049_v57 = vpop.eup %4461  ;;  %v2307_v59 = vmul.f32 1.442695, %v2296_v44 }
 0x6b6   :  { %v2283_v60 = vpop.xlane.xlu1 %2282  ;;  %v2317_v4 = vsel %vm474_vm3, %v5049_v57, 0.0 }
 0x6b7   :  { %4467 = vpow2.f32 %v2307_v59  ;;  %v2297_v24 = vsub.f32 %v2265_v54, %v2283_v60  ;;  %2318 = vadd.xlane.f32.xlu1 %v2317_v4  ;;  %v2467_v4 = vsel %vm577_vm2, %v5045_v39, 0 }
 0x6b9   :  { %v5053_v1 = vpop.eup %4463  ;;  %v2309_v31 = vmul.f32 1.442695, %v2297_v24 }
 0x6ba   :  { %v2286_v6 = vpop.xlane.xlu0 %2285  ;;  %v2320_v8 = vsel %vm474_vm3, %v5053_v1, 0.0 }
 0x6bb   :  { %4469 = vpow2.f32 %v2309_v31  ;;  %v2298_v7 = vsub.f32 %v2266_v56, %v2286_v6  ;;  %2321 = vadd.xlane.f32.xlu0 %v2320_v8  ;;  %v2515_v8 = vsel %vm577_vm2, %v5047_v10, 0 }
 0x6bd   :  { %v5057_v46 = vpop.eup %4465  ;;  %v2311_v61 = vmul.f32 1.442695, %v2298_v7 }
 0x6be   :  { %v2323_v0 = vsel %vm474_vm3, %v5057_v46, 0.0  ;;  %v2289_v27 = vpop.xlane.xlu1 %2288 }
 0x6bf   :  { %4471 = vpow2.f32 %v2311_v61  ;;  %2324 = vadd.xlane.f32.xlu1 %v2323_v0  ;;  %v2299_v30 = vsub.f32 %v5036_v16, %v2289_v27 }
 0x6c1   :  { %v5061_v54 = vpop.eup %4467  ;;  %v2313_v32 = vmul.f32 1.442695, %v2299_v30 }
 0x6c2   :  { %v2326_v19 = vsel %vm474_vm3, %v5061_v54, 0.0  ;;  %v2292_v9 = vpop.xlane.xlu0 %2291  ;;  %v2606_v16 = vpop.permute.xlu1 %2605 }
 0x6c3   :  { %2327 = vadd.xlane.f32.xlu0 %v2326_v19  ;;  %v2300_v33 = vsub.f32 %v2268_v29, %v2292_v9  ;;  %4473 = vpow2.f32 %v2313_v32 }
 0x6c5   :  { %v5065_v23 = vpop.eup %4469  ;;  %v2315_v20 = vmul.f32 1.442695, %v2300_v33 }
 0x6c6   :  { %v2329_v56 = vsel %vm474_vm3, %v5065_v23, 0.0  ;;  %v2558_v29 = vpop.permute.xlu0 %2557 }
 0x6c7   :  { %2330 = vadd.xlane.f32.xlu1 %v2329_v56  ;;  %4475 = vpow2.f32 %v2315_v20  ;;  %v2563_v0 = vsel %vm577_vm2, %v2558_v29, 0  ;;  %v2611_v56 = vsel %vm577_vm2, %v2606_v16, 0 }
 0x6c9   :  { %v5069_v25 = vpop.eup %4471 }
 0x6ca   :  { %v2332_v26 = vsel %vm474_vm3, %v5069_v25, 0.0 }
 0x6cb   :  { %2333 = vadd.xlane.f32.xlu0 %v2332_v26 }
 0x6cd   :  { %v5078_v41 = vpop.eup %4473 }
 0x6ce   :  { %v2335_v28 = vsel %vm474_vm3, %v5078_v41, 0.0 }
 0x6d1   :  { %v5082_v35 = vpop.eup %4475 }
 0x6d2   :  { %v2338_v37 = vsel %vm474_vm3, %v5082_v35, 0.0 }
 0x6d8   :  { %2701 = vrot.lane.b32.xlu1 %v4602_v22, %s4535_s28 }
 0x6e1   :  { %2653 = vrot.lane.b32.xlu0 %v4600_v21, %s4535_s28 }
 0x6fc   :  { %2336 = vadd.xlane.f32.xlu1 %v2335_v28 }
 0x700   :  { %2339 = vadd.xlane.f32.xlu0 %v2338_v37 }
 0x70d   :  { %2809 = vrot.lane.b32.xlu1 %v4575_v13, %s4536_s29 }
 0x711   :  { %2807 = vrot.lane.b32.xlu1 %v4575_v13, %s4537_s30 }
 0x715   :  { %2909 = vrot.lane.b32.xlu1 %v4578_v14, %s4536_s29 }
 0x716   :  { %2759 = vrot.lane.b32.xlu0 %v4570_v11, %s4536_s29 }
 0x719   :  { %2907 = vrot.lane.b32.xlu1 %v4578_v14, %s4537_s30 }
 0x71a   :  { %2757 = vrot.lane.b32.xlu0 %v4570_v11, %s4537_s30 }
 0x71d   :  { %3009 = vrot.lane.b32.xlu1 %v4590_v18, %s4536_s29 }
 0x71e   :  { %2859 = vrot.lane.b32.xlu0 %v4572_v12, %s4536_s29 }
 0x721   :  { %3007 = vrot.lane.b32.xlu1 %v4590_v18, %s4537_s30 }
 0x722   :  { %2857 = vrot.lane.b32.xlu0 %v4572_v12, %s4537_s30 }
 0x725   :  { %3109 = vrot.lane.b32.xlu1 %v4602_v22, %s4536_s29 }
 0x726   :  { %2959 = vrot.lane.b32.xlu0 %v4588_v17, %s4536_s29 }
 0x729   :  { %3107 = vrot.lane.b32.xlu1 %v4602_v22, %s4537_s30 }
 0x72a   :  { %2957 = vrot.lane.b32.xlu0 %v4588_v17, %s4537_s30 }
 0x72d   :  { %3261 = vrot.lane.b32.xlu1 %v4570_v11, %s4538_s2 }
 0x72e   :  { %3059 = vrot.lane.b32.xlu0 %v4600_v21, %s4536_s29 }
 0x732   :  { %3057 = vrot.lane.b32.xlu0 %v4600_v21, %s4537_s30 }
 0x744   :  { %v2319_v45 = vpop.xlane.xlu1 %2318 }
 0x745   :  { %4477 = vrcp.f32 %v2319_v45 }
 0x748   :  { %v2322_v47 = vpop.xlane.xlu0 %2321 }
 0x749   :  { %4479 = vrcp.f32 %v2322_v47 }
 0x74c   :  { %v2325_v48 = vpop.xlane.xlu1 %2324 }
 0x74d   :  { %4481 = vrcp.f32 %v2325_v48 }
 0x74f   :  { %v4478_v52 = vpop.eup %4477 }
 0x750   :  { %v2349_v53 = vmul.f32 %v4478_v52, %v5049_v57  ;;  %v2328_v44 = vpop.xlane.xlu0 %2327 }
 0x751   :  { %4483 = vrcp.f32 %v2328_v44 }
 0x752   :  { %v2357_v59 = vpack.c.bf16 %v2349_v53, %v2349_v53 }
 0x753   :  { %v4480_v60 = vpop.eup %4479 }
 0x754   :  { %v2350_v24 = vmul.f32 %v4480_v60, %v5053_v1  ;;  %4239 = vmatmul.mubr.msk.bf16.vlgmr.msra.gmra.mrb[80].mxu0 %vm573_vm4, %v2357_v59  ;;  %v2331_v31 = vpop.xlane.xlu1 %2330 }
 0x755   :  { %4249 = vmatpush3.bf16.msra.mxu0 %v2467_v4  ;;  %4485 = vrcp.f32 %v2331_v31  ;;  %4250 = vmatprep.mubr.msk.bf16.mxu0 %vm4527_vm0, %v4526_v3 }
 0x756   :  { %v2358_v6 = vpack.c.bf16 %v2350_v24, %v2350_v24  ;;  %4260 = vmatprep.subr.bf16.mxu0 %v4526_v3 }
 0x757   :  { %v4482_v57 = vpop.eup %4481 }
 0x758   :  { %v2351_v7 = vmul.f32 %v4482_v57, %v5057_v46  ;;  %4245 = vmatmul.mubr.msk.bf16.vlgmr.msra.gmra.mrb[80].mxu1 %vm573_vm4, %v2358_v6  ;;  %v2334_v39 = vpop.xlane.xlu0 %2333  ;;  %v2702_v33 = vpop.permute.xlu1 %2701 }
 0x759   :  { %4255 = vmatpush3.bf16.msra.mxu1 %v2515_v8  ;;  %4487 = vrcp.f32 %v2334_v39  ;;  %4256 = vmatprep.mubr.msk.bf16.mxu1 %vm4527_vm0, %v4526_v3  ;;  %v2707_v20 = vsel %vm577_vm2, %v2702_v33, 0 }
 0x75a   :  { %v2359_v1 = vpack.c.bf16 %v2351_v7, %v2351_v7  ;;  %4266 = vmatprep.subr.bf16.mxu1 %v4526_v3 }
 0x75b   :  { %v4484_v61 = vpop.eup %4483 }
 0x75c   :  { %v2352_v19 = vmul.f32 %v4484_v61, %v5061_v54  ;;  %4251 = vmatmul.mubr.msk.bf16.vlgmr.msra.gmra.mrb[84].mxu0 %vm573_vm4, %v2359_v1  ;;  %v2654_v27 = vpop.permute.xlu0 %2653 }
 0x75d   :  { %4261 = vmatpush3.bf16.msra.mxu0 %v2563_v0  ;;  %4262 = vmatprep.mubr.msk.bf16.mxu0 %vm4527_vm0, %v4526_v3  ;;  %v2659_v32 = vsel %vm577_vm2, %v2654_v27, 0 }
 0x75e   :  { %v2360_v10 = vpack.c.bf16 %v2352_v19, %v2352_v19  ;;  %4272 = vmatprep.subr.bf16.mxu0 %v4526_v3 }
 0x75f   :  { %v4486_v46 = vpop.eup %4485 }
 0x760   :  { %v2353_v26 = vmul.f32 %v4486_v46, %v5065_v23  ;;  %4257 = vmatmul.mubr.msk.bf16.vlgmr.msra.gmra.mrb[84].mxu1 %vm573_vm4, %v2360_v10 }
 0x761   :  { %4267 = vmatpush3.bf16.msra.mxu1 %v2611_v56  ;;  %4268 = vmatprep.mubr.msk.bf16.mxu1 %vm4527_vm0, %v4526_v3 }
 0x762   :  { %v2361_v54 = vpack.c.bf16 %v2353_v26, %v2353_v26  ;;  %4278 = vmatprep.subr.bf16.mxu1 %v4526_v3 }
 0x763   :  { %v4488_v30 = vpop.eup %4487 }
 0x764   :  { %v2354_v9 = vmul.f32 %v4488_v30, %v5069_v25  ;;  %4263 = vmatmul.mubr.msk.bf16.vlgmr.msra.gmra.mrb[88].mxu0 %vm573_vm4, %v2361_v54 }
 0x765   :  { %4273 = vmatpush3.bf16.msra.mxu0 %v2659_v32  ;;  %4274 = vmatprep.mubr.msk.bf16.mxu0 %vm4527_vm0, %v4526_v3 }
 0x766   :  { %v2362_v23 = vpack.c.bf16 %v2354_v9, %v2354_v9  ;;  %4284 = vmatprep.subr.bf16.mxu0 %v4526_v3 }
 0x768   :  { %4269 = vmatmul.mubr.msk.bf16.vlgmr.msra.gmra.mrb[88].mxu1 %vm573_vm4, %v2362_v23 }
 0x769   :  { %4279 = vmatpush3.bf16.msra.mxu1 %v2707_v20  ;;  %4280 = vmatprep.mubr.msk.bf16.mxu1 %vm4527_vm0, %v4526_v3 }
 0x76a   :  { %4290 = vmatprep.subr.bf16.mxu1 %v4526_v3 }
 0x789   :  { %v2337_v25 = vpop.xlane.xlu1 %2336 }
 0x78a   :  { %4489 = vrcp.f32 %v2337_v25 }
 0x78d   :  { %v2340_v28 = vpop.xlane.xlu0 %2339  ;;  %v2810_v37 = vpop.permute.xlu1 %2809 }
 0x78e   :  { %4491 = vrcp.f32 %v2340_v28  ;;  %v2815_v24 = vsel %vm27_vm1, %v2810_v37, 0 }
 0x791   :  { %v2760_v16 = vpop.permute.xlu0 %2759  ;;  %v2808_v29 = vpop.permute.xlu1 %2807 }
 0x792   :  { %v2765_v52 = vsel %vm27_vm1, %v2760_v16, 0 }
 0x794   :  { %v4490_v45 = vpop.eup %4489 }
 0x795   :  { %v2355_v47 = vmul.f32 %v4490_v45, %v5078_v41  ;;  %v2758_v48 = vpop.permute.xlu0 %2757  ;;  %v2910_v59 = vpop.permute.xlu1 %2909 }
 0x796   :  { %v2915_v8 = vsel %vm27_vm1, %v2910_v59, 0 }
 0x797   :  { %v2363_v53 = vpack.c.bf16 %v2355_v47, %v2355_v47 }
 0x798   :  { %v4492_v44 = vpop.eup %4491 }
 0x799   :  { %v2356_v60 = vmul.f32 %v4492_v44, %v5082_v35  ;;  %4275 = vmatmul.mubr.msk.bf16.vlgmr.msra.gmra.mrb[92].mxu0 %vm573_vm4, %v2363_v53  ;;  %v2860_v4 = vpop.permute.xlu0 %2859  ;;  %v2908_v35 = vpop.permute.xlu1 %2907 }
 0x79a   :  { %4285 = vmatpush3.bf16.xpose.msra.mxu0 %v2765_v52  ;;  %4286 = vmatprep.mubr.msk.bf16.mxu0 %vm4527_vm0, %v4526_v3  ;;  %v2865_v6 = vsel %vm27_vm1, %v2860_v4, 0 }
 0x79b   :  { %v2364_v31 = vpack.c.bf16 %v2356_v60, %v2356_v60  ;;  %4296 = vmatprep.subr.bf16.mxu0 %v4526_v3 }
 0x79d   :  { %4281 = vmatmul.mubr.msk.bf16.vlgmr.msra.gmra.mrb[92].mxu1 %vm573_vm4, %v2364_v31  ;;  %v2858_v41 = vpop.permute.xlu0 %2857  ;;  %v3010_v7 = vpop.permute.xlu1 %3009 }
 0x79e   :  { %4291 = vmatpush3.bf16.xpose.msra.mxu1 %v2815_v24  ;;  %4292 = vmatprep.mubr.msk.bf16.mxu1 %vm4527_vm0, %v4526_v3  ;;  %v3015_v0 = vsel %vm27_vm1, %v3010_v7, 0 }
 0x79f   :  { %4302 = vmatprep.subr.bf16.mxu1 %v4526_v3 }
 0x7a1   :  { %4287 = vmatmul.mubr.msk.bf16.vlgmr.msra.gmra.mrb[96].mxu0 %vm27_vm1, %v2758_v48  ;;  %v2960_v57 = vpop.permute.xlu0 %2959  ;;  %v3008_v61 = vpop.permute.xlu1 %3007 }
 0x7a2   :  { %4297 = vmatpush3.bf16.xpose.msra.mxu0 %v2865_v6  ;;  %4298 = vmatprep.mubr.msk.bf16.mxu0 %vm4527_vm0, %v4526_v3  ;;  %v2965_v1 = vsel %vm27_vm1, %v2960_v57, 0 }
 0x7a3   :  { %4308 = vmatprep.subr.bf16.mxu0 %v4526_v3 }
 0x7a5   :  { %4293 = vmatmul.mubr.msk.bf16.vlgmr.msra.gmra.mrb[96].mxu1 %vm27_vm1, %v2808_v29  ;;  %v2958_v39 = vpop.permute.xlu0 %2957  ;;  %v3110_v46 = vpop.permute.xlu1 %3109 }
 0x7a6   :  { %4303 = vmatpush3.bf16.xpose.msra.mxu1 %v2915_v8  ;;  %4304 = vmatprep.mubr.msk.bf16.mxu1 %vm4527_vm0, %v4526_v3  ;;  %v3115_v56 = vsel %vm27_vm1, %v3110_v46, 0 }
 0x7a7   :  { %4314 = vmatprep.subr.bf16.mxu1 %v4526_v3 }
 0x7a9   :  { %4299 = vmatmul.mubr.msk.bf16.vlgmr.msra.gmra.mrb[100].mxu0 %vm27_vm1, %v2858_v41  ;;  %v3060_v19 = vpop.permute.xlu0 %3059  ;;  %v3108_v27 = vpop.permute.xlu1 %3107 }
 0x7aa   :  { %4309 = vmatpush3.bf16.xpose.msra.mxu0 %v2965_v1  ;;  %4310 = vmatprep.mubr.msk.bf16.mxu0 %vm4527_vm0, %v4526_v3  ;;  %v3065_v10 = vsel %vm27_vm1, %v3060_v19, 0 }
 0x7ab   :  { %4320 = vmatprep.subr.bf16.mxu0 %v4526_v3 }
 0x7ad   :  { %4305 = vmatmul.mubr.msk.bf16.vlgmr.msra.gmra.mrb[100].mxu1 %vm27_vm1, %v2908_v35  ;;  %v3058_v26 = vpop.permute.xlu0 %3057  ;;  %v3262_v29 = vpop.permute.xlu1 %3261 }
 0x7ae   :  { %4315 = vmatpush3.bf16.xpose.msra.mxu1 %v3015_v0  ;;  %4316 = vmatprep.mubr.msk.bf16.mxu1 %vm4527_vm0, %v4526_v3  ;;  %v3267_v47 = vsel %vm577_vm2, %v3262_v29, 0 }
 0x7af   :  { %4326 = vmatprep.subr.bf16.mxu1 %v4526_v3 }
 0x7b1   :  { %4311 = vmatmul.mubr.msk.bf16.vlgmr.msra.gmra.mrb[104].mxu0 %vm27_vm1, %v2958_v39 }
 0x7b2   :  { %4321 = vmatpush3.bf16.xpose.msra.mxu0 %v3065_v10  ;;  %4322 = vmatprep.mubr.msk.bf16.mxu0 %vm4527_vm0, %v4526_v3 }
 0x7b3   :  { %4332 = vmatprep.subr.bf16.mxu0 %v4526_v3 }
 0x7b5   :  { %4317 = vmatmul.mubr.msk.bf16.vlgmr.msra.gmra.mrb[104].mxu1 %vm27_vm1, %v3008_v61 }
 0x7b6   :  { %4327 = vmatpush3.bf16.xpose.msra.mxu1 %v3115_v56  ;;  %4328 = vmatprep.mubr.msk.bf16.mxu1 %vm4527_vm0, %v4526_v3 }
 0x7b7   :  { %4338 = vmatprep.subr.bf16.mxu1 %v4526_v3 }
 0x7b9   :  { %4323 = vmatmul.mubr.msk.bf16.vlgmr.msra.gmra.mrb[108].mxu0 %vm27_vm1, %v3058_v26 }
 0x7ba   :  { %4334 = vmatprep.mubr.msk.bf16.mxu0 %vm4527_vm0, %v4526_v3  ;;  %4333 = vmatpush3.bf16.msra.mxu0 %v3267_v47 }
 0x7bb   :  { %4344 = vmatprep.subr.bf16.mxu0 %v4526_v3 }
 0x7bd   :  { %4329 = vmatmul.mubr.msk.bf16.vlgmr.msra.gmra.mrb[108].mxu1 %vm27_vm1, %v3108_v27 }
 0x7be   :  { %4340 = vmatprep.mubr.msk.bf16.mxu1 %vm4527_vm0, %v4526_v3 }
 0x827   :  { %v5190_v54 = vpop.f32.mrb[80].mxu0 }
 0x828   :  { %v4240_v30 = vpop.f32.mrb[81].mxu0 }
 0x829   :  { %v2410_v9 = vpop.f32.mrb[82].mxu0 }
 0x82a   :  { %v4241_v32 = vpop.f32.mrb[83].mxu0 }
 0x82b   :  { %v5192_v33 = vpop.f32.mrb[80].mxu1 }
 0x82c   :  { %v4246_v23 = vpop.f32.mrb[81].mxu1 }
 0x82d   :  { %v2458_v20 = vpop.f32.mrb[82].mxu1 }
 0x82e   :  { %v4247_v25 = vpop.f32.mrb[83].mxu1 }
 0x82f   :  { %v5194_v28 = vpop.f32.mrb[84].mxu0 }
 0x830   :  { %v4252_v37 = vpop.f32.mrb[85].mxu0 }
 0x831   :  { %v2506_v16 = vpop.f32.mrb[86].mxu0 }
 0x832   :  { %v4253_v45 = vpop.f32.mrb[87].mxu0 }
 0x833   :  { %v5197_v48 = vpop.f32.mrb[84].mxu1 }
 0x834   :  { %v4258_v11 = vpop.f32.mrb[85].mxu1 }
 0x835   :  { %v2554_v52 = vpop.f32.mrb[86].mxu1 }
 0x836   :  { %v4259_v53 = vpop.f32.mrb[87].mxu1 }
 0x837   :  { %v5200_v44 = vpop.f32.mrb[88].mxu0 }
 0x838   :  { %v4264_v59 = vpop.f32.mrb[89].mxu0 }
 0x839   :  { %v2602_v60 = vpop.f32.mrb[90].mxu0 }
 0x83a   :  { %v4265_v4 = vpop.f32.mrb[91].mxu0 }
 0x83b   :  { %v5202_v24 = vpop.f32.mrb[88].mxu1 }
 0x83c   :  { %v4270_v31 = vpop.f32.mrb[89].mxu1 }
 0x83d   :  { %v2650_v41 = vpop.f32.mrb[90].mxu1 }
 0x83e   :  { %v4271_v35 = vpop.f32.mrb[91].mxu1 }
 0x86c   :  { %v5204_v6 = vpop.f32.mrb[92].mxu0 }
 0x86d   :  { %v4276_v57 = vpop.f32.mrb[93].mxu0 }
 0x86e   :  { %v2698_v8 = vpop.f32.mrb[94].mxu0 }
 0x86f   :  { %v4277_v7 = vpop.f32.mrb[95].mxu0 }
 0x870   :  { %v5206_v39 = vpop.f32.mrb[92].mxu1 }
 0x871   :  { %v4282_v1 = vpop.f32.mrb[93].mxu1 }
 0x872   :  { %v2746_v61 = vpop.f32.mrb[94].mxu1 }
 0x873   :  { %v4283_v0 = vpop.f32.mrb[95].mxu1 }
 0x874   :  { %v2801_v19 = vpop.f32.mrb[96].mxu0 }
 0x875   :  { %v3157_v10 = vmul.f32 0.35355338, %v2801_v19  ;;  %v4288_v46 = vpop.f32.mrb[97].mxu0 }
 0x876   :  { %v2804_v56 = vpop.f32.mrb[98].mxu0 }
 0x877   :  { %v4289_v26 = vpop.f32.mrb[99].mxu0  ;;  %v3165_v27 = vsel %vm474_vm3, %v3157_v10, -inf }
 0x878   :  { %v2851_v30 = vpop.f32.mrb[96].mxu1  ;;  %3166 = vmax.xlane.f32.xlu0 %v3165_v27 }
 0x879   :  { %v3158_v9 = vmul.f32 0.35355338, %v2851_v30  ;;  %v4294_v32 = vpop.f32.mrb[97].mxu1 }
 0x87a   :  { %v2854_v23 = vpop.f32.mrb[98].mxu1 }
 0x87b   :  { %v4295_v20 = vpop.f32.mrb[99].mxu1  ;;  %v3168_v25 = vsel %vm474_vm3, %v3158_v9, -inf }
 0x87c   :  { %3169 = vmax.xlane.f32.xlu1 %v3168_v25  ;;  %v2901_v37 = vpop.f32.mrb[100].mxu0 }
 0x87d   :  { %v3159_v16 = vmul.f32 0.35355338, %v2901_v37  ;;  %v4300_v29 = vpop.f32.mrb[101].mxu0 }
 0x87e   :  { %v2904_v45 = vpop.f32.mrb[102].mxu0 }
 0x87f   :  { %v4301_v47 = vpop.f32.mrb[103].mxu0  ;;  %v3171_v11 = vsel %vm474_vm3, %v3159_v16, -inf }
 0x880   :  { %v2951_v52 = vpop.f32.mrb[100].mxu1  ;;  %3172 = vmax.xlane.f32.xlu0 %v3171_v11 }
 0x881   :  { %v3160_v53 = vmul.f32 0.35355338, %v2951_v52  ;;  %v4306_v59 = vpop.f32.mrb[101].mxu1 }
 0x882   :  { %v2954_v60 = vpop.f32.mrb[102].mxu1 }
 0x883   :  { %v4307_v4 = vpop.f32.mrb[103].mxu1  ;;  %v3174_v31 = vsel %vm474_vm3, %v3160_v53, -inf }
 0x884   :  { %3175 = vmax.xlane.f32.xlu0 %v3174_v31  ;;  %v3001_v41 = vpop.f32.mrb[104].mxu0 }
 0x885   :  { %v5212_v35 = vmul.f32 0.35355338, %v3001_v41  ;;  %v4312_v57 = vpop.f32.mrb[105].mxu0 }
 0x886   :  { %v3004_v8 = vpop.f32.mrb[106].mxu0 }
 0x887   :  { %v3177_v7 = vsel %vm474_vm3, %v5212_v35, -inf  ;;  %v4313_v1 = vpop.f32.mrb[107].mxu0 }
 0x888   :  { %v3051_v61 = vpop.f32.mrb[104].mxu1  ;;  %3178 = vmax.xlane.f32.xlu1 %v3177_v7 }
 0x889   :  { %v5216_v0 = vmul.f32 0.35355338, %v3051_v61  ;;  %v4318_v19 = vpop.f32.mrb[105].mxu1 }
 0x88a   :  { %v3054_v46 = vpop.f32.mrb[106].mxu1 }
 0x88b   :  { %v3180_v56 = vsel %vm474_vm3, %v5216_v0, -inf  ;;  %v4319_v26 = vpop.f32.mrb[107].mxu1 }
 0x88c   :  { %3181 = vmax.xlane.f32.xlu0 %v3180_v56  ;;  %v3101_v27 = vpop.f32.mrb[108].mxu0 }
 0x88d   :  { %v3163_v30 = vmul.f32 0.35355338, %v3101_v27  ;;  %v4324_v32 = vpop.f32.mrb[109].mxu0 }
 0x88e   :  { %v3104_v23 = vpop.f32.mrb[110].mxu0 }
 0x88f   :  { %v3183_v20 = vsel %vm474_vm3, %v3163_v30, -inf  ;;  %v4325_v25 = vpop.f32.mrb[111].mxu0 }
 0x890   :  { %v3151_v37 = vpop.f32.mrb[108].mxu1  ;;  %3184 = vmax.xlane.f32.xlu1 %v3183_v20 }
 0x891   :  { %v3164_v29 = vmul.f32 0.35355338, %v3151_v37  ;;  %v4330_v45 = vpop.f32.mrb[109].mxu1 }
 0x892   :  { %v3154_v47 = vpop.f32.mrb[110].mxu1 }
 0x893   :  { %v3186_v11 = vsel %vm474_vm3, %v3164_v29, -inf  ;;  %v4331_v52 = vpop.f32.mrb[111].mxu1 }
 0x894   :  { %3187 = vmax.xlane.f32.xlu0 %v3186_v11 }
 0x8a1   :  { %3357 = vrot.lane.b32.xlu1 %v4572_v12, %s4538_s2 }
 0x8a5   :  { %3405 = vrot.lane.b32.xlu1 %v4578_v14, %s4538_s2 }
 0x8aa   :  { %3309 = vrot.lane.b32.xlu0 %v4575_v13, %s4538_s2 }
 0x905   :  { %v3167_v59 = vpop.xlane.xlu0 %3166 }
 0x906   :  { %v3189_v60 = vsub.f32 %v3157_v10, %v3167_v59 }
 0x908   :  { %v3197_v4 = vmul.f32 1.442695, %v3189_v60 }
 0x909   :  { %v3170_v31 = vpop.xlane.xlu1 %3169 }
 0x90a   :  { %4493 = vpow2.f32 %v3197_v4  ;;  %v3190_v41 = vsub.f32 %v3158_v9, %v3170_v31 }
 0x90c   :  { %v3199_v57 = vmul.f32 1.442695, %v3190_v41 }
 0x90d   :  { %v3173_v8 = vpop.xlane.xlu0 %3172 }
 0x90e   :  { %4495 = vpow2.f32 %v3199_v57  ;;  %v3191_v7 = vsub.f32 %v3159_v16, %v3173_v8  ;;  %v1854_v57 = vpack.c.bf16 %v5012_v36, %v5012_v36  ;;  %v1856_v8 = vpack.c.bf16 %v5017_v49, %v5017_v49 }
 0x90f   :  { %v1855_v36 = vpack.c.bf16 %v5014_v42, %v5014_v42  ;;  %v2750_v49 = vpack.c.bf16 %v5192_v33, %v5192_v33  ;;  %v2754_v42 = vpack.c.bf16 %v5202_v24, %v5202_v24  ;;  %v2751_v33 = vpack.c.bf16 %v5194_v28, %v5194_v28 }
 0x910   :  { %v3201_v1 = vmul.f32 1.442695, %v3191_v7  ;;  %v1858_v7 = vpack.c.bf16 %v5024_v63, %v5024_v63  ;;  %v1859_v63 = vpack.c.bf16 %v5026_v5, %v5026_v5  ;;  %v2753_v5 = vpack.c.bf16 %v5200_v44, %v5200_v44 }
 0x911   :  { %v3176_v61 = vpop.xlane.xlu0 %3175 }
 0x912   :  { %4497 = vpow2.f32 %v3201_v1  ;;  %v3192_v12 = vsub.f32 %v3160_v53, %v3176_v61  ;;  %v1853_v1 = vpack.c.bf16 %v5010_v38, %v5010_v38  ;;  %v2752_v38 = vpack.c.bf16 %v5197_v48, %v5197_v48 }
 0x913   :  { %v2755_v48 = vpack.c.bf16 %v5204_v6, %v5204_v6 }
 0x914   :  { %v5228_v19 = vpop.eup %4493  ;;  %v3203_v14 = vmul.f32 1.442695, %v3192_v12 }
 0x915   :  { %v3213_v13 = vsel %vm474_vm3, %v5228_v19, 0.0  ;;  %v3179_v20 = vpop.xlane.xlu1 %3178 }
 0x916   :  { %4499 = vpow2.f32 %v3203_v14  ;;  %3214 = vadd.xlane.f32.xlu1 %v3213_v13  ;;  %v3193_v25 = vsub.f32 %v5212_v35, %v3179_v20 }
 0x918   :  { %v5232_v10 = vpop.eup %4495  ;;  %v3205_v47 = vmul.f32 1.442695, %v3193_v25 }
 0x919   :  { %v3216_v9 = vsel %vm474_vm3, %v5232_v10, 0.0  ;;  %v3182_v16 = vpop.xlane.xlu0 %3181 }
 0x91a   :  { %3217 = vadd.xlane.f32.xlu0 %v3216_v9  ;;  %v3194_v45 = vsub.f32 %v5216_v0, %v3182_v16  ;;  %4501 = vpow2.f32 %v3205_v47 }
 0x91c   :  { %v5236_v46 = vpop.eup %4497  ;;  %v3207_v52 = vmul.f32 1.442695, %v3194_v45 }
 0x91d   :  { %v3219_v53 = vsel %vm474_vm3, %v5236_v46, 0.0  ;;  %v3185_v37 = vpop.xlane.xlu1 %3184 }
 0x91e   :  { %3220 = vadd.xlane.f32.xlu1 %v3219_v53  ;;  %v3195_v11 = vsub.f32 %v3163_v30, %v3185_v37  ;;  %4503 = vpow2.f32 %v3207_v52 }
 0x920   :  { %v5240_v56 = vpop.eup %4499  ;;  %v3209_v59 = vmul.f32 1.442695, %v3195_v11 }
 0x921   :  { %v3188_v26 = vpop.xlane.xlu0 %3187  ;;  %v3222_v27 = vsel %vm474_vm3, %v5240_v56, 0.0  ;;  %v3358_v24 = vpop.permute.xlu1 %3357 }
 0x922   :  { %3223 = vadd.xlane.f32.xlu0 %v3222_v27  ;;  %v3196_v60 = vsub.f32 %v3164_v29, %v3188_v26  ;;  %4505 = vpow2.f32 %v3209_v59  ;;  %v3363_v16 = vsel %vm577_vm2, %v3358_v24, 0 }
 0x924   :  { %v3211_v4 = vmul.f32 1.442695, %v3196_v60 }
 0x925   :  { %v3310_v32 = vpop.permute.xlu0 %3309 }
 0x926   :  { %v3315_v23 = vsel %vm577_vm2, %v3310_v32, 0  ;;  %4507 = vpow2.f32 %v3211_v4 }
 0x927   :  { %4339 = vmatpush3.bf16.msra.mxu1 %v3315_v23 }
 0x928   :  { %4350 = vmatprep.subr.bf16.mxu1 %v4526_v3 }
 0x92f   :  { %3501 = vrot.lane.b32.xlu1 %v4590_v18, %s4538_s2  ;;  %v5252_v18 = vpop.eup %4501 }
 0x930   :  { %v5254_v31 = vpop.eup %4503 }
 0x931   :  { %v5258_v35 = vpop.eup %4505  ;;  %v3228_v30 = vsel %vm474_vm3, %v5254_v31, 0.0 }
 0x932   :  { %v3231_v0 = vsel %vm474_vm3, %v5258_v35, 0.0  ;;  %v5264_v29 = vpop.eup %4507 }
 0x933   :  { %v3234_v41 = vsel %vm474_vm3, %v5264_v29, 0.0 }
 0x938   :  { %3453 = vrot.lane.b32.xlu0 %v4588_v17, %s4538_s2  ;;  %v3225_v17 = vsel %vm474_vm3, %v5252_v18, 0.0 }
 0x953   :  { %3226 = vadd.xlane.f32.xlu1 %v3225_v17 }
 0x957   :  { %3232 = vadd.xlane.f32.xlu1 %v3231_v0  ;;  %3229 = vadd.xlane.f32.xlu0 %v3228_v30 }
 0x95b   :  { %3235 = vadd.xlane.f32.xlu0 %v3234_v41 }
 0x968   :  { %3597 = vrot.lane.b32.xlu1 %v4602_v22, %s4538_s2  ;;  %v1860_v22 = vpack.c.bf16 %v5028_v15, %v5028_v15  ;;  %v2749_v15 = vpack.c.bf16 %v5190_v54, %v5190_v54  ;;  %v3406_v54 = vpop.permute.xlu1 %3405 }
 0x96c   :  { %3663 = vrot.lane.b32.xlu1 %v1854_v57, %s4539_s3 }
 0x970   :  { %3667 = vrot.lane.b32.xlu1 %v1856_v8, %s4539_s3 }
 0x971   :  { %3549 = vrot.lane.b32.xlu0 %v4600_v21, %s4538_s2  ;;  %v1857_v21 = vpack.c.bf16 %v5022_v50, %v5022_v50  ;;  %v2756_v50 = vpack.c.bf16 %v5206_v39, %v5206_v39 }
 0x974   :  { %3671 = vrot.lane.b32.xlu1 %v1858_v7, %s4539_s3 }
 0x975   :  { %3661 = vrot.lane.b32.xlu0 %v1853_v1, %s4539_s3 }
 0x978   :  { %3675 = vrot.lane.b32.xlu1 %v1860_v22, %s4539_s3 }
 0x979   :  { %3665 = vrot.lane.b32.xlu0 %v1855_v36, %s4539_s3  ;;  %v962_v36 = vpack.c.bf16 %v4838_v58, %v4838_v58  ;;  %v964_v58 = vpack.c.bf16 %v4842_v2, %v4842_v2 }
 0x97c   :  { %3687 = vrot.lane.b32.xlu1 %v2750_v49, %s4540_s4 }
 0x97d   :  { %3669 = vrot.lane.b32.xlu0 %v1857_v21, %s4539_s3 }
 0x980   :  { %3691 = vrot.lane.b32.xlu1 %v2752_v38, %s4540_s4 }
 0x981   :  { %3673 = vrot.lane.b32.xlu0 %v1859_v63, %s4539_s3 }
 0x984   :  { %3695 = vrot.lane.b32.xlu1 %v2754_v42, %s4540_s4 }
 0x985   :  { %3685 = vrot.lane.b32.xlu0 %v2749_v15, %s4540_s4 }
 0x988   :  { %3699 = vrot.lane.b32.xlu1 %v2756_v50, %s4540_s4 }
 0x989   :  { %3689 = vrot.lane.b32.xlu0 %v2751_v33, %s4540_s4 }
 0x98d   :  { %3693 = vrot.lane.b32.xlu0 %v2753_v5, %s4540_s4 }
 0x991   :  { %3697 = vrot.lane.b32.xlu0 %v2755_v48, %s4540_s4 }
 0x9a3   :  { %v3215_v61 = vpop.xlane.xlu1 %3214 }
 0x9a4   :  { %4509 = vrcp.f32 %v3215_v61 }
 0x9a7   :  { %v3218_v12 = vpop.xlane.xlu0 %3217 }
 0x9a8   :  { %4511 = vrcp.f32 %v3218_v12 }
 0x9ab   :  { %v3221_v39 = vpop.xlane.xlu1 %3220 }
 0x9ac   :  { %4513 = vrcp.f32 %v3221_v39 }
 0x9ae   :  { %v4510_v14 = vpop.eup %4509 }
 0x9af   :  { %v3245_v28 = vmul.f32 %v4510_v14, %v5228_v19  ;;  %v3224_v13 = vpop.xlane.xlu0 %3223  ;;  %v3411_v19 = vsel %vm577_vm2, %v3406_v54, 0  ;;  %v3502_v37 = vpop.permute.xlu1 %3501  ;;  %v963_v54 = vpack.c.bf16 %v4840_v62, %v4840_v62 }
 0x9b0   :  { %4515 = vrcp.f32 %v3224_v13  ;;  %v3507_v45 = vsel %vm577_vm2, %v3502_v37, 0 }
 0x9b1   :  { %v3253_v9 = vpack.c.bf16 %v3245_v28, %v3245_v28 }
 0x9b2   :  { %v4512_v44 = vpop.eup %4511 }
 0x9b3   :  { %v3246_v6 = vmul.f32 %v4512_v44, %v5232_v10  ;;  %4335 = vmatmul.mubr.msk.bf16.vlgmr.msra.gmra.mrb[112].mxu0 %vm573_vm4, %v3253_v9  ;;  %v3454_v32 = vpop.permute.xlu0 %3453 }
 0x9b4   :  { %4345 = vmatpush3.bf16.msra.mxu0 %v3363_v16  ;;  %4346 = vmatprep.mubr.msk.bf16.mxu0 %vm4527_vm0, %v4526_v3  ;;  %v3459_v25 = vsel %vm577_vm2, %v3454_v32, 0 }
 0x9b5   :  { %v3254_v53 = vpack.c.bf16 %v3246_v6, %v3246_v6  ;;  %4356 = vmatprep.subr.bf16.mxu0 %v4526_v3 }
 0x9b6   :  { %v4514_v26 = vpop.eup %4513 }
 0x9b7   :  { %v3247_v27 = vmul.f32 %v4514_v26, %v5236_v46  ;;  %4341 = vmatmul.mubr.msk.bf16.vlgmr.msra.gmra.mrb[112].mxu1 %vm573_vm4, %v3254_v53 }
 0x9b8   :  { %4351 = vmatpush3.bf16.msra.mxu1 %v3411_v19  ;;  %4352 = vmatprep.mubr.msk.bf16.mxu1 %vm4527_vm0, %v4526_v3 }
 0x9b9   :  { %v3255_v10 = vpack.c.bf16 %v3247_v27, %v3247_v27  ;;  %4362 = vmatprep.subr.bf16.mxu1 %v4526_v3 }
 0x9ba   :  { %v4516_v23 = vpop.eup %4515 }
 0x9bb   :  { %v3248_v20 = vmul.f32 %v4516_v23, %v5240_v56  ;;  %4347 = vmatmul.mubr.msk.bf16.vlgmr.msra.gmra.mrb[116].mxu0 %vm573_vm4, %v3255_v10 }
 0x9bc   :  { %4357 = vmatpush3.bf16.msra.mxu0 %v3459_v25  ;;  %4358 = vmatprep.mubr.msk.bf16.mxu0 %vm4527_vm0, %v4526_v3 }
 0x9bd   :  { %v3256_v46 = vpack.c.bf16 %v3248_v20, %v3248_v20  ;;  %4368 = vmatprep.subr.bf16.mxu0 %v4526_v3 }
 0x9bf   :  { %4353 = vmatmul.mubr.msk.bf16.vlgmr.msra.gmra.mrb[116].mxu1 %vm573_vm4, %v3256_v46 }
 0x9c0   :  { %4363 = vmatpush3.bf16.msra.mxu1 %v3507_v45  ;;  %4364 = vmatprep.mubr.msk.bf16.mxu1 %vm4527_vm0, %v4526_v3 }
 0x9c1   :  { %4374 = vmatprep.subr.bf16.mxu1 %v4526_v3 }
 0x9e0   :  { %v3227_v56 = vpop.xlane.xlu1 %3226 }
 0x9e1   :  { %4517 = vrcp.f32 %v3227_v56 }
 0x9e4   :  { %v3233_v47 = vpop.xlane.xlu1 %3232  ;;  %v3230_v11 = vpop.xlane.xlu0 %3229 }
 0x9e5   :  { %4519 = vrcp.f32 %v3233_v47 }
 0x9e6   :  { %4521 = vrcp.f32 %v3230_v11 }
 0x9e8   :  { %v3598_v52 = vpop.permute.xlu1 %3597  ;;  %v3236_v59 = vpop.xlane.xlu0 %3235 }
 0x9e9   :  { %4523 = vrcp.f32 %v3236_v59  ;;  %v3603_v49 = vsel %vm577_vm2, %v3598_v52, 0 }
 0x9eb   :  { %v4518_v60 = vpop.eup %4517 }
 0x9ec   :  { %v3249_v4 = vmul.f32 %v4518_v60, %v5252_v18  ;;  %v5329_v17 = vpop.permute.xlu1 %3663  ;;  %v3550_v0 = vpop.permute.xlu0 %3549 }
 0x9ed   :  { %v3555_v30 = vsel %vm577_vm2, %v3550_v0, 0 }
 0x9ee   :  { %v3257_v41 = vpack.c.bf16 %v3249_v4, %v3249_v4 }
 0x9ef   :  { %v4520_v57 = vpop.eup %4519 }
 0x9f0   :  { %v4522_v8 = vpop.eup %4521  ;;  %v5332_v7 = vpop.permute.xlu1 %3667  ;;  %4359 = vmatmul.mubr.msk.bf16.vlgmr.msra.gmra.mrb[120].mxu0 %vm573_vm4, %v3257_v41  ;;  %v3251_v18 = vmul.f32 %v4520_v57, %v5258_v35  ;;  %v961_v35 = vpack.c.bf16 %v4836_v55, %v4836_v55 }
 0x9f1   :  { %v5335_v1 = vpop.permute.xlu0 %3661  ;;  %v3250_v22 = vmul.f32 %v4522_v8, %v5254_v31  ;;  %4369 = vmatpush3.bf16.msra.mxu0 %v3555_v30  ;;  %4370 = vmatprep.mubr.msk.bf16.mxu0 %vm4527_vm0, %v4526_v3 }
 0x9f2   :  { %v3259_v31 = vpack.c.bf16 %v3251_v18, %v3251_v18 }
 0x9f3   :  { %v3258_v21 = vpack.c.bf16 %v3250_v22, %v3250_v22  ;;  %v4524_v38 = vpop.eup %4523 }
 0x9f4   :  { %v3672_v63 = vpop.permute.xlu1 %3671  ;;  %v3252_v50 = vmul.f32 %v4524_v38, %v5264_v29 }
 0x9f5   :  { %v5344_v42 = vpop.permute.xlu0 %3665  ;;  %v3742_v15 = vsel %vm27_vm1, %v962_v36, %v3672_v63  ;;  %4365 = vmatmul.mubr.msk.bf16.vlgmr.msra.gmra.mrb[120].mxu1 %vm573_vm4, %v3258_v21 }
 0x9f6   :  { %4375 = vmatpush3.bf16.msra.mxu1 %v3603_v49  ;;  %4376 = vmatprep.mubr.msk.bf16.mxu1 %vm4527_vm0, %v4526_v3  ;;  %v3260_v3 = vpack.c.bf16 %v3252_v50, %v3252_v50 }
 0x9f8   :  { %v3676_v33 = vpop.permute.xlu1 %3675  ;;  %4371 = vmatmul.mubr.msk.bf16.vlgmr.msra.gmra.mrb[124].mxu0 %vm573_vm4, %v3259_v31 }
 0x9f9   :  { %v3670_v5 = vpop.permute.xlu0 %3669  ;;  %v3748_v48 = vsel %vm27_vm1, %v964_v58, %v3676_v33 }
 0x9fa   :  { %v3739_v24 = vsel %vm27_vm1, %v961_v35, %v3670_v5 }
 0x9fc   :  { %v5360_v61 = vpop.permute.xlu1 %3687 }
 0x9fd   :  { %v3674_v55 = vpop.permute.xlu0 %3673  ;;  %4377 = vmatmul.mubr.msk.bf16.vlgmr.msra.gmra.mrb[124].mxu1 %vm573_vm4, %v3260_v3 }
 0x9fe   :  { %v3745_v2 = vsel %vm27_vm1, %v963_v54, %v3674_v55  ;;  %v957_v54 = vpack.c.bf16 %v4824_v34, %v4824_v34 }
 0xa00   :  { %v5364_v29 = vpop.permute.xlu1 %3691  ;;  %v3727_v3 = vsel %vm27_vm1, %v957_v54, %v5335_v1 }
 0xa01   :  { %v5366_v12 = vpop.permute.xlu0 %3685 }
 0xa02   :  { %v3751_v55 = vsel %vm3749_vm5, %v3727_v3, %v5366_v12  ;;  %v959_v12 = vpack.c.bf16 %v4828_v43, %v4828_v43 }
 0xa04   :  { %v3696_v39 = vpop.permute.xlu1 %3695 }
 0xa05   :  { %v5368_v14 = vpop.permute.xlu0 %3689  ;;  %v5371_v28 = vsel %vm3749_vm5, %v3742_v15, %v3696_v39  ;;  %v958_v39 = vpack.c.bf16 %v4826_v40, %v4826_v40  ;;  %v3733_v40 = vsel %vm27_vm1, %v959_v12, %v5344_v42 }
 0xa07   :  { %v3730_v34 = vsel %vm27_vm1, %v958_v39, %v5329_v17  ;;  %v3755_v17 = vsel %vm3749_vm5, %v3733_v40, %v5368_v14 }
 0xa08   :  { %v3700_v62 = vpop.permute.xlu1 %3699  ;;  %v3753_v1 = vsel %vm3749_vm5, %v3730_v34, %v5360_v61  ;;  %v960_v61 = vpack.c.bf16 %v4831_v51, %v4831_v51 }
 0xa09   :  { %v3694_v13 = vpop.permute.xlu0 %3693  ;;  %v5374_v9 = vsel %vm3749_vm5, %v3748_v48, %v3700_v62 }
 0xa0a   :  { %v5377_v44 = vsel %vm3749_vm5, %v3739_v24, %v3694_v13  ;;  %v3736_v43 = vsel %vm27_vm1, %v960_v61, %v5332_v7 }
 0xa0b   :  { %v3757_v42 = vsel %vm3749_vm5, %v3736_v43, %v5364_v29 }
 0xa0d   :  { %v3698_v16 = vpop.permute.xlu0 %3697 }
 0xa0e   :  { %v5380_v6 = vsel %vm3749_vm5, %v3745_v2, %v3698_v16 }
 0xa86   :  { %v3303_v53 = vpop.f32.mrb[112].mxu0 }
 0xa87   :  { %v3645_v26 = vpack.c.bf16 %v3303_v53, %v3303_v53  ;;  %v4336_v19 = vpop.f32.mrb[113].mxu0 }
 0xa88   :  { %v3306_v27 = vpop.f32.mrb[114].mxu0 }
 0xa89   :  { %v4337_v32 = vpop.f32.mrb[115].mxu0  ;;  %3709 = vrot.lane.b32.xlu0 %v3645_v26, %s4541_s5 }
 0xa8a   :  { %v3351_v10 = vpop.f32.mrb[112].mxu1 }
 0xa8b   :  { %v3646_v23 = vpack.c.bf16 %v3351_v10, %v3351_v10  ;;  %v4342_v20 = vpop.f32.mrb[113].mxu1 }
 0xa8c   :  { %v3354_v25 = vpop.f32.mrb[114].mxu1 }
 0xa8d   :  { %3711 = vrot.lane.b32.xlu1 %v3646_v23, %s4541_s5  ;;  %v4343_v37 = vpop.f32.mrb[115].mxu1 }
 0xa8e   :  { %v3399_v46 = vpop.f32.mrb[116].mxu0 }
 0xa8f   :  { %v3647_v45 = vpack.c.bf16 %v3399_v46, %v3399_v46  ;;  %v4348_v56 = vpop.f32.mrb[117].mxu0 }
 0xa90   :  { %v3402_v47 = vpop.f32.mrb[118].mxu0 }
 0xa91   :  { %v4349_v11 = vpop.f32.mrb[119].mxu0  ;;  %3713 = vrot.lane.b32.xlu0 %v3647_v45, %s4541_s5 }
 0xa92   :  { %v3447_v52 = vpop.f32.mrb[116].mxu1 }
 0xa93   :  { %v3648_v59 = vpack.c.bf16 %v3447_v52, %v3447_v52  ;;  %v4354_v60 = vpop.f32.mrb[117].mxu1 }
 0xa94   :  { %v3450_v4 = vpop.f32.mrb[118].mxu1 }
 0xa95   :  { %3715 = vrot.lane.b32.xlu1 %v3648_v59, %s4541_s5  ;;  %v4355_v0 = vpop.f32.mrb[119].mxu1 }
 0xac3   :  { %v3495_v30 = vpop.f32.mrb[120].mxu0 }
 0xac4   :  { %v3649_v41 = vpack.c.bf16 %v3495_v30, %v3495_v30  ;;  %v4360_v57 = vpop.f32.mrb[121].mxu0 }
 0xac5   :  { %v3498_v8 = vpop.f32.mrb[122].mxu0 }
 0xac6   :  { %3717 = vrot.lane.b32.xlu0 %v3649_v41, %s4541_s5  ;;  %v4361_v22 = vpop.f32.mrb[123].mxu0 }
 0xac8   :  { %v3543_v18 = vpop.f32.mrb[120].mxu1 }
 0xac9   :  { %v3650_v36 = vpack.c.bf16 %v3543_v18, %v3543_v18  ;;  %v4366_v49 = vpop.f32.mrb[121].mxu1 }
 0xaca   :  { %v3546_v21 = vpop.f32.mrb[122].mxu1 }
 0xacb   :  { %3719 = vrot.lane.b32.xlu1 %v3650_v36, %s4541_s5  ;;  %v4367_v38 = vpop.f32.mrb[123].mxu1  ;;  %v3591_v63 = vpop.f32.mrb[124].mxu0 }
 0xacc   :  { %v3651_v15 = vpack.c.bf16 %v3591_v63, %v3591_v63  ;;  %v4372_v31 = vpop.f32.mrb[125].mxu0 }
 0xacd   :  { %v3594_v35 = vpop.f32.mrb[126].mxu0 }
 0xace   :  { %3721 = vrot.lane.b32.xlu0 %v3651_v15, %s4541_s5  ;;  %v4373_v58 = vpop.f32.mrb[127].mxu0 }
 0xad0   :  { %v3639_v50 = vpop.f32.mrb[124].mxu1 }
 0xad1   :  { %v3652_v33 = vpack.c.bf16 %v3639_v50, %v3639_v50  ;;  %v4378_v5 = vpop.f32.mrb[125].mxu1 }
 0xad2   :  { %v3642_v48 = vpop.f32.mrb[126].mxu1 }
 0xad3   :  { %3723 = vrot.lane.b32.xlu1 %v3652_v33, %s4541_s5  ;;  %v4379_v24 = vpop.f32.mrb[127].mxu1 }
 0xafb   :  { %v3710_v2 = vpop.permute.xlu0 %3709 }
 0xafc   :  { %v3768_v62 = vsel %vm3766_vm6, %v3751_v55, %v3710_v2 }
 0xafd   :  { %3792 = vst.msk [vmem:[%s5459_s1] sm:$0x3] %vm3791_vm7, %v3768_v62 }
 0xaff   :  { %v3712_v13 = vpop.permute.xlu1 %3711 }
 0xb00   :  { %v3771_v16 = vsel %vm3766_vm6, %v3753_v1, %v3712_v13 }
 0xb01   :  { %3793 = vst.msk [vmem:[%s5459_s1 + $0x2] sm:$0x3] %vm3791_vm7, %v3771_v16 }
 0xb03   :  { %v3714_v53 = vpop.permute.xlu0 %3713 }
 0xb04   :  { %v3774_v26 = vsel %vm3766_vm6, %v3755_v17, %v3714_v53 }
 0xb05   :  { %3794 = vst.msk [vmem:[%s5459_s1 + $0x4] sm:$0x3] %vm3791_vm7, %v3774_v26 }
 0xb07   :  { %v3716_v19 = vpop.permute.xlu1 %3715 }
 0xb08   :  { %v3777_v14 = vsel %vm3766_vm6, %v3757_v42, %v3716_v19 }
 0xb09   :  { %3795 = vst.msk [vmem:[%s5459_s1 + $0x6] sm:$0x3] %vm3791_vm7, %v3777_v14 }
 0xb38   :  { %v3718_v51 = vpop.permute.xlu0 %3717 }
 0xb39   :  { %v3780_v27 = vsel %vm3766_vm6, %v5377_v44, %v3718_v51 }
 0xb3a   :  { %3796 = vst.msk [vmem:[%s5459_s1 + $0x8] sm:$0x3] %vm3791_vm7, %v3780_v27 }
 0xb3d   :  { %v3720_v7 = vpop.permute.xlu1 %3719 }
 0xb3e   :  { %v3783_v29 = vsel %vm3766_vm6, %v5371_v28, %v3720_v7 }
 0xb3f   :  { %3797 = vst.msk [vmem:[%s5459_s1 + $0xa] sm:$0x3] %vm3791_vm7, %v3783_v29 }
 0xb40   :  { %v3722_v32 = vpop.permute.xlu0 %3721 }
 0xb41   :  { %v3786_v10 = vsel %vm3766_vm6, %v5380_v6, %v3722_v32 }
 0xb42   :  { %3798 = vst.msk [vmem:[%s5459_s1 + $0xc] sm:$0x3] %vm3791_vm7, %v3786_v10 }
 0xb45   :  { %v3724_v44 = vpop.permute.xlu1 %3723 }
 0xb46   :  { %v3789_v23 = vsel %vm3766_vm6, %v5374_v9, %v3724_v44 }
 0xb47   :  { %3799 = vst.msk [vmem:[%s5459_s1 + $0xe] sm:$0x3] %vm3791_vm7, %v3789_v23 }

</bundles_post_ra>
